<compile_context>
chip_gen: v7x
topology: tpu7x:2x2x1
jax: 0.10.0
libtpu: 0.0.40
codegen_flags: <defaults>
</compile_context>

<pallas_src>
import functools

import jax
import jax.numpy as jnp
from jax.experimental import pallas as pl
from jax.experimental.pallas import tpu as pltpu

LN_EPS = 1e-10            # matches nn.LayerNorm(output_dim, eps=1e-10)
_INV_SQRT2 = 0.7071067811865476


def _gelu(x):
    # exact (erf-based) GELU, matching torch.nn.GELU() default
    return 0.5 * x * (1.0 + jax.lax.erf(x * _INV_SQRT2))


def _layer_norm_ref(h, gamma, beta_p):
    mu = jnp.mean(h, axis=-1, keepdims=True)
    var = jnp.mean((h - mu) ** 2, axis=-1, keepdims=True)
    return (h - mu) * jax.lax.rsqrt(var + LN_EPS) * gamma + beta_p


# ---------------------------------------------------------------------------
# Kernel (everything is 2-D and lane-dense; no in-kernel reshape/transpose)
# ---------------------------------------------------------------------------
def _res_graph_conv_kernel(x_ref, w1_ref, b1_ref, g1_ref, be1_ref,
                           w2_ref, b2_ref, aq_ref, sm_ref, sb_ref, o_ref,
                           *, beta, mxu_dtype):
    f32 = jnp.float32
    cast = (lambda a: a.astype(mxu_dtype)) if mxu_dtype is not None else (lambda a: a)

    x2 = x_ref[...].astype(f32)               # (bt, N*C): residual / x0, lane dense
    w1 = w1_ref[...]                          # (N*C, N*C) kron(I_N, W1) (mxu dtype)
    w2 = w2_ref[...]                          # (N*C, N*C) kron(I_N, W2)
    aq = aq_ref[...]                          # (N*C, N*C) kron(adj^T, I_C)
    b1, b2 = b1_ref[...], b2_ref[...]         # (1, N*C) per-node tiled biases
    g1, be1 = g1_ref[...], be1_ref[...]       # (1, N*C) LN affine (tiled)
    sm, sb = sm_ref[...], sb_ref[...]         # (N*C, N) mean operator / (N, N*C) bcast

    bx = jnp.float32(beta) * x2               # hoisted: beta*x0 shared by all 3 gconvs
    omb = jnp.float32(1.0 - beta)

    def gconv(h, wk, bias):
        # FlexGConv (assumed GCNII-style): A @ ((1-b)h + b x0) @ W + bias,
        # expressed as two wide right-multiplications (no per-batch matmuls).
        mix = omb * h + bx                                            # (bt, N*C)
        proj = jnp.dot(cast(mix), wk, preferred_element_type=f32)     # block-diag W
        prop = jnp.dot(cast(proj), aq, preferred_element_type=f32)    # adjacency
        return prop + bias

    def layer_norm(h):
        # Per-(batch, node) stats over C channels, computed with small f32
        # matmuls so the (bt, N*C) layout stays lane dense throughout.
        mu = jnp.dot(h, sm, preferred_element_type=f32)               # (bt, N)
        cen = h - jnp.dot(mu, sb, preferred_element_type=f32)
        var = jnp.dot(cen * cen, sm, preferred_element_type=f32)      # (bt, N)
        rstd = jax.lax.rsqrt(jnp.dot(var, sb, preferred_element_type=f32) + LN_EPS)
        return cen * rstd * g1 + be1

    # --- GraphConvBlockI: (shared gconv -> shared LayerNorm) x 2; dropout = id (eval)
    h = layer_norm(gconv(x2, w1, b1))
    h = layer_norm(gconv(h, w1, b1))

    # --- GraphConvBlockII: gconv -> GELU -> dropout(id, eval) -> GELU
    h = gconv(h, w2, b2)
    h = _gelu(_gelu(h))

    o_ref[...] = (x2 + h).astype(o_ref.dtype)


# ---------------------------------------------------------------------------
# Tiling heuristics
# ---------------------------------------------------------------------------
def _cdiv(a, b):
    return -(-a // b)


def _pick_batch_tile(B, NC, block_b=None):
    """VMEM-sized batch tile (not MXU-row sized): big blocks amortize the
    ~0.35us/grid-step overhead; capped so ~12 block-sized f32 live buffers
    (double-buffered I/O + temporaries) fit the per-generation VMEM."""
    row_bytes = NC * 4                        # one f32 batch row
    vmem_cap, cores = 64 << 20, 1             # conservative defaults (v7x-safe)
    try:
        info = pltpu.get_tpu_info()
        vmem_cap = int(getattr(info, "vmem_capacity_bytes", vmem_cap))
        cores = int(getattr(info, "num_cores", cores))
    except Exception:
        pass
    vmem_limit = min(vmem_cap * 3 // 4, 100 << 20)     # v5e/v6e ~96MiB, v7x 48MiB
    bt_cap = max(8, (vmem_limit // 2) // (12 * row_bytes))
    if block_b is not None:
        bt = max(1, min(int(block_b), B))
    else:
        bt = max(1, min((1 << 20) // row_bytes, bt_cap, B))   # ~1 MiB x-block
    g = _cdiv(B, bt)
    if block_b is None and cores > 1 and 1 < g < 2 * cores:
        g = 2 * cores                          # >=2 steps/core so DMA overlaps compute
    bt = _cdiv(B, g)
    if g > 1 and bt % 8:
        bt = _cdiv(bt, 8) * 8                  # keep split blocks sublane-aligned
        g = _cdiv(B, bt)
    return bt, g, bt * g, vmem_limit


# ---------------------------------------------------------------------------
# Wrapper
# ---------------------------------------------------------------------------
def res_graph_conv(x, adj, params, beta, *, block_b=None, mxu_dtype=jnp.bfloat16):
    """x: (B, N, C) f32, adj: (N, N) f32. Returns (B, N, C)."""
    B, N, C = x.shape
    NC = N * C
    f32 = jnp.float32

    # ---- operator matrices (would be precomputed/cached once in a real model)
    eye_n = jnp.eye(N, dtype=f32)
    w1k = jnp.kron(eye_n, params["w1"].astype(f32))          # block-diag channel proj
    w2k = jnp.kron(eye_n, params["w2"].astype(f32))
    aq = jnp.kron(adj.T.astype(f32), jnp.eye(C, dtype=f32))  # right-mult adjacency op
    if mxu_dtype is not None:
        w1k, w2k, aq = (m.astype(mxu_dtype) for m in (w1k, w2k, aq))
    sm = jnp.kron(eye_n, jnp.full((C, 1), 1.0 / C, f32))     # (NC, N) per-node mean
    sb = jnp.kron(eye_n, jnp.ones((1, C), f32))              # (N, NC) broadcast back
    tile_c = lambda v: jnp.tile(v.astype(f32).reshape(1, C), (1, N))
    b1t, b2t = tile_c(params["b1"]), tile_c(params["b2"])
    g1t, be1t = tile_c(params["g1"]), tile_c(params["be1"])

    bt, g, Bp, vmem_limit = _pick_batch_tile(B, NC, block_b)

    xf = x.reshape(B, NC)                     # contiguous reshape: no HBM copy
    if Bp != B:                               # rare: only when the tile can't divide B
        xf = jnp.concatenate([xf, jnp.zeros((Bp - B, NC), xf.dtype)], axis=0)

    kern = functools.partial(_res_graph_conv_kernel, beta=float(beta),
                             mxu_dtype=mxu_dtype)
    const = lambda shape: pl.BlockSpec(shape, lambda i: (0, 0))
    w_bytes = 2 if mxu_dtype is not None else 4
    cost = pl.CostEstimate(
        flops=int(Bp * (12 * NC * NC + 16 * NC * N)),
        transcendentals=int(4 * Bp * NC),
        bytes_accessed=int(4 * 2 * Bp * NC + 3 * NC * NC * w_bytes + 8 * NC * 4),
    )

    out = pl.pallas_call(
        kern,
        out_shape=jax.ShapeDtypeStruct((Bp, NC), x.dtype),
        grid_spec=pltpu.PrefetchScalarGridSpec(
            num_scalar_prefetch=0,
            grid=(g,),
            in_specs=[
                pl.BlockSpec((bt, NC), lambda i: (i, 0)),    # x (batch blocked)
                const((NC, NC)), const((1, NC)),             # kron(I,W1), b1
                const((1, NC)), const((1, NC)),              # LN gamma, LN beta
                const((NC, NC)), const((1, NC)),             # kron(I,W2), b2
                const((NC, NC)),                             # kron(adj^T, I_C)
                const((NC, N)), const((N, NC)),              # LN mean / broadcast ops
            ],
            out_specs=pl.BlockSpec((bt, NC), lambda i: (i, 0)),
        ),
        compiler_params=pltpu.CompilerParams(
            dimension_semantics=("parallel",),
            vmem_limit_bytes=int(vmem_limit)),
        cost_estimate=cost,
    )(xf, w1k, b1t, g1t, be1t, w2k, b2t, aq, sm, sb)
    return out[:B].reshape(B, N, C)


# ---------------------------------------------------------------------------
# Pure-JAX reference
# ---------------------------------------------------------------------------
def res_graph_conv_ref(x, adj, params, beta):
    def gconv(h, x0, w, b):
        mix = (1.0 - beta) * h + beta * x0
        return jnp.einsum("nm,bmc->bnc", adj, mix) @ w + b

    residual = x
    h = _layer_norm_ref(gconv(x, residual, params["w1"], params["b1"]),
                        params["g1"], params["be1"])
    h = _layer_norm_ref(gconv(h, residual, params["w1"], params["b1"]),
                        params["g1"], params["be1"])
    h = gconv(h, residual, params["w2"], params["b2"])
    h = _gelu(_gelu(h))
    return residual + h


def make_params(key, C):
    k1, k2 = jax.random.split(key, 2)
    lim = (6.0 / (C + C)) ** 0.5  # xavier-uniform
    return {
        "w1": jax.random.uniform(k1, (C, C), jnp.float32, -lim, lim),
        "b1": jnp.zeros((1, C), jnp.float32),
        "g1": jnp.ones((1, C), jnp.float32),
        "be1": jnp.zeros((1, C), jnp.float32),
        "w2": jax.random.uniform(k2, (C, C), jnp.float32, -lim, lim),
        "b2": jnp.zeros((1, C), jnp.float32),
    }


def make_adjacency(N):
    # chain graph + self loops, symmetric normalization: D^-1/2 (A + I) D^-1/2
    a = jnp.eye(N, dtype=jnp.float32)
    idx = jnp.arange(N - 1)
    a = a.at[idx, idx + 1].set(1.0)
    a = a.at[idx + 1, idx].set(1.0)
    deg = jnp.sum(a, axis=-1)
    dinv = 1.0 / jnp.sqrt(deg)
    return a * dinv[:, None] * dinv[None, :]


if __name__ == "__main__":
    beta = 0.3
    N, C = 16, 32
    key = jax.random.PRNGKey(0)
    kx, kp, kx2 = jax.random.split(key, 3)

    adj = make_adjacency(N)
    params = make_params(kp, C)

    x = jax.random.normal(kx, (2, N, C), jnp.float32)
    ref = res_graph_conv_ref(x, adj, params, beta)

    # Strict-parity f32 MXU path (covers the reassociated / kron formulation).
    out_f32 = jax.block_until_ready(res_graph_conv(x, adj, params, beta, mxu_dtype=None))
    assert out_f32.shape == x.shape
    assert jnp.allclose(out_f32, ref, atol=1e-3, rtol=1e-3), "f32 path mismatch"

    # Default bf16-MXU path (f32 accumulation): looser tolerance.
    out_bf16 = jax.block_until_ready(res_graph_conv(x, adj, params, beta))
    assert jnp.allclose(out_bf16, ref, atol=6e-2, rtol=6e-2), "bf16 path mismatch"

    # Multi-step grid + batch padding path (B=10, forced small tile -> grid=2).
    x2 = jax.random.normal(kx2, (10, N, C), jnp.float32)
    ref2 = res_graph_conv_ref(x2, adj, params, beta)
    out2 = jax.block_until_ready(
        res_graph_conv(x2, adj, params, beta, block_b=4, mxu_dtype=None))
    assert out2.shape == x2.shape
    assert jnp.allclose(out2, ref2, atol=1e-3, rtol=1e-3), "multi-block path mismatch"

    print("KERNEL_OK")
</pallas_src>

<mosaic_0001>
module attributes {stable_mosaic.version = 11 : i64} {
  func.func @_res_graph_conv_kernel(%arg0: i32, %arg1: memref<2x512xf32, #tpu.memory_space<vmem>>, %arg2: memref<512x512xf32, #tpu.memory_space<vmem>>, %arg3: memref<1x512xf32, #tpu.memory_space<vmem>>, %arg4: memref<1x512xf32, #tpu.memory_space<vmem>>, %arg5: memref<1x512xf32, #tpu.memory_space<vmem>>, %arg6: memref<512x512xf32, #tpu.memory_space<vmem>>, %arg7: memref<1x512xf32, #tpu.memory_space<vmem>>, %arg8: memref<512x512xf32, #tpu.memory_space<vmem>>, %arg9: memref<512x16xf32, #tpu.memory_space<vmem>>, %arg10: memref<16x512xf32, #tpu.memory_space<vmem>>, %arg11: memref<2x512xf32, #tpu.memory_space<vmem>>) attributes {dimension_semantics = [#tpu.dimension_semantics<parallel>], iteration_bounds = array<i64: 1>, scalar_prefetch = 0 : i64, scratch_operands = 0 : i64, tpu.core_type = #tpu.core_type<tc>, window_params = [{transform_indices = @transform_0, window_bounds = array<i64: 2, 512>}, {pipeline_mode = #tpu.pipeline_mode<synchronous>, transform_indices = @transform_1, window_bounds = array<i64: 512, 512>}, {pipeline_mode = #tpu.pipeline_mode<synchronous>, transform_indices = @transform_2, window_bounds = array<i64: 1, 512>}, {pipeline_mode = #tpu.pipeline_mode<synchronous>, transform_indices = @transform_3, window_bounds = array<i64: 1, 512>}, {pipeline_mode = #tpu.pipeline_mode<synchronous>, transform_indices = @transform_4, window_bounds = array<i64: 1, 512>}, {pipeline_mode = #tpu.pipeline_mode<synchronous>, transform_indices = @transform_5, window_bounds = array<i64: 512, 512>}, {pipeline_mode = #tpu.pipeline_mode<synchronous>, transform_indices = @transform_6, window_bounds = array<i64: 1, 512>}, {pipeline_mode = #tpu.pipeline_mode<synchronous>, transform_indices = @transform_7, window_bounds = array<i64: 512, 512>}, {pipeline_mode = #tpu.pipeline_mode<synchronous>, transform_indices = @transform_8, window_bounds = array<i64: 512, 16>}, {pipeline_mode = #tpu.pipeline_mode<synchronous>, transform_indices = @transform_9, window_bounds = array<i64: 16, 512>}, {transform_indices = @transform_10, window_bounds = array<i64: 2, 512>}]} {
    %c0 = arith.constant 0 : index
    %c0_0 = arith.constant 0 : index
    %0 = vector.load %arg1[%c0, %c0_0] : memref<2x512xf32, #tpu.memory_space<vmem>>, vector<2x512xf32>
    %c0_1 = arith.constant 0 : index
    %c0_2 = arith.constant 0 : index
    %1 = vector.load %arg2[%c0_1, %c0_2] : memref<512x512xf32, #tpu.memory_space<vmem>>, vector<512x512xf32>
    %c0_3 = arith.constant 0 : index
    %c0_4 = arith.constant 0 : index
    %2 = vector.load %arg6[%c0_3, %c0_4] : memref<512x512xf32, #tpu.memory_space<vmem>>, vector<512x512xf32>
    %c0_5 = arith.constant 0 : index
    %c0_6 = arith.constant 0 : index
    %3 = vector.load %arg8[%c0_5, %c0_6] : memref<512x512xf32, #tpu.memory_space<vmem>>, vector<512x512xf32>
    %c0_7 = arith.constant 0 : index
    %c0_8 = arith.constant 0 : index
    %4 = vector.load %arg3[%c0_7, %c0_8] : memref<1x512xf32, #tpu.memory_space<vmem>>, vector<1x512xf32>
    %c0_9 = arith.constant 0 : index
    %c0_10 = arith.constant 0 : index
    %5 = vector.load %arg7[%c0_9, %c0_10] : memref<1x512xf32, #tpu.memory_space<vmem>>, vector<1x512xf32>
    %c0_11 = arith.constant 0 : index
    %c0_12 = arith.constant 0 : index
    %6 = vector.load %arg4[%c0_11, %c0_12] : memref<1x512xf32, #tpu.memory_space<vmem>>, vector<1x512xf32>
    %c0_13 = arith.constant 0 : index
    %c0_14 = arith.constant 0 : index
    %7 = vector.load %arg5[%c0_13, %c0_14] : memref<1x512xf32, #tpu.memory_space<vmem>>, vector<1x512xf32>
    %c0_15 = arith.constant 0 : index
    %c0_16 = arith.constant 0 : index
    %8 = vector.load %arg9[%c0_15, %c0_16] : memref<512x16xf32, #tpu.memory_space<vmem>>, vector<512x16xf32>
    %c0_17 = arith.constant 0 : index
    %c0_18 = arith.constant 0 : index
    %9 = vector.load %arg10[%c0_17, %c0_18] : memref<16x512xf32, #tpu.memory_space<vmem>>, vector<16x512xf32>
    %cst = arith.constant 3.000000e-01 : f32
    %10 = vector.broadcast %cst : f32 to vector<2x512xf32>
    %11 = arith.mulf %10, %0 : vector<2x512xf32>
    %cst_19 = arith.constant 0.699999988 : f32
    %12 = vector.broadcast %cst_19 : f32 to vector<2x512xf32>
    %13 = arith.mulf %12, %0 : vector<2x512xf32>
    %14 = arith.addf %13, %11 : vector<2x512xf32>
    %cst_20 = arith.constant dense<0.000000e+00> : vector<2x512xf32>
    %15 = tpu.matmul %14, %1, %cst_20 {dimension_numbers = #tpu.dot_dimension_numbers<[1], [0], [0], [1], [0, 0, 1, 1], [], []>} : vector<2x512xf32>, vector<512x512xf32>, vector<2x512xf32> -> vector<2x512xf32>
    %cst_21 = arith.constant dense<0.000000e+00> : vector<2x512xf32>
    %16 = tpu.matmul %15, %3, %cst_21 {dimension_numbers = #tpu.dot_dimension_numbers<[1], [0], [0], [1], [0, 0, 1, 1], [], []>} : vector<2x512xf32>, vector<512x512xf32>, vector<2x512xf32> -> vector<2x512xf32>
    %17 = vector.broadcast %4 : vector<1x512xf32> to vector<2x512xf32>
    %18 = arith.addf %16, %17 : vector<2x512xf32>
    %cst_22 = arith.constant dense<0.000000e+00> : vector<2x16xf32>
    %19 = tpu.matmul %18, %8, %cst_22 {dimension_numbers = #tpu.dot_dimension_numbers<[1], [0], [0], [1], [0, 0, 1, 1], [], []>} : vector<2x512xf32>, vector<512x16xf32>, vector<2x16xf32> -> vector<2x16xf32>
    %cst_23 = arith.constant dense<0.000000e+00> : vector<2x512xf32>
    %20 = tpu.matmul %19, %9, %cst_23 {dimension_numbers = #tpu.dot_dimension_numbers<[1], [0], [0], [1], [0, 0, 1, 1], [], []>} : vector<2x16xf32>, vector<16x512xf32>, vector<2x512xf32> -> vector<2x512xf32>
    %21 = arith.subf %18, %20 : vector<2x512xf32>
    %22 = arith.mulf %21, %21 : vector<2x512xf32>
    %cst_24 = arith.constant dense<0.000000e+00> : vector<2x16xf32>
    %23 = tpu.matmul %22, %8, %cst_24 {dimension_numbers = #tpu.dot_dimension_numbers<[1], [0], [0], [1], [0, 0, 1, 1], [], []>} : vector<2x512xf32>, vector<512x16xf32>, vector<2x16xf32> -> vector<2x16xf32>
    %cst_25 = arith.constant dense<0.000000e+00> : vector<2x512xf32>
    %24 = tpu.matmul %23, %9, %cst_25 {dimension_numbers = #tpu.dot_dimension_numbers<[1], [0], [0], [1], [0, 0, 1, 1], [], []>} : vector<2x16xf32>, vector<16x512xf32>, vector<2x512xf32> -> vector<2x512xf32>
    %cst_26 = arith.constant 1.000000e-10 : f32
    %25 = vector.broadcast %cst_26 : f32 to vector<2x512xf32>
    %26 = arith.addf %24, %25 : vector<2x512xf32>
    %27 = math.rsqrt %26 : vector<2x512xf32>
    %28 = arith.mulf %21, %27 : vector<2x512xf32>
    %29 = vector.broadcast %6 : vector<1x512xf32> to vector<2x512xf32>
    %30 = arith.mulf %28, %29 : vector<2x512xf32>
    %31 = vector.broadcast %7 : vector<1x512xf32> to vector<2x512xf32>
    %32 = arith.addf %30, %31 : vector<2x512xf32>
    %cst_27 = arith.constant 0.699999988 : f32
    %33 = vector.broadcast %cst_27 : f32 to vector<2x512xf32>
    %34 = arith.mulf %33, %32 : vector<2x512xf32>
    %35 = arith.addf %34, %11 : vector<2x512xf32>
    %cst_28 = arith.constant dense<0.000000e+00> : vector<2x512xf32>
    %36 = tpu.matmul %35, %1, %cst_28 {dimension_numbers = #tpu.dot_dimension_numbers<[1], [0], [0], [1], [0, 0, 1, 1], [], []>} : vector<2x512xf32>, vector<512x512xf32>, vector<2x512xf32> -> vector<2x512xf32>
    %cst_29 = arith.constant dense<0.000000e+00> : vector<2x512xf32>
    %37 = tpu.matmul %36, %3, %cst_29 {dimension_numbers = #tpu.dot_dimension_numbers<[1], [0], [0], [1], [0, 0, 1, 1], [], []>} : vector<2x512xf32>, vector<512x512xf32>, vector<2x512xf32> -> vector<2x512xf32>
    %38 = vector.broadcast %4 : vector<1x512xf32> to vector<2x512xf32>
    %39 = arith.addf %37, %38 : vector<2x512xf32>
    %cst_30 = arith.constant dense<0.000000e+00> : vector<2x16xf32>
    %40 = tpu.matmul %39, %8, %cst_30 {dimension_numbers = #tpu.dot_dimension_numbers<[1], [0], [0], [1], [0, 0, 1, 1], [], []>} : vector<2x512xf32>, vector<512x16xf32>, vector<2x16xf32> -> vector<2x16xf32>
    %cst_31 = arith.constant dense<0.000000e+00> : vector<2x512xf32>
    %41 = tpu.matmul %40, %9, %cst_31 {dimension_numbers = #tpu.dot_dimension_numbers<[1], [0], [0], [1], [0, 0, 1, 1], [], []>} : vector<2x16xf32>, vector<16x512xf32>, vector<2x512xf32> -> vector<2x512xf32>
    %42 = arith.subf %39, %41 : vector<2x512xf32>
    %43 = arith.mulf %42, %42 : vector<2x512xf32>
    %cst_32 = arith.constant dense<0.000000e+00> : vector<2x16xf32>
    %44 = tpu.matmul %43, %8, %cst_32 {dimension_numbers = #tpu.dot_dimension_numbers<[1], [0], [0], [1], [0, 0, 1, 1], [], []>} : vector<2x512xf32>, vector<512x16xf32>, vector<2x16xf32> -> vector<2x16xf32>
    %cst_33 = arith.constant dense<0.000000e+00> : vector<2x512xf32>
    %45 = tpu.matmul %44, %9, %cst_33 {dimension_numbers = #tpu.dot_dimension_numbers<[1], [0], [0], [1], [0, 0, 1, 1], [], []>} : vector<2x16xf32>, vector<16x512xf32>, vector<2x512xf32> -> vector<2x512xf32>
    %cst_34 = arith.constant 1.000000e-10 : f32
    %46 = vector.broadcast %cst_34 : f32 to vector<2x512xf32>
    %47 = arith.addf %45, %46 : vector<2x512xf32>
    %48 = math.rsqrt %47 : vector<2x512xf32>
    %49 = arith.mulf %42, %48 : vector<2x512xf32>
    %50 = vector.broadcast %6 : vector<1x512xf32> to vector<2x512xf32>
    %51 = arith.mulf %49, %50 : vector<2x512xf32>
    %52 = vector.broadcast %7 : vector<1x512xf32> to vector<2x512xf32>
    %53 = arith.addf %51, %52 : vector<2x512xf32>
    %cst_35 = arith.constant 0.699999988 : f32
    %54 = vector.broadcast %cst_35 : f32 to vector<2x512xf32>
    %55 = arith.mulf %54, %53 : vector<2x512xf32>
    %56 = arith.addf %55, %11 : vector<2x512xf32>
    %cst_36 = arith.constant dense<0.000000e+00> : vector<2x512xf32>
    %57 = tpu.matmul %56, %2, %cst_36 {dimension_numbers = #tpu.dot_dimension_numbers<[1], [0], [0], [1], [0, 0, 1, 1], [], []>} : vector<2x512xf32>, vector<512x512xf32>, vector<2x512xf32> -> vector<2x512xf32>
    %cst_37 = arith.constant dense<0.000000e+00> : vector<2x512xf32>
    %58 = tpu.matmul %57, %3, %cst_37 {dimension_numbers = #tpu.dot_dimension_numbers<[1], [0], [0], [1], [0, 0, 1, 1], [], []>} : vector<2x512xf32>, vector<512x512xf32>, vector<2x512xf32> -> vector<2x512xf32>
    %59 = vector.broadcast %5 : vector<1x512xf32> to vector<2x512xf32>
    %60 = arith.addf %58, %59 : vector<2x512xf32>
    %cst_38 = arith.constant 5.000000e-01 : f32
    %61 = vector.broadcast %cst_38 : f32 to vector<2x512xf32>
    %62 = arith.mulf %61, %60 : vector<2x512xf32>
    %cst_39 = arith.constant 0.707106769 : f32
    %63 = vector.broadcast %cst_39 : f32 to vector<2x512xf32>
    %64 = arith.mulf %60, %63 : vector<2x512xf32>
    %65 = math.erf %64 : vector<2x512xf32>
    %cst_40 = arith.constant 1.000000e+00 : f32
    %66 = vector.broadcast %cst_40 : f32 to vector<2x512xf32>
    %67 = arith.addf %66, %65 : vector<2x512xf32>
    %68 = arith.mulf %62, %67 : vector<2x512xf32>
    %cst_41 = arith.constant 5.000000e-01 : f32
    %69 = vector.broadcast %cst_41 : f32 to vector<2x512xf32>
    %70 = arith.mulf %69, %68 : vector<2x512xf32>
    %cst_42 = arith.constant 0.707106769 : f32
    %71 = vector.broadcast %cst_42 : f32 to vector<2x512xf32>
    %72 = arith.mulf %68, %71 : vector<2x512xf32>
    %73 = math.erf %72 : vector<2x512xf32>
    %cst_43 = arith.constant 1.000000e+00 : f32
    %74 = vector.broadcast %cst_43 : f32 to vector<2x512xf32>
    %75 = arith.addf %74, %73 : vector<2x512xf32>
    %76 = arith.mulf %70, %75 : vector<2x512xf32>
    %77 = arith.addf %0, %76 : vector<2x512xf32>
    %c0_44 = arith.constant 0 : index
    %c0_45 = arith.constant 0 : index
    %78 = vector.load %arg11[%c0_44, %c0_45] : memref<2x512xf32, #tpu.memory_space<vmem>>, vector<2x512xf32>
    tpu.vector_store %arg11[%c0_44, %c0_45], %77 {strides = array<i32>} : memref<2x512xf32, #tpu.memory_space<vmem>>, vector<2x512xf32>,
    return
  }
  func.func @transform_0(%arg0: i32) -> (i32, i32) {
    %c0_i32 = arith.constant 0 : i32
    %c0_i32_0 = arith.constant 0 : i32
    return %arg0, %c0_i32 : i32, i32
  }
  func.func @transform_1(%arg0: i32) -> (i32, i32) {
    %c0_i32 = arith.constant 0 : i32
    %c0_i32_0 = arith.constant 0 : i32
    %c0_i32_1 = arith.constant 0 : i32
    return %c0_i32, %c0_i32_0 : i32, i32
  }
  func.func @transform_2(%arg0: i32) -> (i32, i32) {
    %c0_i32 = arith.constant 0 : i32
    %c0_i32_0 = arith.constant 0 : i32
    %c0_i32_1 = arith.constant 0 : i32
    return %c0_i32, %c0_i32_0 : i32, i32
  }
  func.func @transform_3(%arg0: i32) -> (i32, i32) {
    %c0_i32 = arith.constant 0 : i32
    %c0_i32_0 = arith.constant 0 : i32
    %c0_i32_1 = arith.constant 0 : i32
    return %c0_i32, %c0_i32_0 : i32, i32
  }
  func.func @transform_4(%arg0: i32) -> (i32, i32) {
    %c0_i32 = arith.constant 0 : i32
    %c0_i32_0 = arith.constant 0 : i32
    %c0_i32_1 = arith.constant 0 : i32
    return %c0_i32, %c0_i32_0 : i32, i32
  }
  func.func @transform_5(%arg0: i32) -> (i32, i32) {
    %c0_i32 = arith.constant 0 : i32
    %c0_i32_0 = arith.constant 0 : i32
    %c0_i32_1 = arith.constant 0 : i32
    return %c0_i32, %c0_i32_0 : i32, i32
  }
  func.func @transform_6(%arg0: i32) -> (i32, i32) {
    %c0_i32 = arith.constant 0 : i32
    %c0_i32_0 = arith.constant 0 : i32
    %c0_i32_1 = arith.constant 0 : i32
    return %c0_i32, %c0_i32_0 : i32, i32
  }
  func.func @transform_7(%arg0: i32) -> (i32, i32) {
    %c0_i32 = arith.constant 0 : i32
    %c0_i32_0 = arith.constant 0 : i32
    %c0_i32_1 = arith.constant 0 : i32
    return %c0_i32, %c0_i32_0 : i32, i32
  }
  func.func @transform_8(%arg0: i32) -> (i32, i32) {
    %c0_i32 = arith.constant 0 : i32
    %c0_i32_0 = arith.constant 0 : i32
    %c0_i32_1 = arith.constant 0 : i32
    return %c0_i32, %c0_i32_0 : i32, i32
  }
  func.func @transform_9(%arg0: i32) -> (i32, i32) {
    %c0_i32 = arith.constant 0 : i32
    %c0_i32_0 = arith.constant 0 : i32
    %c0_i32_1 = arith.constant 0 : i32
    return %c0_i32, %c0_i32_0 : i32, i32
  }
  func.func @transform_10(%arg0: i32) -> (i32, i32) {
    %c0_i32 = arith.constant 0 : i32
    %c0_i32_0 = arith.constant 0 : i32
    return %arg0, %c0_i32 : i32, i32
  }
}

</mosaic_0001>

<bundles_post_ra>
// kernel: tpu_custom_call.1
= control target key start
LH: loop header
LB: loop body
LE: loop exit
PB: predicated region body
PF: predicated region fallthrough
CT: control target
= control target key end

     0   :  { %15 = vsyncpa [#allocation3], 0  ;;  %s8286_s0 = inlined_call_operand.vmem [shape: f32[2,512], index: 0, kind: input, shape index: {}]   ;;  %s8287_s1 = inlined_call_operand.hbm [shape: f32[512,512], index: 1, kind: input, shape index: {}]   ;;  %s8288_s2 = inlined_call_operand.vmem [shape: f32[1,512], index: 2, kind: input, shape index: {}]   ;;  %s8289_s3 = inlined_call_operand.vmem [shape: f32[1,512], index: 3, kind: input, shape index: {}]   ;;  %s8290_s4 = inlined_call_operand.vmem [shape: f32[1,512], index: 4, kind: input, shape index: {}]   ;;  %s8291_s5 = inlined_call_operand.hbm [shape: f32[512,512], index: 5, kind: input, shape index: {}]   ;;  %s8292_s6 = inlined_call_operand.vmem [shape: f32[1,512], index: 6, kind: input, shape index: {}]   ;;  %s8293_s7 = inlined_call_operand.hbm [shape: f32[512,512], index: 7, kind: input, shape index: {}]   ;;  %s8294_s8 = inlined_call_operand.vmem [shape: f32[512,16], index: 8, kind: input, shape index: {}]   ;;  %s8295_s9 = inlined_call_operand.vmem [shape: f32[16,512], index: 9, kind: input, shape index: {}]   ;;  %s8296_s10 = inlined_call_operand.hbm [shape: f32[2,512], index: 10, kind: output, shape index: {}]  }
   0x1   :  { %16 = vsyncpa [#allocation6], 0 }
   0x2   :  { %17 = vsyncpa [#allocation4], 0  ;;  %s6325_s13 = smov [#allocation5]   ;;  %s6326_s15 = smov [#allocation2]  }
   0x3   :  { %s43_s14 = sshll.u32 %s6325_s13, 4  ;;  %s25_s16 = sshll.u32 %s6326_s15, 4  ;;  %s44_s14 = int_to_ptr.vmem [resolvable:$true] %s43_s14  ;;  %s6388_s16 = int_to_ptr.vmem [resolvable:$true] %s25_s16 }
   0x4   :  { %s6231_s19 = scalar_lea.hbm %s8291_s5, 32768 }
   0x5   :  { %p6232_p0 = scmp.ne.s32.totalorder %s8291_s5, %s6231_s19  ;;  %p6235_p1 = scmp.lt.u32.totalorder %s6231_s19, %s8291_s5 }
   0x7   :  { %p6237_p2 = pnand %p6235_p1, %p6232_p0 }
   0x9   :  { %6240 = shalt.err (!%p6237_p2)
}
   0xa   :  { %s6241_s24 = scalar_lea.vmem %s44_s14, 32768  ;;  %p6246_p4 = scmp.lt.s32.totalorder %s44_s14, %s44_s14 }
   0xb   :  { %p6242_p3 = scmp.ne.s32.totalorder %s44_s14, %s6241_s24  ;;  %p6247_p5 = scmp.lt.s32.totalorder %s6241_s24, %s6241_s24 }
   0xd   :  { %p6248_p6 = por %p6247_p5, %p6246_p4 }
   0xf   :  { %p6249_p7 = pnand %p6248_p6, %p6242_p3 }
  0x11   :  { %6252 = shalt.err (!%p6249_p7)
}
  0x12   :  { %s6327_s25 = smov 512   ;;  %s6328_s26 = smov 32  }
  0x13   :  { %49 = dma.hbm_to_vmem [thread:$0]  %s8291_s5, 32768, %s44_s14, [#allocation6], %s6327_s25, %s6327_s25, %s6328_s26  }
  0x14   :  { %s6253_s11 = scalar_lea.hbm %s8287_s1, 32768 }
  0x15   :  { %p6254_p8 = scmp.ne.s32.totalorder %s8287_s1, %s6253_s11  ;;  %p6257_p9 = scmp.lt.u32.totalorder %s6253_s11, %s8287_s1 }
  0x17   :  { %p6259_p10 = pnand %p6257_p9, %p6254_p8 }
  0x19   :  { %6262 = shalt.err (!%p6259_p10)
}
  0x1a   :  { %s6263_s18 = scalar_lea.vmem %s6388_s16, 32768  ;;  %p6268_p12 = scmp.lt.s32.totalorder %s6388_s16, %s6388_s16 }
  0x1b   :  { %p6264_p11 = scmp.ne.s32.totalorder %s6388_s16, %s6263_s18  ;;  %p6269_p13 = scmp.lt.s32.totalorder %s6263_s18, %s6263_s18 }
  0x1d   :  { %p6270_p0 = por %p6269_p13, %p6268_p12 }
  0x1f   :  { %p6271_p1 = pnand %p6270_p0, %p6264_p11 }
  0x21   :  { %6274 = shalt.err (!%p6271_p1)
}
  0x22   :  { %31 = dma.hbm_to_vmem [thread:$0]  %s8287_s1, 32768, %s6388_s16, [#allocation3], %s6327_s25, %s6327_s25, %s6328_s26  }
  0x23   :  { %s6329_s19 = smov [#allocation7]   ;;  %s6275_s23 = scalar_lea.hbm %s8293_s7, 32768 }
  0x24   :  { %s57_s20 = sshll.u32 %s6329_s19, 4  ;;  %p6276_p2 = scmp.ne.s32.totalorder %s8293_s7, %s6275_s23  ;;  %s58_s20 = int_to_ptr.vmem [resolvable:$true] %s57_s20 }
  0x25   :  { %p6279_p3 = scmp.lt.u32.totalorder %s6275_s23, %s8293_s7 }
  0x27   :  { %p6281_p4 = pnand %p6279_p3, %p6276_p2 }
  0x29   :  { %6284 = shalt.err (!%p6281_p4)
}
  0x2a   :  { %s6285_s30 = scalar_lea.vmem %s58_s20, 32768  ;;  %p6290_p6 = scmp.lt.s32.totalorder %s58_s20, %s58_s20 }
  0x2b   :  { %p6286_p5 = scmp.ne.s32.totalorder %s58_s20, %s6285_s30  ;;  %p6291_p7 = scmp.lt.s32.totalorder %s6285_s30, %s6285_s30 }
  0x2d   :  { %p6292_p8 = por %p6291_p7, %p6290_p6 }
  0x2f   :  { %p6293_p9 = pnand %p6292_p8, %p6286_p5 }
  0x31   :  { %6296 = shalt.err (!%p6293_p9)
}
  0x32   :  { %63 = dma.hbm_to_vmem [thread:$0]  %s8293_s7, 32768, %s58_s20, [#allocation6], %s6327_s25, %s6327_s25, %s6328_s26  }
  0x33   :  { %6319 = dma.done.wait [#allocation3], 32768  }
  0x34   :  { %6320 = vsyncadd [#allocation3], 4294934528 }
  0x35   :  { %6321 = dma.done.wait [#allocation6], 65536  }
  0x36   :  { %6322 = vsyncadd [#allocation6], 4294901760  ;;  %v79_v0 = vld [vmem:[#allocation2 + $0x8] sm:$0xff]  ;;  %v81_v2 = vld [vmem:[#allocation2 + $0x18] sm:$0xff]  ;;  %vm1676_vm0 = vcmask 130048  }
  0x37   :  { %v83_v1 = vld [vmem:[#allocation2 + $0x28] sm:$0xff]  ;;  %v85_v4 = vld [vmem:[#allocation2 + $0x38] sm:$0xff]  ;;  %v78_v5 = vld [vmem:[#allocation2] sm:$0xff] }
  0x38   :  { %v6440_v3 = vpack.c.bf16 %v83_v1, %v79_v0  ;;  %v82_v6 = vld [vmem:[#allocation2 + $0x20] sm:$0xff]  ;;  %v6442_v7 = vpack.c.bf16 %v85_v4, %v81_v2  ;;  %v80_v9 = vld [vmem:[#allocation2 + $0x10] sm:$0xff]  ;;  %v87_v11 = vld [vmem:[#allocation2 + $0x48] sm:$0xff] }
  0x39   :  { %v6444_v8 = vpack.c.bf16 %v82_v6, %v78_v5  ;;  %v84_v10 = vld [vmem:[#allocation2 + $0x30] sm:$0xff]  ;;  %v91_v13 = vld [vmem:[#allocation2 + $0x68] sm:$0xff]  ;;  %v89_v14 = vld [vmem:[#allocation2 + $0x58] sm:$0xff] }
  0x3a   :  { %4331 = vmatprep.subr.bf16.mxu0 %v6440_v3  ;;  %v6447_v12 = vpack.c.bf16 %v84_v10, %v80_v9  ;;  %v93_v15 = vld [vmem:[#allocation2 + $0x78] sm:$0xff]  ;;  %4459 = vmatprep.subr.bf16.mxu1 %v6442_v7  ;;  %v6451_v16 = vpack.c.bf16 %v91_v13, %v87_v11  ;;  %v86_v18 = vld [vmem:[#allocation2 + $0x40] sm:$0xff]  ;;  %v88_v20 = vld [vmem:[#allocation2 + $0x50] sm:$0xff] }
  0x3b   :  { %4333 = vmatpush1.bf16.msra.mxu0 %v6444_v8  ;;  %v6453_v17 = vpack.c.bf16 %v93_v15, %v89_v14  ;;  %v90_v19 = vld [vmem:[#allocation2 + $0x60] sm:$0xff]  ;;  %v92_v22 = vld [vmem:[#allocation2 + $0x70] sm:$0xff]  ;;  %v95_v23 = vld [vmem:[#allocation2 + $0x88] sm:$0xff] }
  0x3c   :  { %4461 = vmatpush1.bf16.msra.mxu1 %v6447_v12  ;;  %v6456_v21 = vpack.c.bf16 %v90_v19, %v86_v18  ;;  %v99_v24 = vld [vmem:[#allocation2 + $0xa8] sm:$0xff]  ;;  %4335 = vmatprep.subr.bf16.mxu0 %v6451_v16  ;;  %v6460_v25 = vpack.c.bf16 %v92_v22, %v88_v20  ;;  %v97_v27 = vld [vmem:[#allocation2 + $0x98] sm:$0xff]  ;;  %v94_v29 = vld [vmem:[#allocation2 + $0x80] sm:$0xff] }
  0x3d   :  { %4463 = vmatprep.subr.bf16.mxu1 %v6453_v17  ;;  %v6462_v26 = vpack.c.bf16 %v99_v24, %v95_v23  ;;  %v101_v28 = vld [vmem:[#allocation2 + $0xb8] sm:$0xff]  ;;  %v98_v31 = vld [vmem:[#allocation2 + $0xa0] sm:$0xff]  ;;  %v96_v32 = vld [vmem:[#allocation2 + $0x90] sm:$0xff] }
  0x3e   :  { %v6464_v30 = vpack.c.bf16 %v101_v28, %v97_v27  ;;  %v100_v33 = vld [vmem:[#allocation2 + $0xb0] sm:$0xff]  ;;  %v6467_v34 = vpack.c.bf16 %v98_v31, %v94_v29  ;;  %v103_v35 = vld [vmem:[#allocation2 + $0xc8] sm:$0xff]  ;;  %v105_v37 = vld [vmem:[#allocation2 + $0xd8] sm:$0xff] }
  0x3f   :  { %4337 = vmatpush1.bf16.msra.mxu0 %v6456_v21  ;;  %v107_v36 = vld [vmem:[#allocation2 + $0xe8] sm:$0xff]  ;;  %v6471_v38 = vpack.c.bf16 %v100_v33, %v96_v32  ;;  %v109_v40 = vld [vmem:[#allocation2 + $0xf8] sm:$0xff]  ;;  %v102_v41 = vld [vmem:[#allocation2 + $0xc0] sm:$0xff] }
  0x40   :  { %4465 = vmatpush1.bf16.msra.mxu1 %v6460_v25  ;;  %4339 = vmatprep.subr.bf16.mxu0 %v6462_v26  ;;  %v6473_v39 = vpack.c.bf16 %v107_v36, %v103_v35  ;;  %v106_v42 = vld [vmem:[#allocation2 + $0xe0] sm:$0xff]  ;;  %v6476_v43 = vpack.c.bf16 %v109_v40, %v105_v37  ;;  %v104_v44 = vld [vmem:[#allocation2 + $0xd0] sm:$0xff]  ;;  %v111_v46 = vld [vmem:[#allocation2 + $0x108] sm:$0xff] }
  0x41   :  { %4467 = vmatprep.subr.bf16.mxu1 %v6464_v30  ;;  %v108_v45 = vld [vmem:[#allocation2 + $0xf0] sm:$0xff]  ;;  %v115_v47 = vld [vmem:[#allocation2 + $0x128] sm:$0xff]  ;;  %v113_v48 = vld [vmem:[#allocation2 + $0x118] sm:$0xff]  ;;  %v6479_v50 = vpack.c.bf16 %v106_v42, %v102_v41 }
  0x42   :  { %v117_v49 = vld [vmem:[#allocation2 + $0x138] sm:$0xff]  ;;  %v6483_v51 = vpack.c.bf16 %v108_v45, %v104_v44  ;;  %v6485_v52 = vpack.c.bf16 %v115_v47, %v111_v46  ;;  %v110_v53 = vld [vmem:[#allocation2 + $0x100] sm:$0xff]  ;;  %v112_v55 = vld [vmem:[#allocation2 + $0x110] sm:$0xff] }
  0x43   :  { %4341 = vmatpush1.bf16.msra.mxu0 %v6467_v34  ;;  %v114_v54 = vld [vmem:[#allocation2 + $0x120] sm:$0xff]  ;;  %v6488_v56 = vpack.c.bf16 %v117_v49, %v113_v48  ;;  %v116_v57 = vld [vmem:[#allocation2 + $0x130] sm:$0xff]  ;;  %v119_v58 = vld [vmem:[#allocation2 + $0x148] sm:$0xff] }
  0x44   :  { %4469 = vmatpush1.bf16.msra.mxu1 %v6471_v38  ;;  %4343 = vmatprep.subr.bf16.mxu0 %v6473_v39  ;;  %8692 = vst [vmem:[#allocation12_spill] sm:$0xff] %v6485_v52  ;;  %v123_v59 = vld [vmem:[#allocation2 + $0x168] sm:$0xff]  ;;  %v121_v60 = vld [vmem:[#allocation2 + $0x158] sm:$0xff]  ;;  %v6491_v62 = vpack.c.bf16 %v114_v54, %v110_v53  ;;  %v6495_v63 = vpack.c.bf16 %v116_v57, %v112_v55  ;;  %v118_v1 = vld [vmem:[#allocation2 + $0x140] sm:$0xff] }
  0x45   :  { %4471 = vmatprep.subr.bf16.mxu1 %v6476_v43  ;;  %8693 = vst [vmem:[#allocation13_spill] sm:$0xff] %v6488_v56  ;;  %v125_v61 = vld [vmem:[#allocation2 + $0x178] sm:$0xff]  ;;  %v6497_v0 = vpack.c.bf16 %v123_v59, %v119_v58  ;;  %v122_v2 = vld [vmem:[#allocation2 + $0x160] sm:$0xff]  ;;  %v120_v4 = vld [vmem:[#allocation2 + $0x150] sm:$0xff] }
  0x46   :  { %8694 = vst [vmem:[#allocation14_spill] sm:$0xff] %v6491_v62  ;;  %8695 = vst [vmem:[#allocation15_spill] sm:$0xff] %v6495_v63  ;;  %v6500_v5 = vpack.c.bf16 %v125_v61, %v121_v60  ;;  %v124_v6 = vld [vmem:[#allocation2 + $0x170] sm:$0xff]  ;;  %v127_v9 = vld [vmem:[#allocation2 + $0x188] sm:$0xff]  ;;  %v6503_v14 = vpack.c.bf16 %v122_v2, %v118_v1 }
  0x47   :  { %4345 = vmatpush1.bf16.msra.mxu0 %v6479_v50  ;;  %8696 = vst [vmem:[#allocation16_spill] sm:$0xff] %v6497_v0  ;;  %v131_v10 = vld [vmem:[#allocation2 + $0x1a8] sm:$0xff]  ;;  %v129_v11 = vld [vmem:[#allocation2 + $0x198] sm:$0xff]  ;;  %v6507_v15 = vpack.c.bf16 %v124_v6, %v120_v4  ;;  %v126_v19 = vld [vmem:[#allocation2 + $0x180] sm:$0xff] }
  0x48   :  { %4473 = vmatpush1.bf16.msra.mxu1 %v6483_v51  ;;  %4347 = vmatprep.subr.bf16.mxu0 %v6485_v52  ;;  %8697 = vst [vmem:[#allocation17_spill] sm:$0xff] %v6500_v5  ;;  %v133_v13 = vld [vmem:[#allocation2 + $0x1b8] sm:$0xff]  ;;  %8698 = vst [vmem:[#allocation18_spill] sm:$0xff] %v6503_v14  ;;  %v6509_v18 = vpack.c.bf16 %v131_v10, %v127_v9  ;;  %v130_v20 = vld [vmem:[#allocation2 + $0x1a0] sm:$0xff] }
  0x49   :  { %4475 = vmatprep.subr.bf16.mxu1 %v6488_v56  ;;  %8699 = vst [vmem:[#allocation19_spill] sm:$0xff] %v6507_v15  ;;  %v128_v22 = vld [vmem:[#allocation2 + $0x190] sm:$0xff]  ;;  %v6512_v23 = vpack.c.bf16 %v133_v13, %v129_v11  ;;  %v135_v27 = vld [vmem:[#allocation2 + $0x1c8] sm:$0xff]  ;;  %v137_v29 = vld [vmem:[#allocation2 + $0x1d8] sm:$0xff]  ;;  %v6515_v32 = vpack.c.bf16 %v130_v20, %v126_v19 }
  0x4a   :  { %8700 = vst [vmem:[#allocation20_spill] sm:$0xff] %v6509_v18  ;;  %v132_v24 = vld [vmem:[#allocation2 + $0x1b0] sm:$0xff]  ;;  %v139_v28 = vld [vmem:[#allocation2 + $0x1e8] sm:$0xff]  ;;  %v141_v31 = vld [vmem:[#allocation2 + $0x1f8] sm:$0xff] }
  0x4b   :  { %4349 = vmatpush1.bf16.msra.mxu0 %v6491_v62  ;;  %8701 = vst [vmem:[#allocation21_spill] sm:$0xff] %v6512_v23  ;;  %8702 = vst [vmem:[#allocation22_spill] sm:$0xff] %v6515_v32  ;;  %v6519_v33 = vpack.c.bf16 %v132_v24, %v128_v22  ;;  %v6521_v35 = vpack.c.bf16 %v139_v28, %v135_v27  ;;  %v134_v36 = vld [vmem:[#allocation2 + $0x1c0] sm:$0xff]  ;;  %v136_v40 = vld [vmem:[#allocation2 + $0x1d0] sm:$0xff]  ;;  %v6524_v41 = vpack.c.bf16 %v141_v31, %v137_v29  ;;  %v6330_v29 = vmov 1983009808  }
  0x4c   :  { %4477 = vmatpush1.bf16.msra.mxu1 %v6495_v63  ;;  %4351 = vmatprep.subr.bf16.mxu0 %v6497_v0  ;;  %v138_v37 = vld [vmem:[#allocation2 + $0x1e0] sm:$0xff]  ;;  %v140_v42 = vld [vmem:[#allocation2 + $0x1f0] sm:$0xff]  ;;  %v143_v44 = vld [vmem:[#allocation2 + $0x208] sm:$0xff]  ;;  %v928_v31 = vunpack.c.l.s4 %v6330_v29 }
  0x4d   :  { %4479 = vmatprep.subr.bf16.mxu1 %v6500_v5  ;;  %8703 = vst [vmem:[#allocation23_spill] sm:$0xff] %v6519_v33  ;;  %8704 = vst [vmem:[#allocation24_spill] sm:$0xff] %v6521_v35  ;;  %v147_v45 = vld [vmem:[#allocation2 + $0x228] sm:$0xff]  ;;  %v145_v46 = vld [vmem:[#allocation2 + $0x218] sm:$0xff]  ;;  %v6527_v48 = vpack.c.bf16 %v138_v37, %v134_v36  ;;  %v6531_v49 = vpack.c.bf16 %v140_v42, %v136_v40  ;;  %v930_v36 = vlaneseq }
  0x4e   :  { %8705 = vst [vmem:[#allocation25_spill] sm:$0xff] %v6524_v41  ;;  %v149_v47 = vld [vmem:[#allocation2 + $0x238] sm:$0xff]  ;;  %v6533_v53 = vpack.c.bf16 %v147_v45, %v143_v44  ;;  %v142_v54 = vld [vmem:[#allocation2 + $0x200] sm:$0xff]  ;;  %v144_v57 = vld [vmem:[#allocation2 + $0x210] sm:$0xff] }
  0x4f   :  { %4353 = vmatpush1.bf16.msra.mxu0 %v6503_v14  ;;  %8706 = vst [vmem:[#allocation26_spill] sm:$0xff] %v6527_v48  ;;  %8707 = vst [vmem:[#allocation27_spill] sm:$0xff] %v6531_v49  ;;  %v146_v55 = vld [vmem:[#allocation2 + $0x220] sm:$0xff]  ;;  %v6536_v58 = vpack.c.bf16 %v149_v47, %v145_v46  ;;  %v148_v59 = vld [vmem:[#allocation2 + $0x230] sm:$0xff] }
  0x50   :  { %4481 = vmatpush1.bf16.msra.mxu1 %v6507_v15  ;;  %4355 = vmatprep.subr.bf16.mxu0 %v6509_v18  ;;  %8708 = vst [vmem:[#allocation28_spill] sm:$0xff] %v6533_v53  ;;  %v151_v60 = vld [vmem:[#allocation2 + $0x248] sm:$0xff]  ;;  %v153_v1 = vld [vmem:[#allocation2 + $0x258] sm:$0xff]  ;;  %v6539_v4 = vpack.c.bf16 %v146_v55, %v142_v54  ;;  %v6543_v6 = vpack.c.bf16 %v148_v59, %v144_v57  ;;  %v150_v10 = vld [vmem:[#allocation2 + $0x240] sm:$0xff] }
  0x51   :  { %4483 = vmatprep.subr.bf16.mxu1 %v6512_v23  ;;  %8709 = vst [vmem:[#allocation29_spill] sm:$0xff] %v6536_v58  ;;  %v155_v61 = vld [vmem:[#allocation2 + $0x268] sm:$0xff]  ;;  %v157_v2 = vld [vmem:[#allocation2 + $0x278] sm:$0xff]  ;;  %v154_v11 = vld [vmem:[#allocation2 + $0x260] sm:$0xff] }
  0x52   :  { %8710 = vst [vmem:[#allocation30_spill] sm:$0xff] %v6539_v4  ;;  %8711 = vst [vmem:[#allocation31_spill] sm:$0xff] %v6543_v6  ;;  %v6545_v9 = vpack.c.bf16 %v155_v61, %v151_v60  ;;  %v152_v13 = vld [vmem:[#allocation2 + $0x250] sm:$0xff]  ;;  %v6548_v19 = vpack.c.bf16 %v157_v2, %v153_v1  ;;  %v159_v22 = vld [vmem:[#allocation2 + $0x288] sm:$0xff]  ;;  %v6551_v37 = vpack.c.bf16 %v154_v11, %v150_v10  ;;  %v929_v61 = vunpack.c.0.s8 %v928_v31 }
  0x53   :  { %4357 = vmatpush1.bf16.msra.mxu0 %v6515_v32  ;;  %v156_v20 = vld [vmem:[#allocation2 + $0x270] sm:$0xff]  ;;  %v163_v24 = vld [vmem:[#allocation2 + $0x2a8] sm:$0xff]  ;;  %v161_v27 = vld [vmem:[#allocation2 + $0x298] sm:$0xff]  ;;  %v6562_v1 = vshrl.u32 %v930_v36, 7 }
  0x54   :  { %4485 = vmatpush1.bf16.msra.mxu1 %v6519_v33  ;;  %4359 = vmatprep.subr.bf16.mxu0 %v6521_v35  ;;  %8712 = vst [vmem:[#allocation32_spill] sm:$0xff] %v6545_v9  ;;  %8713 = vst [vmem:[#allocation33_spill] sm:$0xff] %v6548_v19  ;;  %v165_v28 = vld [vmem:[#allocation2 + $0x2b8] sm:$0xff]  ;;  %v6555_v40 = vpack.c.bf16 %v156_v20, %v152_v13  ;;  %v6557_v42 = vpack.c.bf16 %v163_v24, %v159_v22  ;;  %v158_v44 = vld [vmem:[#allocation2 + $0x280] sm:$0xff] }
  0x55   :  { %4487 = vmatprep.subr.bf16.mxu1 %v6524_v41  ;;  %8714 = vst [vmem:[#allocation34_spill] sm:$0xff] %v6551_v37  ;;  %v162_v45 = vld [vmem:[#allocation2 + $0x2a0] sm:$0xff]  ;;  %v160_v46 = vld [vmem:[#allocation2 + $0x290] sm:$0xff]  ;;  %v6560_v47 = vpack.c.bf16 %v165_v28, %v161_v27  ;;  %v167_v55 = vld [vmem:[#allocation2 + $0x2c8] sm:$0xff] }
  0x56   :  { %8715 = vst [vmem:[#allocation35_spill] sm:$0xff] %v6555_v40  ;;  %8716 = vst [vmem:[#allocation36_spill] sm:$0xff] %v6557_v42  ;;  %v164_v54 = vld [vmem:[#allocation2 + $0x2b0] sm:$0xff]  ;;  %v171_v57 = vld [vmem:[#allocation2 + $0x2e8] sm:$0xff]  ;;  %v6565_v2 = vpack.c.bf16 %v162_v45, %v158_v44 }
  0x57   :  { %4361 = vmatpush1.bf16.msra.mxu0 %v6527_v48  ;;  %8717 = vst [vmem:[#allocation37_spill] sm:$0xff] %v6560_v47  ;;  %v169_v59 = vld [vmem:[#allocation2 + $0x2d8] sm:$0xff]  ;;  %v166_v10 = vld [vmem:[#allocation2 + $0x2c0] sm:$0xff]  ;;  %v6569_v11 = vpack.c.bf16 %v164_v54, %v160_v46  ;;  %v6571_v13 = vpack.c.bf16 %v171_v57, %v167_v55  ;;  %v168_v22 = vld [vmem:[#allocation2 + $0x2d0] sm:$0xff]  ;;  %v6582_v54 = vsub.s32 %v929_v61, %v6562_v1 }
  0x58   :  { %4489 = vmatpush1.bf16.msra.mxu1 %v6531_v49  ;;  %4363 = vmatprep.subr.bf16.mxu0 %v6533_v53  ;;  %v173_v60 = vld [vmem:[#allocation2 + $0x2f8] sm:$0xff]  ;;  %8718 = vst [vmem:[#allocation38_spill] sm:$0xff] %v6565_v2  ;;  %v170_v20 = vld [vmem:[#allocation2 + $0x2e0] sm:$0xff]  ;;  %v172_v24 = vld [vmem:[#allocation2 + $0x2f0] sm:$0xff] }
  0x59   :  { %4491 = vmatprep.subr.bf16.mxu1 %v6536_v58  ;;  %8719 = vst [vmem:[#allocation39_spill] sm:$0xff] %v6569_v11  ;;  %8720 = vst [vmem:[#allocation40_spill] sm:$0xff] %v6571_v13  ;;  %v6574_v27 = vpack.c.bf16 %v173_v60, %v169_v59  ;;  %v175_v28 = vld [vmem:[#allocation2 + $0x308] sm:$0xff]  ;;  %v77_v31 = vld [vmem:[%s8286_s0] sm:$0xff]  ;;  %v6585_v55 = vpack.c.bf16 %v170_v20, %v166_v10  ;;  %v6589_v57 = vpack.c.bf16 %v172_v24, %v168_v22 }
  0x5a   :  { %v179_v29 = vld [vmem:[#allocation2 + $0x328] sm:$0xff]  ;;  %v177_v36 = vld [vmem:[#allocation2 + $0x318] sm:$0xff]  ;;  %v6579_v45 = vmul.f32 0.3, %v77_v31  ;;  %v923_v46 = vmul.f32 0.7, %v77_v31 }
  0x5b   :  { %4365 = vmatpush1.bf16.msra.mxu0 %v6539_v4  ;;  %8721 = vst [vmem:[#allocation41_spill] sm:$0xff] %v6574_v27  ;;  %v181_v44 = vld [vmem:[#allocation2 + $0x338] sm:$0xff]  ;;  %8723 = vst [vmem:[#allocation43_spill] sm:$0xff] %v6582_v54  ;;  %v6591_v59 = vpack.c.bf16 %v179_v29, %v175_v28  ;;  %v174_v60 = vld [vmem:[#allocation2 + $0x300] sm:$0xff] }
  0x5c   :  { %4493 = vmatpush1.bf16.msra.mxu1 %v6543_v6  ;;  %4367 = vmatprep.subr.bf16.mxu0 %v6545_v9  ;;  %8722 = vst [vmem:[#allocation42_spill] sm:$0xff] %v6579_v45  ;;  %8724 = vst [vmem:[#allocation44_spill] sm:$0xff] %v6585_v55  ;;  %v6594_v31 = vadd.f32 %v923_v46, %v6579_v45  ;;  %v6597_v61 = vpack.c.bf16 %v181_v44, %v177_v36  ;;  %v180_v10 = vld [vmem:[#allocation2 + $0x330] sm:$0xff]  ;;  %v183_v20 = vld [vmem:[#allocation2 + $0x348] sm:$0xff] }
  0x5d   :  { %4495 = vmatprep.subr.bf16.mxu1 %v6548_v19  ;;  %8725 = vst [vmem:[#allocation45_spill] sm:$0xff] %v6589_v57  ;;  %8726 = vst [vmem:[#allocation46_spill] sm:$0xff] %v6591_v59  ;;  %v182_v36 = vld [vmem:[#allocation2 + $0x340] sm:$0xff]  ;;  %v184_v46 = vld [vmem:[#allocation2 + $0x350] sm:$0xff] }
  0x5e   :  { %8727 = vst [vmem:[#allocation47_spill] sm:$0xff] %v6597_v61  ;;  %v6601_v22 = vrot.slane %v6594_v31, %v6582_v54  ;;  %v186_v44 = vld [vmem:[#allocation2 + $0x360] sm:$0xff]  ;;  %v859_v19 = vld [vmem:[%s8294_s8 + $0x48] sm:$0xff]  ;;  %v860_v4 = vld [vmem:[%s8294_s8 + $0x50] sm:$0xff] }
  0x5f   :  { %4369 = vmatpush1.bf16.msra.mxu0 %v6551_v37  ;;  %v858_v37 = vld [vmem:[%s8294_s8 + $0x40] sm:$0xff]  ;;  %v861_v58 = vld [vmem:[%s8294_s8 + $0x58] sm:$0xff]  ;;  %v863_v33 = vld [vmem:[%s8294_s8 + $0x68] sm:$0xff] }
  0x60   :  { %4497 = vmatpush1.bf16.msra.mxu1 %v6555_v40  ;;  %4371 = vmatprep.subr.bf16.mxu0 %v6557_v42  ;;  %v176_v42 = vld [vmem:[#allocation2 + $0x310] sm:$0xff]  ;;  %v189_v40 = vld [vmem:[#allocation2 + $0x378] sm:$0xff]  ;;  %v941_v45 = vcombine.high %v6601_v22, %v6601_v22  ;;  %v862_v48 = vld [vmem:[%s8294_s8 + $0x60] sm:$0xff] }
  0x61   :  { %4499 = vmatprep.subr.bf16.mxu1 %v6560_v47  ;;  %v178_v47 = vld [vmem:[#allocation2 + $0x320] sm:$0xff]  ;;  %v6608_v28 = vpack.c.bf16 %v180_v10, %v176_v42  ;;  %v6618_v42 = vpack.c.bf16 %v186_v44, %v182_v36  ;;  %v201_v36 = vld [vmem:[#allocation2 + $0x3d8] sm:$0xff] }
  0x62   :  { %v6604_v24 = vpack.c.bf16 %v178_v47, %v174_v60  ;;  %v188_v47 = vld [vmem:[#allocation2 + $0x370] sm:$0xff]  ;;  %v191_v60 = vld [vmem:[#allocation2 + $0x388] sm:$0xff]  ;;  %1011 = vmatprep.mubr.f32.mxu0 %v941_v45  ;;  %1153 = vmatprep.mubr.f32.mxu1 %v941_v45  ;;  %v205_v44 = vld [vmem:[#allocation2 + $0x3f8] sm:$0xff] }
  0x63   :  { %4373 = vmatpush1.bf16.msra.mxu0 %v6565_v2  ;;  %v187_v2 = vld [vmem:[#allocation2 + $0x368] sm:$0xff]  ;;  %8729 = vst [vmem:[#allocation49_spill] sm:$0xff] %v6608_v28  ;;  %8732 = vst [vmem:[#allocation52_spill] sm:$0xff] %v6618_v42  ;;  %v196_v45 = vld [vmem:[#allocation2 + $0x3b0] sm:$0xff] }
  0x64   :  { %4501 = vmatpush1.bf16.msra.mxu1 %v6569_v11  ;;  %4375 = vmatprep.subr.bf16.mxu0 %v6571_v13  ;;  %v185_v11 = vld [vmem:[#allocation2 + $0x358] sm:$0xff]  ;;  %8728 = vst [vmem:[#allocation48_spill] sm:$0xff] %v6604_v24  ;;  %v6610_v29 = vpack.c.bf16 %v187_v2, %v183_v20  ;;  %v6622_v2 = vpack.c.bf16 %v188_v47, %v184_v46  ;;  %v192_v20 = vld [vmem:[#allocation2 + $0x390] sm:$0xff]  ;;  %v198_v47 = vld [vmem:[#allocation2 + $0x3c0] sm:$0xff] }
  0x65   :  { %4503 = vmatprep.subr.bf16.mxu1 %v6574_v27  ;;  %v6615_v27 = vpack.c.bf16 %v189_v40, %v185_v11  ;;  %v197_v13 = vld [vmem:[#allocation2 + $0x3b8] sm:$0xff]  ;;  %v190_v40 = vld [vmem:[#allocation2 + $0x380] sm:$0xff] }
  0x66   :  { %8730 = vst [vmem:[#allocation50_spill] sm:$0xff] %v6610_v29  ;;  %8733 = vst [vmem:[#allocation53_spill] sm:$0xff] %v6622_v2  ;;  %v194_v11 = vld [vmem:[#allocation2 + $0x3a0] sm:$0xff] }
  0x67   :  { %4377 = vmatpush1.bf16.msra.mxu0 %v6585_v55  ;;  %8731 = vst [vmem:[#allocation51_spill] sm:$0xff] %v6615_v27  ;;  %v195_v55 = vld [vmem:[#allocation2 + $0x3a8] sm:$0xff] }
  0x68   :  { %4505 = vmatpush1.bf16.msra.mxu1 %v6589_v57  ;;  %4379 = vmatprep.subr.bf16.mxu0 %v6591_v59  ;;  %v193_v57 = vld [vmem:[#allocation2 + $0x398] sm:$0xff]  ;;  %v6624_v10 = vpack.c.bf16 %v195_v55, %v191_v60  ;;  %v199_v59 = vld [vmem:[#allocation2 + $0x3c8] sm:$0xff]  ;;  %v6634_v55 = vpack.c.bf16 %v196_v45, %v192_v20  ;;  %v6639_v60 = vpack.c.bf16 %v205_v44, %v201_v36  ;;  %v206_v45 = vld [vmem:[#allocation2 + $0x400] sm:$0xff] }
  0x69   :  { %4507 = vmatprep.subr.bf16.mxu1 %v6597_v61  ;;  %v6627_v61 = vpack.c.bf16 %v197_v13, %v193_v57  ;;  %v202_v13 = vld [vmem:[#allocation2 + $0x3e0] sm:$0xff]  ;;  %v200_v57 = vld [vmem:[#allocation2 + $0x3d0] sm:$0xff] }
  0x6a   :  { %8734 = vst [vmem:[#allocation54_spill] sm:$0xff] %v6624_v10  ;;  %8737 = vst [vmem:[#allocation57_spill] sm:$0xff] %v6634_v55  ;;  %v6644_v20 = vpack.c.bf16 %v202_v13, %v198_v47  ;;  %v210_v36 = vld [vmem:[#allocation2 + $0x420] sm:$0xff]  ;;  %v208_v44 = vld [vmem:[#allocation2 + $0x410] sm:$0xff] }
  0x6b   :  { %4381 = vmatpush1.bf16.msra.mxu0 %v6604_v24  ;;  %8735 = vst [vmem:[#allocation55_spill] sm:$0xff] %v6627_v61  ;;  %v203_v24 = vld [vmem:[#allocation2 + $0x3e8] sm:$0xff]  ;;  %8739 = vst [vmem:[#allocation59_spill] sm:$0xff] %v6639_v60  ;;  %v217_v13 = vld [vmem:[#allocation2 + $0x458] sm:$0xff] }
  0x6c   :  { %4509 = vmatpush1.bf16.msra.mxu1 %v6608_v28  ;;  %4383 = vmatprep.subr.bf16.mxu0 %v6610_v29  ;;  %v6630_v28 = vpack.c.bf16 %v194_v11, %v190_v40  ;;  %v6636_v46 = vpack.c.bf16 %v203_v24, %v199_v59  ;;  %v926_v40 = vcombine.high %v6594_v31, %v6594_v31  ;;  %v207_v11 = vld [vmem:[#allocation2 + $0x408] sm:$0xff]  ;;  %v213_v29 = vld [vmem:[#allocation2 + $0x438] sm:$0xff] }
  0x6d   :  { %4511 = vmatprep.subr.bf16.mxu1 %v6615_v27  ;;  %v204_v27 = vld [vmem:[#allocation2 + $0x3f0] sm:$0xff]  ;;  %8740 = vst [vmem:[#allocation60_spill] sm:$0xff] %v6644_v20 }
  0x6e   :  { %8736 = vst [vmem:[#allocation56_spill] sm:$0xff] %v6630_v28  ;;  %8738 = vst [vmem:[#allocation58_spill] sm:$0xff] %v6636_v46  ;;  %v6648_v59 = vpack.c.bf16 %v204_v27, %v200_v57  ;;  %v6656_v47 = vrot.slane %v926_v40, %v6582_v54  ;;  %v6659_v27 = vpack.c.bf16 %v210_v36, %v206_v45  ;;  %v218_v57 = vld [vmem:[#allocation2 + $0x460] sm:$0xff]  ;;  %v220_v54 = vld [vmem:[#allocation2 + $0x470] sm:$0xff] }
  0x6f   :  { %4385 = vmatpush1.bf16.msra.mxu0 %v6618_v42  ;;  %v211_v42 = vld [vmem:[#allocation2 + $0x428] sm:$0xff]  ;;  %v225_v36 = vld [vmem:[#allocation2 + $0x498] sm:$0xff] }
  0x70   :  { %4513 = vmatpush1.bf16.msra.mxu1 %v6622_v2  ;;  %4387 = vmatprep.subr.bf16.mxu0 %v6624_v10  ;;  %v209_v2 = vld [vmem:[#allocation2 + $0x418] sm:$0xff]  ;;  %8741 = vst [vmem:[#allocation61_spill] sm:$0xff] %v6648_v59  ;;  %v6650_v24 = vpack.c.bf16 %v211_v42, %v207_v11  ;;  %v215_v10 = vld [vmem:[#allocation2 + $0x448] sm:$0xff]  ;;  %8744 = vst [vmem:[#allocation64_spill] sm:$0xff] %v6659_v27  ;;  %v942_v45 = vcombine.high %v6656_v47, %v6656_v47 }
  0x71   :  { %4515 = vmatprep.subr.bf16.mxu1 %v6627_v61  ;;  %v6653_v31 = vpack.c.bf16 %v213_v29, %v209_v2  ;;  %v212_v61 = vld [vmem:[#allocation2 + $0x430] sm:$0xff]  ;;  %v214_v2 = vld [vmem:[#allocation2 + $0x440] sm:$0xff] }
  0x72   :  { %8742 = vst [vmem:[#allocation62_spill] sm:$0xff] %v6650_v24  ;;  %v6663_v42 = vpack.c.bf16 %v212_v61, %v208_v44  ;;  %v216_v11 = vld [vmem:[#allocation2 + $0x450] sm:$0xff]  ;;  %v229_v61 = vld [vmem:[#allocation2 + $0x4b8] sm:$0xff]  ;;  %v222_v44 = vld [vmem:[#allocation2 + $0x480] sm:$0xff] }
  0x73   :  { %4389 = vmatpush1.bf16.msra.mxu0 %v6630_v28  ;;  %8743 = vst [vmem:[#allocation63_spill] sm:$0xff] %v6653_v31  ;;  %v219_v28 = vld [vmem:[#allocation2 + $0x468] sm:$0xff] }
  0x74   :  { %4517 = vmatpush1.bf16.msra.mxu1 %v6634_v55  ;;  %4391 = vmatprep.subr.bf16.mxu0 %v6636_v46  ;;  %v221_v55 = vld [vmem:[#allocation2 + $0x478] sm:$0xff]  ;;  %8745 = vst [vmem:[#allocation65_spill] sm:$0xff] %v6663_v42  ;;  %v6665_v29 = vpack.c.bf16 %v219_v28, %v215_v10  ;;  %v6675_v28 = vpack.c.bf16 %v218_v57, %v214_v2  ;;  %v738_v46 = vld [vmem:[#allocation7 + $0x4a0] sm:$0xff] }
  0x75   :  { %4519 = vmatprep.subr.bf16.mxu1 %v6639_v60  ;;  %v6668_v40 = vpack.c.bf16 %v221_v55, %v217_v13  ;;  %v223_v60 = vld [vmem:[#allocation2 + $0x488] sm:$0xff]  ;;  %v6679_v10 = vpack.c.bf16 %v220_v54, %v216_v11  ;;  %v226_v13 = vld [vmem:[#allocation2 + $0x4a0] sm:$0xff]  ;;  %v233_v2 = vld [vmem:[#allocation2 + $0x4d8] sm:$0xff] }
  0x76   :  { %8746 = vst [vmem:[#allocation66_spill] sm:$0xff] %v6665_v29  ;;  %8748 = vst [vmem:[#allocation68_spill] sm:$0xff] %v6675_v28  ;;  %v237_v57 = vld [vmem:[#allocation2 + $0x4f8] sm:$0xff]  ;;  %v6687_v54 = vpack.c.bf16 %v226_v13, %v222_v44  ;;  %v230_v11 = vld [vmem:[#allocation2 + $0x4c0] sm:$0xff] }
  0x77   :  { %4393 = vmatpush1.bf16.msra.mxu0 %v6644_v20  ;;  %8747 = vst [vmem:[#allocation67_spill] sm:$0xff] %v6668_v40  ;;  %v227_v20 = vld [vmem:[#allocation2 + $0x4a8] sm:$0xff]  ;;  %8749 = vst [vmem:[#allocation69_spill] sm:$0xff] %v6679_v10  ;;  %v241_v44 = vld [vmem:[#allocation2 + $0x518] sm:$0xff] }
  0x78   :  { %4521 = vmatpush1.bf16.msra.mxu1 %v6648_v59  ;;  %4395 = vmatprep.subr.bf16.mxu0 %v6650_v24  ;;  %v6681_v55 = vpack.c.bf16 %v227_v20, %v223_v60  ;;  %v6684_v24 = vpack.c.bf16 %v229_v61, %v225_v36  ;;  %v231_v59 = vld [vmem:[#allocation2 + $0x4c8] sm:$0xff]  ;;  %8752 = vst [vmem:[#allocation72_spill] sm:$0xff] %v6687_v54  ;;  %v234_v36 = vld [vmem:[#allocation2 + $0x4e0] sm:$0xff]  ;;  %v232_v61 = vld [vmem:[#allocation2 + $0x4d0] sm:$0xff] }
  0x79   :  { %4523 = vmatprep.subr.bf16.mxu1 %v6653_v31  ;;  %v224_v31 = vld [vmem:[#allocation2 + $0x490] sm:$0xff]  ;;  %v245_v13 = vld [vmem:[#allocation2 + $0x538] sm:$0xff] }
  0x7a   :  { %1012 = vmatmul.mubr.f32.vlgmr.msra.gmra.mrb[0].mxu0 %v6601_v22  ;;  %8750 = vst [vmem:[#allocation70_spill] sm:$0xff] %v6681_v55  ;;  %8751 = vst [vmem:[#allocation71_spill] sm:$0xff] %v6684_v24 }
  0x7b   :  { %4397 = vmatpush1.bf16.msra.mxu0 %v6659_v27  ;;  %1154 = vmatmul.mubr.f32.vlgmr.msra.gmra.mrb[0].mxu1 %v6601_v22  ;;  %v228_v27 = vld [vmem:[#allocation2 + $0x4b0] sm:$0xff]  ;;  %v235_v22 = vld [vmem:[#allocation2 + $0x4e8] sm:$0xff] }
  0x7c   :  { %4525 = vmatpush1.bf16.msra.mxu1 %v6663_v42  ;;  %4399 = vmatprep.subr.bf16.mxu0 %v6665_v29  ;;  %v6691_v60 = vpack.c.bf16 %v228_v27, %v224_v31  ;;  %v6693_v20 = vpack.c.bf16 %v235_v22, %v231_v59  ;;  %v239_v29 = vld [vmem:[#allocation2 + $0x508] sm:$0xff]  ;;  %v238_v27 = vld [vmem:[#allocation2 + $0x500] sm:$0xff] }
  0x7d   :  { %4527 = vmatprep.subr.bf16.mxu1 %v6668_v40  ;;  %1082 = vmatprep.mubr.f32.mxu0 %v942_v45  ;;  %v6696_v40 = vpack.c.bf16 %v237_v57, %v233_v2  ;;  %v242_v22 = vld [vmem:[#allocation2 + $0x520] sm:$0xff]  ;;  %v240_v2 = vld [vmem:[#allocation2 + $0x510] sm:$0xff]  ;;  %v6708_v57 = vpack.c.bf16 %v245_v13, %v241_v44 }
  0x7e   :  { %1224 = vmatprep.mubr.f32.mxu1 %v942_v45  ;;  %8753 = vst [vmem:[#allocation73_spill] sm:$0xff] %v6691_v60  ;;  %8754 = vst [vmem:[#allocation74_spill] sm:$0xff] %v6693_v20  ;;  %v236_v45 = vld [vmem:[#allocation2 + $0x4f0] sm:$0xff]  ;;  %v734_v42 = vld [vmem:[#allocation7 + $0x480] sm:$0xff] }
  0x7f   :  { %4401 = vmatpush1.bf16.msra.mxu0 %v6675_v28  ;;  %8755 = vst [vmem:[#allocation75_spill] sm:$0xff] %v6696_v40  ;;  %v243_v28 = vld [vmem:[#allocation2 + $0x528] sm:$0xff]  ;;  %v6703_v59 = vpack.c.bf16 %v236_v45, %v232_v61  ;;  %8759 = vst [vmem:[#allocation79_spill] sm:$0xff] %v6708_v57  ;;  %v246_v61 = vld [vmem:[#allocation2 + $0x540] sm:$0xff] }
  0x80   :  { %4529 = vmatpush1.bf16.msra.mxu1 %v6679_v10  ;;  %4403 = vmatprep.subr.bf16.mxu0 %v6681_v55  ;;  %v6699_v10 = vpack.c.bf16 %v234_v36, %v230_v11  ;;  %v6705_v31 = vpack.c.bf16 %v243_v28, %v239_v29  ;;  %v247_v55 = vld [vmem:[#allocation2 + $0x548] sm:$0xff]  ;;  %v249_v11 = vld [vmem:[#allocation2 + $0x558] sm:$0xff]  ;;  %v250_v45 = vld [vmem:[#allocation2 + $0x560] sm:$0xff] }
  0x81   :  { %4531 = vmatprep.subr.bf16.mxu1 %v6684_v24  ;;  %8757 = vst [vmem:[#allocation77_spill] sm:$0xff] %v6703_v59  ;;  %v244_v24 = vld [vmem:[#allocation2 + $0x530] sm:$0xff]  ;;  %v253_v36 = vld [vmem:[#allocation2 + $0x578] sm:$0xff] }
  0x82   :  { %8756 = vst [vmem:[#allocation76_spill] sm:$0xff] %v6699_v10  ;;  %8758 = vst [vmem:[#allocation78_spill] sm:$0xff] %v6705_v31  ;;  %v6715_v29 = vpack.c.bf16 %v244_v24, %v240_v2  ;;  %v248_v44 = vld [vmem:[#allocation2 + $0x550] sm:$0xff]  ;;  %v6720_v13 = vpack.c.bf16 %v253_v36, %v249_v11  ;;  %v258_v2 = vld [vmem:[#allocation2 + $0x5a0] sm:$0xff] }
  0x83   :  { %4405 = vmatpush1.bf16.msra.mxu0 %v6687_v54  ;;  %v251_v54 = vld [vmem:[#allocation2 + $0x568] sm:$0xff]  ;;  %v256_v11 = vld [vmem:[#allocation2 + $0x590] sm:$0xff] }
  0x84   :  { %4533 = vmatpush1.bf16.msra.mxu1 %v6691_v60  ;;  %4407 = vmatprep.subr.bf16.mxu0 %v6693_v20  ;;  %v6711_v60 = vpack.c.bf16 %v242_v22, %v238_v27  ;;  %8761 = vst [vmem:[#allocation81_spill] sm:$0xff] %v6715_v29  ;;  %v6717_v28 = vpack.c.bf16 %v251_v54, %v247_v55  ;;  %8763 = vst [vmem:[#allocation83_spill] sm:$0xff] %v6720_v13  ;;  %v255_v20 = vld [vmem:[#allocation2 + $0x588] sm:$0xff]  ;;  %v257_v27 = vld [vmem:[#allocation2 + $0x598] sm:$0xff] }
  0x85   :  { %4535 = vmatprep.subr.bf16.mxu1 %v6696_v40  ;;  %v252_v40 = vld [vmem:[#allocation2 + $0x570] sm:$0xff]  ;;  %v261_v22 = vld [vmem:[#allocation2 + $0x5b8] sm:$0xff]  ;;  %v254_v54 = vld [vmem:[#allocation2 + $0x580] sm:$0xff] }
  0x86   :  { %8760 = vst [vmem:[#allocation80_spill] sm:$0xff] %v6711_v60  ;;  %8762 = vst [vmem:[#allocation82_spill] sm:$0xff] %v6717_v28  ;;  %v6727_v24 = vpack.c.bf16 %v252_v40, %v248_v44  ;;  %v6732_v36 = vpack.c.bf16 %v261_v22, %v257_v27  ;;  %v266_v44 = vld [vmem:[#allocation2 + $0x5e0] sm:$0xff]  ;;  %v264_v27 = vld [vmem:[#allocation2 + $0x5d0] sm:$0xff] }
  0x87   :  { %4409 = vmatpush1.bf16.msra.mxu0 %v6699_v10  ;;  %v259_v10 = vld [vmem:[#allocation2 + $0x5a8] sm:$0xff] }
  0x88   :  { %4537 = vmatpush1.bf16.msra.mxu1 %v6703_v59  ;;  %4411 = vmatprep.subr.bf16.mxu0 %v6705_v31  ;;  %v6723_v59 = vpack.c.bf16 %v250_v45, %v246_v61  ;;  %8765 = vst [vmem:[#allocation85_spill] sm:$0xff] %v6727_v24  ;;  %v6729_v55 = vpack.c.bf16 %v259_v10, %v255_v20  ;;  %8767 = vst [vmem:[#allocation87_spill] sm:$0xff] %v6732_v36  ;;  %v263_v31 = vld [vmem:[#allocation2 + $0x5c8] sm:$0xff]  ;;  %v265_v61 = vld [vmem:[#allocation2 + $0x5d8] sm:$0xff] }
  0x89   :  { %4539 = vmatprep.subr.bf16.mxu1 %v6708_v57  ;;  %v260_v57 = vld [vmem:[#allocation2 + $0x5b0] sm:$0xff]  ;;  %v269_v45 = vld [vmem:[#allocation2 + $0x5f8] sm:$0xff]  ;;  %v262_v20 = vld [vmem:[#allocation2 + $0x5c0] sm:$0xff] }
  0x8a   :  { %8764 = vst [vmem:[#allocation84_spill] sm:$0xff] %v6723_v59  ;;  %8766 = vst [vmem:[#allocation86_spill] sm:$0xff] %v6729_v55  ;;  %v6739_v40 = vpack.c.bf16 %v260_v57, %v256_v11  ;;  %v6744_v22 = vpack.c.bf16 %v269_v45, %v265_v61  ;;  %v270_v57 = vld [vmem:[#allocation2 + $0x600] sm:$0xff]  ;;  %v272_v61 = vld [vmem:[#allocation2 + $0x610] sm:$0xff] }
  0x8b   :  { %4413 = vmatpush1.bf16.msra.mxu0 %v6711_v60  ;;  %v267_v60 = vld [vmem:[#allocation2 + $0x5e8] sm:$0xff]  ;;  %v274_v11 = vld [vmem:[#allocation2 + $0x620] sm:$0xff] }
  0x8c   :  { %4541 = vmatpush1.bf16.msra.mxu1 %v6715_v29  ;;  %4415 = vmatprep.subr.bf16.mxu0 %v6717_v28  ;;  %v6735_v29 = vpack.c.bf16 %v258_v2, %v254_v54  ;;  %8769 = vst [vmem:[#allocation89_spill] sm:$0xff] %v6739_v40  ;;  %v6741_v10 = vpack.c.bf16 %v267_v60, %v263_v31  ;;  %8771 = vst [vmem:[#allocation91_spill] sm:$0xff] %v6744_v22  ;;  %v271_v28 = vld [vmem:[#allocation2 + $0x608] sm:$0xff]  ;;  %v273_v54 = vld [vmem:[#allocation2 + $0x618] sm:$0xff] }
  0x8d   :  { %4543 = vmatprep.subr.bf16.mxu1 %v6720_v13  ;;  %v268_v13 = vld [vmem:[#allocation2 + $0x5f0] sm:$0xff]  ;;  %v277_v2 = vld [vmem:[#allocation2 + $0x638] sm:$0xff] }
  0x8e   :  { %8768 = vst [vmem:[#allocation88_spill] sm:$0xff] %v6735_v29  ;;  %8770 = vst [vmem:[#allocation90_spill] sm:$0xff] %v6741_v10  ;;  %v6751_v60 = vpack.c.bf16 %v268_v13, %v264_v27  ;;  %v6756_v45 = vpack.c.bf16 %v277_v2, %v273_v54  ;;  %v278_v13 = vld [vmem:[#allocation2 + $0x640] sm:$0xff]  ;;  %v280_v54 = vld [vmem:[#allocation2 + $0x650] sm:$0xff] }
  0x8f   :  { %4417 = vmatpush1.bf16.msra.mxu0 %v6723_v59  ;;  %v275_v59 = vld [vmem:[#allocation2 + $0x628] sm:$0xff]  ;;  %v282_v27 = vld [vmem:[#allocation2 + $0x660] sm:$0xff] }
  0x90   :  { %4545 = vmatpush1.bf16.msra.mxu1 %v6727_v24  ;;  %4419 = vmatprep.subr.bf16.mxu0 %v6729_v55  ;;  %v6747_v24 = vpack.c.bf16 %v266_v44, %v262_v20  ;;  %8773 = vst [vmem:[#allocation93_spill] sm:$0xff] %v6751_v60  ;;  %v6753_v31 = vpack.c.bf16 %v275_v59, %v271_v28  ;;  %8775 = vst [vmem:[#allocation95_spill] sm:$0xff] %v6756_v45  ;;  %v279_v55 = vld [vmem:[#allocation2 + $0x648] sm:$0xff]  ;;  %v281_v20 = vld [vmem:[#allocation2 + $0x658] sm:$0xff] }
  0x91   :  { %4547 = vmatprep.subr.bf16.mxu1 %v6732_v36  ;;  %v276_v36 = vld [vmem:[#allocation2 + $0x630] sm:$0xff]  ;;  %v285_v44 = vld [vmem:[#allocation2 + $0x678] sm:$0xff] }
  0x92   :  { %8772 = vst [vmem:[#allocation92_spill] sm:$0xff] %v6747_v24  ;;  %8774 = vst [vmem:[#allocation94_spill] sm:$0xff] %v6753_v31  ;;  %v6763_v59 = vpack.c.bf16 %v276_v36, %v272_v61  ;;  %v6768_v2 = vpack.c.bf16 %v285_v44, %v281_v20  ;;  %v286_v36 = vld [vmem:[#allocation2 + $0x680] sm:$0xff]  ;;  %v288_v20 = vld [vmem:[#allocation2 + $0x690] sm:$0xff] }
  0x93   :  { %4421 = vmatpush1.bf16.msra.mxu0 %v6735_v29  ;;  %v283_v29 = vld [vmem:[#allocation2 + $0x668] sm:$0xff]  ;;  %v290_v61 = vld [vmem:[#allocation2 + $0x6a0] sm:$0xff] }
  0x94   :  { %4549 = vmatpush1.bf16.msra.mxu1 %v6739_v40  ;;  %4423 = vmatprep.subr.bf16.mxu0 %v6741_v10  ;;  %v6759_v40 = vpack.c.bf16 %v274_v11, %v270_v57  ;;  %8777 = vst [vmem:[#allocation97_spill] sm:$0xff] %v6763_v59  ;;  %v6765_v28 = vpack.c.bf16 %v283_v29, %v279_v55  ;;  %8779 = vst [vmem:[#allocation99_spill] sm:$0xff] %v6768_v2  ;;  %v287_v10 = vld [vmem:[#allocation2 + $0x688] sm:$0xff]  ;;  %v289_v57 = vld [vmem:[#allocation2 + $0x698] sm:$0xff] }
  0x95   :  { %4551 = vmatprep.subr.bf16.mxu1 %v6744_v22  ;;  %v284_v22 = vld [vmem:[#allocation2 + $0x670] sm:$0xff]  ;;  %v293_v11 = vld [vmem:[#allocation2 + $0x6b8] sm:$0xff] }
  0x96   :  { %8776 = vst [vmem:[#allocation96_spill] sm:$0xff] %v6759_v40  ;;  %8778 = vst [vmem:[#allocation98_spill] sm:$0xff] %v6765_v28  ;;  %v6775_v29 = vpack.c.bf16 %v284_v22, %v280_v54  ;;  %v6780_v44 = vpack.c.bf16 %v293_v11, %v289_v57  ;;  %v294_v22 = vld [vmem:[#allocation2 + $0x6c0] sm:$0xff]  ;;  %v296_v57 = vld [vmem:[#allocation2 + $0x6d0] sm:$0xff] }
  0x97   :  { %4425 = vmatpush1.bf16.msra.mxu0 %v6747_v24  ;;  %v291_v24 = vld [vmem:[#allocation2 + $0x6a8] sm:$0xff]  ;;  %v298_v54 = vld [vmem:[#allocation2 + $0x6e0] sm:$0xff] }
  0x98   :  { %4553 = vmatpush1.bf16.msra.mxu1 %v6751_v60  ;;  %4427 = vmatprep.subr.bf16.mxu0 %v6753_v31  ;;  %v6771_v60 = vpack.c.bf16 %v282_v27, %v278_v13  ;;  %8781 = vst [vmem:[#allocation101_spill] sm:$0xff] %v6775_v29  ;;  %v6777_v55 = vpack.c.bf16 %v291_v24, %v287_v10  ;;  %8783 = vst [vmem:[#allocation103_spill] sm:$0xff] %v6780_v44  ;;  %v295_v31 = vld [vmem:[#allocation2 + $0x6c8] sm:$0xff]  ;;  %v297_v13 = vld [vmem:[#allocation2 + $0x6d8] sm:$0xff] }
  0x99   :  { %4555 = vmatprep.subr.bf16.mxu1 %v6756_v45  ;;  %v292_v45 = vld [vmem:[#allocation2 + $0x6b0] sm:$0xff]  ;;  %v301_v27 = vld [vmem:[#allocation2 + $0x6f8] sm:$0xff] }
  0x9a   :  { %8780 = vst [vmem:[#allocation100_spill] sm:$0xff] %v6771_v60  ;;  %8782 = vst [vmem:[#allocation102_spill] sm:$0xff] %v6777_v55  ;;  %v6787_v24 = vpack.c.bf16 %v292_v45, %v288_v20  ;;  %v6792_v11 = vpack.c.bf16 %v301_v27, %v297_v13  ;;  %v302_v45 = vld [vmem:[#allocation2 + $0x700] sm:$0xff]  ;;  %v304_v13 = vld [vmem:[#allocation2 + $0x710] sm:$0xff] }
  0x9b   :  { %4429 = vmatpush1.bf16.msra.mxu0 %v6759_v40  ;;  %v299_v40 = vld [vmem:[#allocation2 + $0x6e8] sm:$0xff]  ;;  %v306_v20 = vld [vmem:[#allocation2 + $0x720] sm:$0xff] }
  0x9c   :  { %4557 = vmatpush1.bf16.msra.mxu1 %v6763_v59  ;;  %4431 = vmatprep.subr.bf16.mxu0 %v6765_v28  ;;  %v6783_v59 = vpack.c.bf16 %v290_v61, %v286_v36  ;;  %8785 = vst [vmem:[#allocation105_spill] sm:$0xff] %v6787_v24  ;;  %v6789_v10 = vpack.c.bf16 %v299_v40, %v295_v31  ;;  %8787 = vst [vmem:[#allocation107_spill] sm:$0xff] %v6792_v11  ;;  %v303_v28 = vld [vmem:[#allocation2 + $0x708] sm:$0xff]  ;;  %v305_v36 = vld [vmem:[#allocation2 + $0x718] sm:$0xff] }
  0x9d   :  { %4559 = vmatprep.subr.bf16.mxu1 %v6768_v2  ;;  %v300_v2 = vld [vmem:[#allocation2 + $0x6f0] sm:$0xff]  ;;  %v309_v61 = vld [vmem:[#allocation2 + $0x738] sm:$0xff] }
  0x9e   :  { %8784 = vst [vmem:[#allocation104_spill] sm:$0xff] %v6783_v59  ;;  %8786 = vst [vmem:[#allocation106_spill] sm:$0xff] %v6789_v10  ;;  %v6799_v40 = vpack.c.bf16 %v300_v2, %v296_v57  ;;  %v6804_v27 = vpack.c.bf16 %v309_v61, %v305_v36  ;;  %v310_v2 = vld [vmem:[#allocation2 + $0x740] sm:$0xff]  ;;  %v312_v36 = vld [vmem:[#allocation2 + $0x750] sm:$0xff] }
  0x9f   :  { %4433 = vmatpush1.bf16.msra.mxu0 %v6771_v60  ;;  %v307_v60 = vld [vmem:[#allocation2 + $0x728] sm:$0xff]  ;;  %v314_v57 = vld [vmem:[#allocation2 + $0x760] sm:$0xff] }
  0xa0   :  { %4561 = vmatpush1.bf16.msra.mxu1 %v6775_v29  ;;  %4435 = vmatprep.subr.bf16.mxu0 %v6777_v55  ;;  %v6795_v29 = vpack.c.bf16 %v298_v54, %v294_v22  ;;  %8789 = vst [vmem:[#allocation109_spill] sm:$0xff] %v6799_v40  ;;  %v6801_v31 = vpack.c.bf16 %v307_v60, %v303_v28  ;;  %8791 = vst [vmem:[#allocation111_spill] sm:$0xff] %v6804_v27  ;;  %v311_v55 = vld [vmem:[#allocation2 + $0x748] sm:$0xff]  ;;  %v313_v22 = vld [vmem:[#allocation2 + $0x758] sm:$0xff] }
  0xa1   :  { %4563 = vmatprep.subr.bf16.mxu1 %v6780_v44  ;;  %v308_v44 = vld [vmem:[#allocation2 + $0x730] sm:$0xff]  ;;  %v317_v54 = vld [vmem:[#allocation2 + $0x778] sm:$0xff] }
  0xa2   :  { %8788 = vst [vmem:[#allocation108_spill] sm:$0xff] %v6795_v29  ;;  %8790 = vst [vmem:[#allocation110_spill] sm:$0xff] %v6801_v31  ;;  %v6811_v60 = vpack.c.bf16 %v308_v44, %v304_v13  ;;  %v6816_v61 = vpack.c.bf16 %v317_v54, %v313_v22  ;;  %v318_v44 = vld [vmem:[#allocation2 + $0x780] sm:$0xff]  ;;  %v320_v22 = vld [vmem:[#allocation2 + $0x790] sm:$0xff] }
  0xa3   :  { %4437 = vmatpush1.bf16.msra.mxu0 %v6783_v59  ;;  %v315_v59 = vld [vmem:[#allocation2 + $0x768] sm:$0xff]  ;;  %v322_v13 = vld [vmem:[#allocation2 + $0x7a0] sm:$0xff] }
  0xa4   :  { %4565 = vmatpush1.bf16.msra.mxu1 %v6787_v24  ;;  %4439 = vmatprep.subr.bf16.mxu0 %v6789_v10  ;;  %v6807_v24 = vpack.c.bf16 %v306_v20, %v302_v45  ;;  %8793 = vst [vmem:[#allocation113_spill] sm:$0xff] %v6811_v60  ;;  %v6813_v28 = vpack.c.bf16 %v315_v59, %v311_v55  ;;  %8795 = vst [vmem:[#allocation115_spill] sm:$0xff] %v6816_v61  ;;  %v319_v10 = vld [vmem:[#allocation2 + $0x788] sm:$0xff]  ;;  %v321_v45 = vld [vmem:[#allocation2 + $0x798] sm:$0xff] }
  0xa5   :  { %4567 = vmatprep.subr.bf16.mxu1 %v6792_v11  ;;  %v316_v11 = vld [vmem:[#allocation2 + $0x770] sm:$0xff]  ;;  %v325_v20 = vld [vmem:[#allocation2 + $0x7b8] sm:$0xff] }
  0xa6   :  { %8792 = vst [vmem:[#allocation112_spill] sm:$0xff] %v6807_v24  ;;  %8794 = vst [vmem:[#allocation114_spill] sm:$0xff] %v6813_v28  ;;  %v6823_v59 = vpack.c.bf16 %v316_v11, %v312_v36  ;;  %v6828_v54 = vpack.c.bf16 %v325_v20, %v321_v45  ;;  %v326_v11 = vld [vmem:[#allocation2 + $0x7c0] sm:$0xff]  ;;  %v328_v45 = vld [vmem:[#allocation2 + $0x7d0] sm:$0xff] }
  0xa7   :  { %4441 = vmatpush1.bf16.msra.mxu0 %v6795_v29  ;;  %v323_v29 = vld [vmem:[#allocation2 + $0x7a8] sm:$0xff]  ;;  %v330_v36 = vld [vmem:[#allocation2 + $0x7e0] sm:$0xff] }
  0xa8   :  { %4569 = vmatpush1.bf16.msra.mxu1 %v6799_v40  ;;  %4443 = vmatprep.subr.bf16.mxu0 %v6801_v31  ;;  %v6819_v40 = vpack.c.bf16 %v314_v57, %v310_v2  ;;  %8797 = vst [vmem:[#allocation117_spill] sm:$0xff] %v6823_v59  ;;  %v6825_v55 = vpack.c.bf16 %v323_v29, %v319_v10  ;;  %8799 = vst [vmem:[#allocation119_spill] sm:$0xff] %v6828_v54  ;;  %v327_v31 = vld [vmem:[#allocation2 + $0x7c8] sm:$0xff]  ;;  %v329_v2 = vld [vmem:[#allocation2 + $0x7d8] sm:$0xff] }
  0xa9   :  { %4571 = vmatprep.subr.bf16.mxu1 %v6804_v27  ;;  %v324_v27 = vld [vmem:[#allocation2 + $0x7b0] sm:$0xff]  ;;  %v333_v57 = vld [vmem:[#allocation2 + $0x7f8] sm:$0xff] }
  0xaa   :  { %8796 = vst [vmem:[#allocation116_spill] sm:$0xff] %v6819_v40  ;;  %8798 = vst [vmem:[#allocation118_spill] sm:$0xff] %v6825_v55  ;;  %v6835_v29 = vpack.c.bf16 %v324_v27, %v320_v22  ;;  %v6840_v20 = vpack.c.bf16 %v333_v57, %v329_v2  ;;  %v590_v27 = vld [vmem:[#allocation7] sm:$0xff]  ;;  %v592_v2 = vld [vmem:[#allocation7 + $0x10] sm:$0xff] }
  0xab   :  { %4445 = vmatpush1.bf16.msra.mxu0 %v6807_v24  ;;  %v331_v24 = vld [vmem:[#allocation2 + $0x7e8] sm:$0xff]  ;;  %v594_v22 = vld [vmem:[#allocation7 + $0x20] sm:$0xff] }
  0xac   :  { %4573 = vmatpush1.bf16.msra.mxu1 %v6811_v60  ;;  %4447 = vmatprep.subr.bf16.mxu0 %v6813_v28  ;;  %v6831_v60 = vpack.c.bf16 %v322_v13, %v318_v44  ;;  %8801 = vst [vmem:[#allocation121_spill] sm:$0xff] %v6835_v29  ;;  %v6837_v10 = vpack.c.bf16 %v331_v24, %v327_v31  ;;  %8803 = vst [vmem:[#allocation123_spill] sm:$0xff] %v6840_v20  ;;  %v591_v28 = vld [vmem:[#allocation7 + $0x8] sm:$0xff]  ;;  %v593_v44 = vld [vmem:[#allocation7 + $0x18] sm:$0xff] }
  0xad   :  { %4575 = vmatprep.subr.bf16.mxu1 %v6816_v61  ;;  %v332_v61 = vld [vmem:[#allocation2 + $0x7f0] sm:$0xff]  ;;  %v597_v13 = vld [vmem:[#allocation7 + $0x38] sm:$0xff] }
  0xae   :  { %8800 = vst [vmem:[#allocation120_spill] sm:$0xff] %v6831_v60  ;;  %8802 = vst [vmem:[#allocation122_spill] sm:$0xff] %v6837_v10  ;;  %v6847_v24 = vpack.c.bf16 %v332_v61, %v328_v45  ;;  %v6852_v57 = vpack.c.bf16 %v597_v13, %v593_v44  ;;  %v598_v61 = vld [vmem:[#allocation7 + $0x40] sm:$0xff]  ;;  %v600_v44 = vld [vmem:[#allocation7 + $0x50] sm:$0xff] }
  0xaf   :  { %4449 = vmatpush1.bf16.msra.mxu0 %v6819_v40  ;;  %v595_v40 = vld [vmem:[#allocation7 + $0x28] sm:$0xff]  ;;  %v602_v45 = vld [vmem:[#allocation7 + $0x60] sm:$0xff] }
  0xb0   :  { %4577 = vmatpush1.bf16.msra.mxu1 %v6823_v59  ;;  %4451 = vmatprep.subr.bf16.mxu0 %v6825_v55  ;;  %v6843_v59 = vpack.c.bf16 %v330_v36, %v326_v11  ;;  %8805 = vst [vmem:[#allocation125_spill] sm:$0xff] %v6847_v24  ;;  %v6849_v31 = vpack.c.bf16 %v595_v40, %v591_v28  ;;  %8807 = vst [vmem:[#allocation127_spill] sm:$0xff] %v6852_v57  ;;  %v599_v55 = vld [vmem:[#allocation7 + $0x48] sm:$0xff]  ;;  %v601_v11 = vld [vmem:[#allocation7 + $0x58] sm:$0xff] }
  0xb1   :  { %4579 = vmatprep.subr.bf16.mxu1 %v6828_v54  ;;  %v596_v54 = vld [vmem:[#allocation7 + $0x30] sm:$0xff]  ;;  %v605_v36 = vld [vmem:[#allocation7 + $0x78] sm:$0xff] }
  0xb2   :  { %8804 = vst [vmem:[#allocation124_spill] sm:$0xff] %v6843_v59  ;;  %8806 = vst [vmem:[#allocation126_spill] sm:$0xff] %v6849_v31  ;;  %v6859_v40 = vpack.c.bf16 %v596_v54, %v592_v2  ;;  %v6864_v13 = vpack.c.bf16 %v605_v36, %v601_v11  ;;  %v606_v2 = vld [vmem:[#allocation7 + $0x80] sm:$0xff]  ;;  %v608_v36 = vld [vmem:[#allocation7 + $0x90] sm:$0xff] }
  0xb3   :  { %4453 = vmatpush1.bf16.msra.mxu0 %v6831_v60  ;;  %v603_v60 = vld [vmem:[#allocation7 + $0x68] sm:$0xff]  ;;  %v610_v11 = vld [vmem:[#allocation7 + $0xa0] sm:$0xff] }
  0xb4   :  { %4581 = vmatpush1.bf16.msra.mxu1 %v6835_v29  ;;  %4455 = vmatprep.subr.bf16.mxu0 %v6837_v10  ;;  %v6855_v29 = vpack.c.bf16 %v594_v22, %v590_v27  ;;  %8809 = vst [vmem:[#allocation129_spill] sm:$0xff] %v6859_v40  ;;  %v6861_v28 = vpack.c.bf16 %v603_v60, %v599_v55  ;;  %8811 = vst [vmem:[#allocation131_spill] sm:$0xff] %v6864_v13  ;;  %v607_v10 = vld [vmem:[#allocation7 + $0x88] sm:$0xff]  ;;  %v609_v27 = vld [vmem:[#allocation7 + $0x98] sm:$0xff] }
  0xb5   :  { %4583 = vmatprep.subr.bf16.mxu1 %v6840_v20  ;;  %v604_v20 = vld [vmem:[#allocation7 + $0x70] sm:$0xff]  ;;  %v613_v22 = vld [vmem:[#allocation7 + $0xb8] sm:$0xff]  ;;  %v6869_v60 = vpack.c.bf16 %v602_v45, %v598_v61 }
  0xb6   :  { %8808 = vst [vmem:[#allocation128_spill] sm:$0xff] %v6855_v29  ;;  %8810 = vst [vmem:[#allocation130_spill] sm:$0xff] %v6861_v28  ;;  %v6873_v55 = vpack.c.bf16 %v604_v20, %v600_v44  ;;  %v617_v61 = vld [vmem:[#allocation7 + $0xd8] sm:$0xff]  ;;  %v614_v20 = vld [vmem:[#allocation7 + $0xc0] sm:$0xff] }
  0xb7   :  { %4457 = vmatpush1.bf16.msra.mxu0 %v6843_v59  ;;  %v611_v59 = vld [vmem:[#allocation7 + $0xa8] sm:$0xff]  ;;  %8812 = vst [vmem:[#allocation132_spill] sm:$0xff] %v6869_v60  ;;  %v621_v45 = vld [vmem:[#allocation7 + $0xf8] sm:$0xff]  ;;  %v618_v44 = vld [vmem:[#allocation7 + $0xe0] sm:$0xff] }
  0xb8   :  { %4585 = vmatpush1.bf16.msra.mxu1 %v6847_v24  ;;  %4587 = vmatprep.subr.bf16.mxu0 %v6849_v31  ;;  %8813 = vst [vmem:[#allocation133_spill] sm:$0xff] %v6873_v55  ;;  %v6875_v54 = vpack.c.bf16 %v611_v59, %v607_v10  ;;  %v615_v31 = vld [vmem:[#allocation7 + $0xc8] sm:$0xff] }
  0xb9   :  { %4715 = vmatprep.subr.bf16.mxu1 %v6852_v57  ;;  %v6878_v57 = vpack.c.bf16 %v613_v22, %v609_v27  ;;  %v616_v27 = vld [vmem:[#allocation7 + $0xd0] sm:$0xff]  ;;  %v6890_v22 = vpack.c.bf16 %v621_v45, %v617_v61  ;;  %v739_v24 = vld [vmem:[#allocation7 + $0x4a8] sm:$0xff] }
  0xba   :  { %1083 = vmatmul.mubr.f32.vlgmr.msra.gmra.mrb[0].mxu0 %v6656_v47  ;;  %8814 = vst [vmem:[#allocation134_spill] sm:$0xff] %v6875_v54  ;;  %v624_v61 = vld [vmem:[#allocation7 + $0x110] sm:$0xff] }
  0xbb   :  { %1225 = vmatmul.mubr.f32.vlgmr.msra.gmra.mrb[0].mxu1 %v6656_v47  ;;  %4589 = vmatpush1.bf16.msra.mxu0 %v6855_v29  ;;  %8815 = vst [vmem:[#allocation135_spill] sm:$0xff] %v6878_v57  ;;  %v612_v47 = vld [vmem:[#allocation7 + $0xb0] sm:$0xff]  ;;  %v619_v29 = vld [vmem:[#allocation7 + $0xe8] sm:$0xff]  ;;  %8819 = vst [vmem:[#allocation139_spill] sm:$0xff] %v6890_v22 }
  0xbc   :  { %4717 = vmatpush1.bf16.msra.mxu1 %v6859_v40  ;;  %4591 = vmatprep.subr.bf16.mxu0 %v6861_v28  ;;  %v6881_v40 = vpack.c.bf16 %v610_v11, %v606_v2  ;;  %v6885_v59 = vpack.c.bf16 %v612_v47, %v608_v36  ;;  %v6887_v10 = vpack.c.bf16 %v619_v29, %v615_v31  ;;  %v623_v28 = vld [vmem:[#allocation7 + $0x108] sm:$0xff]  ;;  %v625_v2 = vld [vmem:[#allocation7 + $0x118] sm:$0xff]  ;;  %v622_v36 = vld [vmem:[#allocation7 + $0x100] sm:$0xff] }
  0xbd   :  { %4719 = vmatprep.subr.bf16.mxu1 %v6864_v13  ;;  %v620_v13 = vld [vmem:[#allocation7 + $0xf0] sm:$0xff]  ;;  %v629_v11 = vld [vmem:[#allocation7 + $0x138] sm:$0xff]  ;;  %v626_v47 = vld [vmem:[#allocation7 + $0x120] sm:$0xff] }
  0xbe   :  { %8816 = vst [vmem:[#allocation136_spill] sm:$0xff] %v6881_v40  ;;  %8817 = vst [vmem:[#allocation137_spill] sm:$0xff] %v6885_v59  ;;  %v6897_v29 = vpack.c.bf16 %v620_v13, %v616_v27  ;;  %v6902_v45 = vpack.c.bf16 %v629_v11, %v625_v2  ;;  %v634_v27 = vld [vmem:[#allocation7 + $0x160] sm:$0xff]  ;;  %v632_v2 = vld [vmem:[#allocation7 + $0x150] sm:$0xff] }
  0xbf   :  { %4593 = vmatpush1.bf16.msra.mxu0 %v6869_v60  ;;  %8818 = vst [vmem:[#allocation138_spill] sm:$0xff] %v6887_v10  ;;  %v627_v60 = vld [vmem:[#allocation7 + $0x128] sm:$0xff] }
  0xc0   :  { %4721 = vmatpush1.bf16.msra.mxu1 %v6873_v55  ;;  %4595 = vmatprep.subr.bf16.mxu0 %v6875_v54  ;;  %v6893_v55 = vpack.c.bf16 %v618_v44, %v614_v20  ;;  %8821 = vst [vmem:[#allocation141_spill] sm:$0xff] %v6897_v29  ;;  %v6899_v31 = vpack.c.bf16 %v627_v60, %v623_v28  ;;  %8823 = vst [vmem:[#allocation143_spill] sm:$0xff] %v6902_v45  ;;  %v631_v54 = vld [vmem:[#allocation7 + $0x148] sm:$0xff]  ;;  %v633_v20 = vld [vmem:[#allocation7 + $0x158] sm:$0xff] }
  0xc1   :  { %4723 = vmatprep.subr.bf16.mxu1 %v6878_v57  ;;  %v628_v57 = vld [vmem:[#allocation7 + $0x130] sm:$0xff]  ;;  %v637_v44 = vld [vmem:[#allocation7 + $0x178] sm:$0xff]  ;;  %v630_v60 = vld [vmem:[#allocation7 + $0x140] sm:$0xff] }
  0xc2   :  { %8820 = vst [vmem:[#allocation140_spill] sm:$0xff] %v6893_v55  ;;  %8822 = vst [vmem:[#allocation142_spill] sm:$0xff] %v6899_v31  ;;  %v6909_v28 = vpack.c.bf16 %v628_v57, %v624_v61  ;;  %v6914_v11 = vpack.c.bf16 %v637_v44, %v633_v20  ;;  %v642_v61 = vld [vmem:[#allocation7 + $0x1a0] sm:$0xff]  ;;  %v640_v20 = vld [vmem:[#allocation7 + $0x190] sm:$0xff] }
  0xc3   :  { %4597 = vmatpush1.bf16.msra.mxu0 %v6881_v40  ;;  %v635_v40 = vld [vmem:[#allocation7 + $0x168] sm:$0xff] }
  0xc4   :  { %4725 = vmatpush1.bf16.msra.mxu1 %v6885_v59  ;;  %4599 = vmatprep.subr.bf16.mxu0 %v6887_v10  ;;  %v6905_v59 = vpack.c.bf16 %v626_v47, %v622_v36  ;;  %8825 = vst [vmem:[#allocation145_spill] sm:$0xff] %v6909_v28  ;;  %v6911_v13 = vpack.c.bf16 %v635_v40, %v631_v54  ;;  %8827 = vst [vmem:[#allocation147_spill] sm:$0xff] %v6914_v11  ;;  %v639_v10 = vld [vmem:[#allocation7 + $0x188] sm:$0xff]  ;;  %v641_v36 = vld [vmem:[#allocation7 + $0x198] sm:$0xff] }
  0xc5   :  { %4727 = vmatprep.subr.bf16.mxu1 %v6890_v22  ;;  %v636_v22 = vld [vmem:[#allocation7 + $0x170] sm:$0xff]  ;;  %v645_v47 = vld [vmem:[#allocation7 + $0x1b8] sm:$0xff]  ;;  %v638_v54 = vld [vmem:[#allocation7 + $0x180] sm:$0xff] }
  0xc6   :  { %8824 = vst [vmem:[#allocation144_spill] sm:$0xff] %v6905_v59  ;;  %8826 = vst [vmem:[#allocation146_spill] sm:$0xff] %v6911_v13  ;;  %v6921_v57 = vpack.c.bf16 %v636_v22, %v632_v2  ;;  %v6926_v44 = vpack.c.bf16 %v645_v47, %v641_v36  ;;  %v646_v22 = vld [vmem:[#allocation7 + $0x1c0] sm:$0xff]  ;;  %v648_v36 = vld [vmem:[#allocation7 + $0x1d0] sm:$0xff] }
  0xc7   :  { %4601 = vmatpush1.bf16.msra.mxu0 %v6893_v55  ;;  %v643_v55 = vld [vmem:[#allocation7 + $0x1a8] sm:$0xff]  ;;  %v650_v2 = vld [vmem:[#allocation7 + $0x1e0] sm:$0xff] }
  0xc8   :  { %4729 = vmatpush1.bf16.msra.mxu1 %v6897_v29  ;;  %4603 = vmatprep.subr.bf16.mxu0 %v6899_v31  ;;  %v6917_v29 = vpack.c.bf16 %v634_v27, %v630_v60  ;;  %8829 = vst [vmem:[#allocation149_spill] sm:$0xff] %v6921_v57  ;;  %v6923_v40 = vpack.c.bf16 %v643_v55, %v639_v10  ;;  %8831 = vst [vmem:[#allocation151_spill] sm:$0xff] %v6926_v44  ;;  %v647_v31 = vld [vmem:[#allocation7 + $0x1c8] sm:$0xff]  ;;  %v649_v60 = vld [vmem:[#allocation7 + $0x1d8] sm:$0xff] }
  0xc9   :  { %4731 = vmatprep.subr.bf16.mxu1 %v6902_v45  ;;  %v644_v45 = vld [vmem:[#allocation7 + $0x1b0] sm:$0xff]  ;;  %v653_v27 = vld [vmem:[#allocation7 + $0x1f8] sm:$0xff] }
  0xca   :  { %8828 = vst [vmem:[#allocation148_spill] sm:$0xff] %v6917_v29  ;;  %8830 = vst [vmem:[#allocation150_spill] sm:$0xff] %v6923_v40  ;;  %v6933_v55 = vpack.c.bf16 %v644_v45, %v640_v20  ;;  %v6938_v47 = vpack.c.bf16 %v653_v27, %v649_v60  ;;  %v654_v45 = vld [vmem:[#allocation7 + $0x200] sm:$0xff]  ;;  %v656_v60 = vld [vmem:[#allocation7 + $0x210] sm:$0xff] }
  0xcb   :  { %4605 = vmatpush1.bf16.msra.mxu0 %v6905_v59  ;;  %v651_v59 = vld [vmem:[#allocation7 + $0x1e8] sm:$0xff]  ;;  %v658_v20 = vld [vmem:[#allocation7 + $0x220] sm:$0xff] }
  0xcc   :  { %4733 = vmatpush1.bf16.msra.mxu1 %v6909_v28  ;;  %4607 = vmatprep.subr.bf16.mxu0 %v6911_v13  ;;  %v6929_v28 = vpack.c.bf16 %v642_v61, %v638_v54  ;;  %8833 = vst [vmem:[#allocation153_spill] sm:$0xff] %v6933_v55  ;;  %v6935_v10 = vpack.c.bf16 %v651_v59, %v647_v31  ;;  %8835 = vst [vmem:[#allocation155_spill] sm:$0xff] %v6938_v47  ;;  %v655_v13 = vld [vmem:[#allocation7 + $0x208] sm:$0xff]  ;;  %v657_v54 = vld [vmem:[#allocation7 + $0x218] sm:$0xff] }
  0xcd   :  { %4735 = vmatprep.subr.bf16.mxu1 %v6914_v11  ;;  %v652_v11 = vld [vmem:[#allocation7 + $0x1f0] sm:$0xff]  ;;  %v661_v61 = vld [vmem:[#allocation7 + $0x238] sm:$0xff] }
  0xce   :  { %8832 = vst [vmem:[#allocation152_spill] sm:$0xff] %v6929_v28  ;;  %8834 = vst [vmem:[#allocation154_spill] sm:$0xff] %v6935_v10  ;;  %v6945_v59 = vpack.c.bf16 %v652_v11, %v648_v36  ;;  %v6950_v27 = vpack.c.bf16 %v661_v61, %v657_v54  ;;  %v662_v11 = vld [vmem:[#allocation7 + $0x240] sm:$0xff]  ;;  %v664_v54 = vld [vmem:[#allocation7 + $0x250] sm:$0xff] }
  0xcf   :  { %4609 = vmatpush1.bf16.msra.mxu0 %v6917_v29  ;;  %v659_v29 = vld [vmem:[#allocation7 + $0x228] sm:$0xff]  ;;  %v666_v36 = vld [vmem:[#allocation7 + $0x260] sm:$0xff] }
  0xd0   :  { %4737 = vmatpush1.bf16.msra.mxu1 %v6921_v57  ;;  %4611 = vmatprep.subr.bf16.mxu0 %v6923_v40  ;;  %v6941_v57 = vpack.c.bf16 %v650_v2, %v646_v22  ;;  %8837 = vst [vmem:[#allocation157_spill] sm:$0xff] %v6945_v59  ;;  %v6947_v31 = vpack.c.bf16 %v659_v29, %v655_v13  ;;  %8839 = vst [vmem:[#allocation159_spill] sm:$0xff] %v6950_v27  ;;  %v663_v40 = vld [vmem:[#allocation7 + $0x248] sm:$0xff]  ;;  %v665_v22 = vld [vmem:[#allocation7 + $0x258] sm:$0xff] }
  0xd1   :  { %4739 = vmatprep.subr.bf16.mxu1 %v6926_v44  ;;  %v660_v44 = vld [vmem:[#allocation7 + $0x230] sm:$0xff]  ;;  %v669_v2 = vld [vmem:[#allocation7 + $0x278] sm:$0xff] }
  0xd2   :  { %8836 = vst [vmem:[#allocation156_spill] sm:$0xff] %v6941_v57  ;;  %8838 = vst [vmem:[#allocation158_spill] sm:$0xff] %v6947_v31  ;;  %v6957_v29 = vpack.c.bf16 %v660_v44, %v656_v60  ;;  %v6962_v61 = vpack.c.bf16 %v669_v2, %v665_v22  ;;  %v670_v44 = vld [vmem:[#allocation7 + $0x280] sm:$0xff]  ;;  %v672_v22 = vld [vmem:[#allocation7 + $0x290] sm:$0xff] }
  0xd3   :  { %4613 = vmatpush1.bf16.msra.mxu0 %v6929_v28  ;;  %v667_v28 = vld [vmem:[#allocation7 + $0x268] sm:$0xff]  ;;  %v674_v60 = vld [vmem:[#allocation7 + $0x2a0] sm:$0xff] }
  0xd4   :  { %4741 = vmatpush1.bf16.msra.mxu1 %v6933_v55  ;;  %4615 = vmatprep.subr.bf16.mxu0 %v6935_v10  ;;  %v6953_v55 = vpack.c.bf16 %v658_v20, %v654_v45  ;;  %8841 = vst [vmem:[#allocation161_spill] sm:$0xff] %v6957_v29  ;;  %v6959_v13 = vpack.c.bf16 %v667_v28, %v663_v40  ;;  %8843 = vst [vmem:[#allocation163_spill] sm:$0xff] %v6962_v61  ;;  %v671_v10 = vld [vmem:[#allocation7 + $0x288] sm:$0xff]  ;;  %v673_v45 = vld [vmem:[#allocation7 + $0x298] sm:$0xff] }
  0xd5   :  { %4743 = vmatprep.subr.bf16.mxu1 %v6938_v47  ;;  %v668_v47 = vld [vmem:[#allocation7 + $0x270] sm:$0xff]  ;;  %v677_v20 = vld [vmem:[#allocation7 + $0x2b8] sm:$0xff] }
  0xd6   :  { %8840 = vst [vmem:[#allocation160_spill] sm:$0xff] %v6953_v55  ;;  %8842 = vst [vmem:[#allocation162_spill] sm:$0xff] %v6959_v13  ;;  %v6969_v28 = vpack.c.bf16 %v668_v47, %v664_v54  ;;  %v6974_v2 = vpack.c.bf16 %v677_v20, %v673_v45  ;;  %v678_v47 = vld [vmem:[#allocation7 + $0x2c0] sm:$0xff]  ;;  %v680_v45 = vld [vmem:[#allocation7 + $0x2d0] sm:$0xff] }
  0xd7   :  { %4617 = vmatpush1.bf16.msra.mxu0 %v6941_v57  ;;  %v675_v57 = vld [vmem:[#allocation7 + $0x2a8] sm:$0xff]  ;;  %v682_v54 = vld [vmem:[#allocation7 + $0x2e0] sm:$0xff] }
  0xd8   :  { %4745 = vmatpush1.bf16.msra.mxu1 %v6945_v59  ;;  %4619 = vmatprep.subr.bf16.mxu0 %v6947_v31  ;;  %v6965_v59 = vpack.c.bf16 %v666_v36, %v662_v11  ;;  %8845 = vst [vmem:[#allocation165_spill] sm:$0xff] %v6969_v28  ;;  %v6971_v40 = vpack.c.bf16 %v675_v57, %v671_v10  ;;  %8847 = vst [vmem:[#allocation167_spill] sm:$0xff] %v6974_v2  ;;  %v679_v31 = vld [vmem:[#allocation7 + $0x2c8] sm:$0xff]  ;;  %v681_v11 = vld [vmem:[#allocation7 + $0x2d8] sm:$0xff] }
  0xd9   :  { %4747 = vmatprep.subr.bf16.mxu1 %v6950_v27  ;;  %v676_v27 = vld [vmem:[#allocation7 + $0x2b0] sm:$0xff]  ;;  %v685_v36 = vld [vmem:[#allocation7 + $0x2f8] sm:$0xff] }
  0xda   :  { %8844 = vst [vmem:[#allocation164_spill] sm:$0xff] %v6965_v59  ;;  %8846 = vst [vmem:[#allocation166_spill] sm:$0xff] %v6971_v40  ;;  %v6981_v57 = vpack.c.bf16 %v676_v27, %v672_v22  ;;  %v6986_v20 = vpack.c.bf16 %v685_v36, %v681_v11  ;;  %v686_v27 = vld [vmem:[#allocation7 + $0x300] sm:$0xff]  ;;  %v688_v11 = vld [vmem:[#allocation7 + $0x310] sm:$0xff] }
  0xdb   :  { %4621 = vmatpush1.bf16.msra.mxu0 %v6953_v55  ;;  %v683_v55 = vld [vmem:[#allocation7 + $0x2e8] sm:$0xff]  ;;  %v690_v22 = vld [vmem:[#allocation7 + $0x320] sm:$0xff] }
  0xdc   :  { %4749 = vmatpush1.bf16.msra.mxu1 %v6957_v29  ;;  %4623 = vmatprep.subr.bf16.mxu0 %v6959_v13  ;;  %v6977_v29 = vpack.c.bf16 %v674_v60, %v670_v44  ;;  %8849 = vst [vmem:[#allocation169_spill] sm:$0xff] %v6981_v57  ;;  %v6983_v10 = vpack.c.bf16 %v683_v55, %v679_v31  ;;  %8851 = vst [vmem:[#allocation171_spill] sm:$0xff] %v6986_v20  ;;  %v687_v13 = vld [vmem:[#allocation7 + $0x308] sm:$0xff]  ;;  %v689_v44 = vld [vmem:[#allocation7 + $0x318] sm:$0xff] }
  0xdd   :  { %4751 = vmatprep.subr.bf16.mxu1 %v6962_v61  ;;  %v684_v61 = vld [vmem:[#allocation7 + $0x2f0] sm:$0xff]  ;;  %v693_v60 = vld [vmem:[#allocation7 + $0x338] sm:$0xff] }
  0xde   :  { %8848 = vst [vmem:[#allocation168_spill] sm:$0xff] %v6977_v29  ;;  %8850 = vst [vmem:[#allocation170_spill] sm:$0xff] %v6983_v10  ;;  %v6993_v55 = vpack.c.bf16 %v684_v61, %v680_v45  ;;  %v6998_v36 = vpack.c.bf16 %v693_v60, %v689_v44  ;;  %v694_v61 = vld [vmem:[#allocation7 + $0x340] sm:$0xff]  ;;  %v696_v44 = vld [vmem:[#allocation7 + $0x350] sm:$0xff] }
  0xdf   :  { %4625 = vmatpush1.bf16.msra.mxu0 %v6965_v59  ;;  %v691_v59 = vld [vmem:[#allocation7 + $0x328] sm:$0xff]  ;;  %v698_v45 = vld [vmem:[#allocation7 + $0x360] sm:$0xff] }
  0xe0   :  { %4753 = vmatpush1.bf16.msra.mxu1 %v6969_v28  ;;  %4627 = vmatprep.subr.bf16.mxu0 %v6971_v40  ;;  %v6989_v28 = vpack.c.bf16 %v682_v54, %v678_v47  ;;  %8853 = vst [vmem:[#allocation173_spill] sm:$0xff] %v6993_v55  ;;  %v6995_v31 = vpack.c.bf16 %v691_v59, %v687_v13  ;;  %8855 = vst [vmem:[#allocation175_spill] sm:$0xff] %v6998_v36  ;;  %v695_v40 = vld [vmem:[#allocation7 + $0x348] sm:$0xff]  ;;  %v697_v47 = vld [vmem:[#allocation7 + $0x358] sm:$0xff] }
  0xe1   :  { %4755 = vmatprep.subr.bf16.mxu1 %v6974_v2  ;;  %v692_v2 = vld [vmem:[#allocation7 + $0x330] sm:$0xff]  ;;  %v701_v54 = vld [vmem:[#allocation7 + $0x378] sm:$0xff] }
  0xe2   :  { %8852 = vst [vmem:[#allocation172_spill] sm:$0xff] %v6989_v28  ;;  %8854 = vst [vmem:[#allocation174_spill] sm:$0xff] %v6995_v31  ;;  %v7005_v59 = vpack.c.bf16 %v692_v2, %v688_v11  ;;  %v7010_v60 = vpack.c.bf16 %v701_v54, %v697_v47  ;;  %v702_v2 = vld [vmem:[#allocation7 + $0x380] sm:$0xff]  ;;  %v704_v47 = vld [vmem:[#allocation7 + $0x390] sm:$0xff] }
  0xe3   :  { %4629 = vmatpush1.bf16.msra.mxu0 %v6977_v29  ;;  %v699_v29 = vld [vmem:[#allocation7 + $0x368] sm:$0xff]  ;;  %v706_v11 = vld [vmem:[#allocation7 + $0x3a0] sm:$0xff] }
  0xe4   :  { %4757 = vmatpush1.bf16.msra.mxu1 %v6981_v57  ;;  %4631 = vmatprep.subr.bf16.mxu0 %v6983_v10  ;;  %v7001_v57 = vpack.c.bf16 %v690_v22, %v686_v27  ;;  %8857 = vst [vmem:[#allocation177_spill] sm:$0xff] %v7005_v59  ;;  %v7007_v13 = vpack.c.bf16 %v699_v29, %v695_v40  ;;  %8859 = vst [vmem:[#allocation179_spill] sm:$0xff] %v7010_v60  ;;  %v703_v10 = vld [vmem:[#allocation7 + $0x388] sm:$0xff]  ;;  %v705_v27 = vld [vmem:[#allocation7 + $0x398] sm:$0xff] }
  0xe5   :  { %4759 = vmatprep.subr.bf16.mxu1 %v6986_v20  ;;  %v700_v20 = vld [vmem:[#allocation7 + $0x370] sm:$0xff]  ;;  %v709_v22 = vld [vmem:[#allocation7 + $0x3b8] sm:$0xff] }
  0xe6   :  { %8856 = vst [vmem:[#allocation176_spill] sm:$0xff] %v7001_v57  ;;  %8858 = vst [vmem:[#allocation178_spill] sm:$0xff] %v7007_v13  ;;  %v7017_v29 = vpack.c.bf16 %v700_v20, %v696_v44  ;;  %v7022_v54 = vpack.c.bf16 %v709_v22, %v705_v27  ;;  %v710_v20 = vld [vmem:[#allocation7 + $0x3c0] sm:$0xff]  ;;  %v712_v22 = vld [vmem:[#allocation7 + $0x3d0] sm:$0xff] }
  0xe7   :  { %4633 = vmatpush1.bf16.msra.mxu0 %v6989_v28  ;;  %v707_v28 = vld [vmem:[#allocation7 + $0x3a8] sm:$0xff]  ;;  %v714_v44 = vld [vmem:[#allocation7 + $0x3e0] sm:$0xff] }
  0xe8   :  { %4761 = vmatpush1.bf16.msra.mxu1 %v6993_v55  ;;  %4635 = vmatprep.subr.bf16.mxu0 %v6995_v31  ;;  %v7013_v55 = vpack.c.bf16 %v698_v45, %v694_v61  ;;  %8861 = vst [vmem:[#allocation181_spill] sm:$0xff] %v7017_v29  ;;  %v7019_v40 = vpack.c.bf16 %v707_v28, %v703_v10  ;;  %8863 = vst [vmem:[#allocation183_spill] sm:$0xff] %v7022_v54  ;;  %v711_v31 = vld [vmem:[#allocation7 + $0x3c8] sm:$0xff]  ;;  %v713_v61 = vld [vmem:[#allocation7 + $0x3d8] sm:$0xff] }
  0xe9   :  { %4763 = vmatprep.subr.bf16.mxu1 %v6998_v36  ;;  %v708_v36 = vld [vmem:[#allocation7 + $0x3b0] sm:$0xff]  ;;  %v717_v45 = vld [vmem:[#allocation7 + $0x3f8] sm:$0xff] }
  0xea   :  { %8860 = vst [vmem:[#allocation180_spill] sm:$0xff] %v7013_v55  ;;  %8862 = vst [vmem:[#allocation182_spill] sm:$0xff] %v7019_v40  ;;  %v7029_v28 = vpack.c.bf16 %v708_v36, %v704_v47  ;;  %v7034_v27 = vpack.c.bf16 %v717_v45, %v713_v61  ;;  %v725_v61 = vld [vmem:[#allocation7 + $0x438] sm:$0xff] }
  0xeb   :  { %4637 = vmatpush1.bf16.msra.mxu0 %v7001_v57  ;;  %v715_v57 = vld [vmem:[#allocation7 + $0x3e8] sm:$0xff] }
  0xec   :  { %4765 = vmatpush1.bf16.msra.mxu1 %v7005_v59  ;;  %4639 = vmatprep.subr.bf16.mxu0 %v7007_v13  ;;  %v7025_v59 = vpack.c.bf16 %v706_v11, %v702_v2  ;;  %8865 = vst [vmem:[#allocation185_spill] sm:$0xff] %v7029_v28  ;;  %v7031_v10 = vpack.c.bf16 %v715_v57, %v711_v31  ;;  %8867 = vst [vmem:[#allocation187_spill] sm:$0xff] %v7034_v27  ;;  %v719_v57 = vld [vmem:[#allocation7 + $0x408] sm:$0xff]  ;;  %v721_v11 = vld [vmem:[#allocation7 + $0x418] sm:$0xff] }
  0xed   :  { %4767 = vmatprep.subr.bf16.mxu1 %v7010_v60  ;;  %v716_v60 = vld [vmem:[#allocation7 + $0x3f0] sm:$0xff]  ;;  %v7037_v2 = vpack.c.bf16 %v714_v44, %v710_v20  ;;  %v723_v31 = vld [vmem:[#allocation7 + $0x428] sm:$0xff]  ;;  %v7048_v45 = vpack.c.bf16 %v725_v61, %v721_v11  ;;  %v722_v20 = vld [vmem:[#allocation7 + $0x420] sm:$0xff] }
  0xee   :  { %8864 = vst [vmem:[#allocation184_spill] sm:$0xff] %v7025_v59  ;;  %8866 = vst [vmem:[#allocation186_spill] sm:$0xff] %v7031_v10  ;;  %v7041_v36 = vpack.c.bf16 %v716_v60, %v712_v22  ;;  %v7046_v47 = vpack.c.bf16 %v723_v31, %v719_v57  ;;  %v718_v60 = vld [vmem:[#allocation7 + $0x400] sm:$0xff]  ;;  %v720_v44 = vld [vmem:[#allocation7 + $0x410] sm:$0xff] }
  0xef   :  { %4641 = vmatpush1.bf16.msra.mxu0 %v7013_v55  ;;  %8868 = vst [vmem:[#allocation188_spill] sm:$0xff] %v7037_v2  ;;  %8871 = vst [vmem:[#allocation191_spill] sm:$0xff] %v7048_v45  ;;  %v724_v22 = vld [vmem:[#allocation7 + $0x430] sm:$0xff]  ;;  %v726_v31 = vld [vmem:[#allocation7 + $0x440] sm:$0xff] }
  0xf0   :  { %4769 = vmatpush1.bf16.msra.mxu1 %v7017_v29  ;;  %4643 = vmatprep.subr.bf16.mxu0 %v7019_v40  ;;  %8869 = vst [vmem:[#allocation189_spill] sm:$0xff] %v7041_v36  ;;  %8870 = vst [vmem:[#allocation190_spill] sm:$0xff] %v7046_v47  ;;  %v7054_v57 = vpack.c.bf16 %v724_v22, %v720_v44  ;;  %v730_v11 = vld [vmem:[#allocation7 + $0x460] sm:$0xff]  ;;  %v735_v40 = vld [vmem:[#allocation7 + $0x488] sm:$0xff] }
  0xf1   :  { %4771 = vmatprep.subr.bf16.mxu1 %v7022_v54  ;;  %v728_v54 = vld [vmem:[#allocation7 + $0x450] sm:$0xff]  ;;  %v7064_v44 = vpack.c.bf16 %v730_v11, %v726_v31  ;;  %v745_v31 = vld [vmem:[#allocation7 + $0x4d8] sm:$0xff] }
  0xf2   :  { %8873 = vst [vmem:[#allocation193_spill] sm:$0xff] %v7054_v57  ;;  %v749_v11 = vld [vmem:[#allocation7 + $0x4f8] sm:$0xff] }
  0xf3   :  { %4645 = vmatpush1.bf16.msra.mxu0 %v7025_v59  ;;  %v7052_v59 = vpack.c.bf16 %v722_v20, %v718_v60  ;;  %v737_v60 = vld [vmem:[#allocation7 + $0x498] sm:$0xff]  ;;  %8876 = vst [vmem:[#allocation196_spill] sm:$0xff] %v7064_v44 }
  0xf4   :  { %4773 = vmatpush1.bf16.msra.mxu1 %v7029_v28  ;;  %4647 = vmatprep.subr.bf16.mxu0 %v7031_v10  ;;  %v729_v10 = vld [vmem:[#allocation7 + $0x458] sm:$0xff] }
  0xf5   :  { %4775 = vmatprep.subr.bf16.mxu1 %v7034_v27  ;;  %v727_v27 = vld [vmem:[#allocation7 + $0x448] sm:$0xff]  ;;  %8872 = vst [vmem:[#allocation192_spill] sm:$0xff] %v7052_v59  ;;  %v741_v20 = vld [vmem:[#allocation7 + $0x4b8] sm:$0xff] }
  0xf7   :  { %4649 = vmatpush1.bf16.msra.mxu0 %v7037_v2  ;;  %v731_v2 = vld [vmem:[#allocation7 + $0x468] sm:$0xff] }
  0xf8   :  { %4777 = vmatpush1.bf16.msra.mxu1 %v7041_v36  ;;  %4651 = vmatprep.subr.bf16.mxu0 %v7046_v47  ;;  %v733_v36 = vld [vmem:[#allocation7 + $0x478] sm:$0xff]  ;;  %v7058_v55 = vpack.c.bf16 %v731_v2, %v727_v27  ;;  %v7068_v27 = vpack.c.bf16 %v739_v24, %v735_v40  ;;  %v736_v2 = vld [vmem:[#allocation7 + $0x490] sm:$0xff]  ;;  %v746_v40 = vld [vmem:[#allocation7 + $0x4e0] sm:$0xff] }
  0xf9   :  { %4779 = vmatprep.subr.bf16.mxu1 %v7048_v45  ;;  %v732_v45 = vld [vmem:[#allocation7 + $0x470] sm:$0xff]  ;;  %v7060_v13 = vpack.c.bf16 %v733_v36, %v729_v10  ;;  %v7070_v10 = vpack.c.bf16 %v741_v20, %v737_v60  ;;  %v7084_v60 = vpack.c.bf16 %v749_v11, %v745_v31 }
  0xfa   :  { %8874 = vst [vmem:[#allocation194_spill] sm:$0xff] %v7058_v55  ;;  %v7066_v22 = vpack.c.bf16 %v732_v45, %v728_v54  ;;  %8878 = vst [vmem:[#allocation198_spill] sm:$0xff] %v7068_v27  ;;  %v740_v36 = vld [vmem:[#allocation7 + $0x4b0] sm:$0xff]  ;;  %v7076_v54 = vpack.c.bf16 %v738_v46, %v734_v42 }
  0xfb   :  { %8875 = vst [vmem:[#allocation195_spill] sm:$0xff] %v7060_v13  ;;  %8879 = vst [vmem:[#allocation199_spill] sm:$0xff] %v7070_v10  ;;  %v7078_v24 = vpack.c.bf16 %v740_v36, %v736_v2  ;;  %v744_v20 = vld [vmem:[#allocation7 + $0x4d0] sm:$0xff]  ;;  %v750_v2 = vld [vmem:[#allocation7 + $0x500] sm:$0xff] }
  0xfc   :  { %8877 = vst [vmem:[#allocation197_spill] sm:$0xff] %v7066_v22  ;;  %8880 = vst [vmem:[#allocation200_spill] sm:$0xff] %v7076_v54  ;;  %v754_v36 = vld [vmem:[#allocation7 + $0x520] sm:$0xff]  ;;  %v752_v31 = vld [vmem:[#allocation7 + $0x510] sm:$0xff] }
  0xfd   :  { %8881 = vst [vmem:[#allocation201_spill] sm:$0xff] %v7078_v24  ;;  %8883 = vst [vmem:[#allocation203_spill] sm:$0xff] %v7084_v60  ;;  %v756_v11 = vld [vmem:[#allocation7 + $0x530] sm:$0xff] }
 0x18d   :  { %v1084_v28 = vpop.f32.mrb[0].mxu0 }
 0x18e   :  { %v7056_v61 = vpop.f32.mrb[0].mxu1  ;;  %v1086_v47 = vpop.f32.mrb[1].mxu0 }
 0x18f   :  { %v1228_v29 = vpop.f32.mrb[1].mxu1  ;;  %1316 = vmatprep.mubr.f32.mxu0 %v1086_v47  ;;  %1458 = vmatprep.mubr.f32.mxu1 %v1086_v47  ;;  %v743_v47 = vld [vmem:[#allocation7 + $0x4c8] sm:$0xff] }
 0x190   :  { %1317 = vmatmul.mubr.f32.vlgmr.msra.gmra.mrb[2].mxu0 %v1084_v28  ;;  %1459 = vmatmul.mubr.f32.vlgmr.msra.gmra.mrb[2].mxu1 %v1084_v28  ;;  %v747_v28 = vld [vmem:[#allocation7 + $0x4e8] sm:$0xff] }
 0x191   :  { %4653 = vmatpush1.bf16.msra.mxu0 %v7052_v59  ;;  %4781 = vmatpush1.bf16.msra.mxu1 %v7054_v57  ;;  %v7082_v45 = vpack.c.bf16 %v747_v28, %v743_v47  ;;  %v753_v57 = vld [vmem:[#allocation7 + $0x518] sm:$0xff] }
 0x192   :  { %1387 = vmatprep.mubr.f32.mxu0 %v1228_v29  ;;  %1529 = vmatprep.mubr.f32.mxu1 %v1228_v29  ;;  %v742_v29 = vld [vmem:[#allocation7 + $0x4c0] sm:$0xff] }
 0x193   :  { %4655 = vmatprep.subr.bf16.mxu0 %v7058_v55  ;;  %4783 = vmatprep.subr.bf16.mxu1 %v7060_v13  ;;  %8882 = vst [vmem:[#allocation202_spill] sm:$0xff] %v7082_v45  ;;  %v748_v13 = vld [vmem:[#allocation7 + $0x4f0] sm:$0xff]  ;;  %v751_v55 = vld [vmem:[#allocation7 + $0x508] sm:$0xff]  ;;  %v7088_v46 = vpack.c.bf16 %v746_v40, %v742_v29  ;;  %v7102_v29 = vpack.c.bf16 %v756_v11, %v752_v31  ;;  %v758_v40 = vld [vmem:[#allocation7 + $0x540] sm:$0xff] }
 0x194   :  { %v7090_v42 = vpack.c.bf16 %v748_v13, %v744_v20  ;;  %v7100_v13 = vpack.c.bf16 %v754_v36, %v750_v2  ;;  %v762_v20 = vld [vmem:[#allocation7 + $0x560] sm:$0xff] }
 0x195   :  { %4657 = vmatpush1.bf16.msra.mxu0 %v7064_v44  ;;  %4785 = vmatpush1.bf16.msra.mxu1 %v7066_v22  ;;  %v755_v44 = vld [vmem:[#allocation7 + $0x528] sm:$0xff]  ;;  %v757_v22 = vld [vmem:[#allocation7 + $0x538] sm:$0xff]  ;;  %8884 = vst [vmem:[#allocation204_spill] sm:$0xff] %v7088_v46  ;;  %8889 = vst [vmem:[#allocation209_spill] sm:$0xff] %v7102_v29  ;;  %v7112_v2 = vpack.c.bf16 %v762_v20, %v758_v40 }
 0x196   :  { %4659 = vmatprep.subr.bf16.mxu0 %v7068_v27  ;;  %4787 = vmatprep.subr.bf16.mxu1 %v7070_v10  ;;  %8885 = vst [vmem:[#allocation205_spill] sm:$0xff] %v7090_v42  ;;  %v7094_v47 = vpack.c.bf16 %v755_v44, %v751_v55  ;;  %v7096_v28 = vpack.c.bf16 %v757_v22, %v753_v57  ;;  %v759_v10 = vld [vmem:[#allocation7 + $0x548] sm:$0xff]  ;;  %v761_v27 = vld [vmem:[#allocation7 + $0x558] sm:$0xff]  ;;  %8888 = vst [vmem:[#allocation208_spill] sm:$0xff] %v7100_v13 }
 0x197   :  { %v760_v44 = vld [vmem:[#allocation7 + $0x550] sm:$0xff]  ;;  %8892 = vst [vmem:[#allocation212_spill] sm:$0xff] %v7112_v2  ;;  %v766_v31 = vld [vmem:[#allocation7 + $0x580] sm:$0xff] }
 0x198   :  { %8886 = vst [vmem:[#allocation206_spill] sm:$0xff] %v7094_v47  ;;  %8887 = vst [vmem:[#allocation207_spill] sm:$0xff] %v7096_v28  ;;  %v764_v22 = vld [vmem:[#allocation7 + $0x570] sm:$0xff]  ;;  %v770_v11 = vld [vmem:[#allocation7 + $0x5a0] sm:$0xff] }
 0x199   :  { %4661 = vmatpush1.bf16.msra.mxu0 %v7076_v54  ;;  %4789 = vmatpush1.bf16.msra.mxu1 %v7078_v24  ;;  %v763_v54 = vld [vmem:[#allocation7 + $0x568] sm:$0xff]  ;;  %v765_v24 = vld [vmem:[#allocation7 + $0x578] sm:$0xff]  ;;  %v7114_v36 = vpack.c.bf16 %v764_v22, %v760_v44  ;;  %v7124_v40 = vpack.c.bf16 %v770_v11, %v766_v31  ;;  %v774_v44 = vld [vmem:[#allocation7 + $0x5c0] sm:$0xff] }
 0x19a   :  { %4663 = vmatprep.subr.bf16.mxu0 %v7082_v45  ;;  %4791 = vmatprep.subr.bf16.mxu1 %v7084_v60  ;;  %v7106_v55 = vpack.c.bf16 %v763_v54, %v759_v10  ;;  %v7108_v57 = vpack.c.bf16 %v765_v24, %v761_v27  ;;  %v767_v60 = vld [vmem:[#allocation7 + $0x588] sm:$0xff]  ;;  %v769_v45 = vld [vmem:[#allocation7 + $0x598] sm:$0xff]  ;;  %v768_v54 = vld [vmem:[#allocation7 + $0x590] sm:$0xff] }
 0x19b   :  { %8893 = vst [vmem:[#allocation213_spill] sm:$0xff] %v7114_v36  ;;  %v772_v24 = vld [vmem:[#allocation7 + $0x5b0] sm:$0xff]  ;;  %8896 = vst [vmem:[#allocation216_spill] sm:$0xff] %v7124_v40  ;;  %v778_v22 = vld [vmem:[#allocation7 + $0x5e0] sm:$0xff] }
 0x19c   :  { %8890 = vst [vmem:[#allocation210_spill] sm:$0xff] %v7106_v55  ;;  %8891 = vst [vmem:[#allocation211_spill] sm:$0xff] %v7108_v57  ;;  %v7126_v20 = vpack.c.bf16 %v772_v24, %v768_v54  ;;  %v7136_v31 = vpack.c.bf16 %v778_v22, %v774_v44  ;;  %v782_v54 = vld [vmem:[#allocation7 + $0x600] sm:$0xff] }
 0x19d   :  { %4665 = vmatpush1.bf16.msra.mxu0 %v7088_v46  ;;  %4793 = vmatpush1.bf16.msra.mxu1 %v7090_v42  ;;  %v771_v46 = vld [vmem:[#allocation7 + $0x5a8] sm:$0xff]  ;;  %v773_v42 = vld [vmem:[#allocation7 + $0x5b8] sm:$0xff]  ;;  %v786_v24 = vld [vmem:[#allocation7 + $0x620] sm:$0xff] }
 0x19e   :  { %4667 = vmatprep.subr.bf16.mxu0 %v7094_v47  ;;  %4795 = vmatprep.subr.bf16.mxu1 %v7096_v28  ;;  %v7118_v27 = vpack.c.bf16 %v771_v46, %v767_v60  ;;  %v7120_v10 = vpack.c.bf16 %v773_v42, %v769_v45  ;;  %v775_v28 = vld [vmem:[#allocation7 + $0x5c8] sm:$0xff]  ;;  %v777_v47 = vld [vmem:[#allocation7 + $0x5d8] sm:$0xff]  ;;  %8897 = vst [vmem:[#allocation217_spill] sm:$0xff] %v7126_v20  ;;  %v776_v46 = vld [vmem:[#allocation7 + $0x5d0] sm:$0xff] }
 0x19f   :  { %v780_v42 = vld [vmem:[#allocation7 + $0x5f0] sm:$0xff]  ;;  %8900 = vst [vmem:[#allocation220_spill] sm:$0xff] %v7136_v31  ;;  %v7148_v44 = vpack.c.bf16 %v786_v24, %v782_v54 }
 0x1a0   :  { %8894 = vst [vmem:[#allocation214_spill] sm:$0xff] %v7118_v27  ;;  %8895 = vst [vmem:[#allocation215_spill] sm:$0xff] %v7120_v10  ;;  %v7138_v11 = vpack.c.bf16 %v780_v42, %v776_v46  ;;  %v790_v46 = vld [vmem:[#allocation7 + $0x640] sm:$0xff] }
 0x1a1   :  { %4669 = vmatpush1.bf16.msra.mxu0 %v7100_v13  ;;  %4797 = vmatpush1.bf16.msra.mxu1 %v7102_v29  ;;  %v779_v13 = vld [vmem:[#allocation7 + $0x5e8] sm:$0xff]  ;;  %v781_v29 = vld [vmem:[#allocation7 + $0x5f8] sm:$0xff]  ;;  %8904 = vst [vmem:[#allocation224_spill] sm:$0xff] %v7148_v44  ;;  %v794_v42 = vld [vmem:[#allocation7 + $0x660] sm:$0xff] }
 0x1a2   :  { %4671 = vmatprep.subr.bf16.mxu0 %v7106_v55  ;;  %4799 = vmatprep.subr.bf16.mxu1 %v7108_v57  ;;  %v7130_v45 = vpack.c.bf16 %v779_v13, %v775_v28  ;;  %v7132_v60 = vpack.c.bf16 %v781_v29, %v777_v47  ;;  %v783_v57 = vld [vmem:[#allocation7 + $0x608] sm:$0xff]  ;;  %v785_v55 = vld [vmem:[#allocation7 + $0x618] sm:$0xff]  ;;  %8901 = vst [vmem:[#allocation221_spill] sm:$0xff] %v7138_v11  ;;  %v784_v13 = vld [vmem:[#allocation7 + $0x610] sm:$0xff] }
 0x1a3   :  { %v788_v29 = vld [vmem:[#allocation7 + $0x630] sm:$0xff]  ;;  %v7160_v54 = vpack.c.bf16 %v794_v42, %v790_v46 }
 0x1a4   :  { %8898 = vst [vmem:[#allocation218_spill] sm:$0xff] %v7130_v45  ;;  %8899 = vst [vmem:[#allocation219_spill] sm:$0xff] %v7132_v60  ;;  %v7150_v22 = vpack.c.bf16 %v788_v29, %v784_v13  ;;  %v798_v13 = vld [vmem:[#allocation7 + $0x680] sm:$0xff] }
 0x1a5   :  { %4673 = vmatpush1.bf16.msra.mxu0 %v7112_v2  ;;  %4801 = vmatpush1.bf16.msra.mxu1 %v7114_v36  ;;  %v787_v2 = vld [vmem:[#allocation7 + $0x628] sm:$0xff]  ;;  %v789_v36 = vld [vmem:[#allocation7 + $0x638] sm:$0xff]  ;;  %8908 = vst [vmem:[#allocation228_spill] sm:$0xff] %v7160_v54  ;;  %v802_v29 = vld [vmem:[#allocation7 + $0x6a0] sm:$0xff] }
 0x1a6   :  { %4675 = vmatprep.subr.bf16.mxu0 %v7118_v27  ;;  %4803 = vmatprep.subr.bf16.mxu1 %v7120_v10  ;;  %v7142_v47 = vpack.c.bf16 %v787_v2, %v783_v57  ;;  %v7144_v28 = vpack.c.bf16 %v789_v36, %v785_v55  ;;  %v791_v10 = vld [vmem:[#allocation7 + $0x648] sm:$0xff]  ;;  %v793_v27 = vld [vmem:[#allocation7 + $0x658] sm:$0xff]  ;;  %8905 = vst [vmem:[#allocation225_spill] sm:$0xff] %v7150_v22  ;;  %v792_v2 = vld [vmem:[#allocation7 + $0x650] sm:$0xff] }
 0x1a7   :  { %v796_v36 = vld [vmem:[#allocation7 + $0x670] sm:$0xff]  ;;  %v7172_v46 = vpack.c.bf16 %v802_v29, %v798_v13 }
 0x1a8   :  { %8902 = vst [vmem:[#allocation222_spill] sm:$0xff] %v7142_v47  ;;  %8903 = vst [vmem:[#allocation223_spill] sm:$0xff] %v7144_v28  ;;  %v7162_v24 = vpack.c.bf16 %v796_v36, %v792_v2  ;;  %v806_v2 = vld [vmem:[#allocation7 + $0x6c0] sm:$0xff] }
 0x1a9   :  { %4677 = vmatpush1.bf16.msra.mxu0 %v7124_v40  ;;  %4805 = vmatpush1.bf16.msra.mxu1 %v7126_v20  ;;  %v795_v40 = vld [vmem:[#allocation7 + $0x668] sm:$0xff]  ;;  %v797_v20 = vld [vmem:[#allocation7 + $0x678] sm:$0xff]  ;;  %8912 = vst [vmem:[#allocation232_spill] sm:$0xff] %v7172_v46  ;;  %v810_v36 = vld [vmem:[#allocation7 + $0x6e0] sm:$0xff] }
 0x1aa   :  { %4679 = vmatprep.subr.bf16.mxu0 %v7130_v45  ;;  %4807 = vmatprep.subr.bf16.mxu1 %v7132_v60  ;;  %v7154_v55 = vpack.c.bf16 %v795_v40, %v791_v10  ;;  %v7156_v57 = vpack.c.bf16 %v797_v20, %v793_v27  ;;  %v799_v60 = vld [vmem:[#allocation7 + $0x688] sm:$0xff]  ;;  %v801_v45 = vld [vmem:[#allocation7 + $0x698] sm:$0xff]  ;;  %8909 = vst [vmem:[#allocation229_spill] sm:$0xff] %v7162_v24  ;;  %v800_v40 = vld [vmem:[#allocation7 + $0x690] sm:$0xff] }
 0x1ab   :  { %v804_v20 = vld [vmem:[#allocation7 + $0x6b0] sm:$0xff]  ;;  %v7184_v13 = vpack.c.bf16 %v810_v36, %v806_v2 }
 0x1ac   :  { %8906 = vst [vmem:[#allocation226_spill] sm:$0xff] %v7154_v55  ;;  %8907 = vst [vmem:[#allocation227_spill] sm:$0xff] %v7156_v57  ;;  %v7174_v42 = vpack.c.bf16 %v804_v20, %v800_v40  ;;  %v814_v40 = vld [vmem:[#allocation7 + $0x700] sm:$0xff] }
 0x1ad   :  { %4681 = vmatpush1.bf16.msra.mxu0 %v7136_v31  ;;  %4809 = vmatpush1.bf16.msra.mxu1 %v7138_v11  ;;  %v803_v31 = vld [vmem:[#allocation7 + $0x6a8] sm:$0xff]  ;;  %v805_v11 = vld [vmem:[#allocation7 + $0x6b8] sm:$0xff]  ;;  %8916 = vst [vmem:[#allocation236_spill] sm:$0xff] %v7184_v13  ;;  %v818_v20 = vld [vmem:[#allocation7 + $0x720] sm:$0xff] }
 0x1ae   :  { %4683 = vmatprep.subr.bf16.mxu0 %v7142_v47  ;;  %4811 = vmatprep.subr.bf16.mxu1 %v7144_v28  ;;  %v7166_v27 = vpack.c.bf16 %v803_v31, %v799_v60  ;;  %v7168_v10 = vpack.c.bf16 %v805_v11, %v801_v45  ;;  %v807_v28 = vld [vmem:[#allocation7 + $0x6c8] sm:$0xff]  ;;  %v809_v47 = vld [vmem:[#allocation7 + $0x6d8] sm:$0xff]  ;;  %8913 = vst [vmem:[#allocation233_spill] sm:$0xff] %v7174_v42  ;;  %v808_v31 = vld [vmem:[#allocation7 + $0x6d0] sm:$0xff] }
 0x1af   :  { %v812_v11 = vld [vmem:[#allocation7 + $0x6f0] sm:$0xff]  ;;  %v7196_v2 = vpack.c.bf16 %v818_v20, %v814_v40 }
 0x1b0   :  { %8910 = vst [vmem:[#allocation230_spill] sm:$0xff] %v7166_v27  ;;  %8911 = vst [vmem:[#allocation231_spill] sm:$0xff] %v7168_v10  ;;  %v7186_v29 = vpack.c.bf16 %v812_v11, %v808_v31  ;;  %v822_v31 = vld [vmem:[#allocation7 + $0x740] sm:$0xff] }
 0x1b1   :  { %4685 = vmatpush1.bf16.msra.mxu0 %v7148_v44  ;;  %4813 = vmatpush1.bf16.msra.mxu1 %v7150_v22  ;;  %v811_v44 = vld [vmem:[#allocation7 + $0x6e8] sm:$0xff]  ;;  %v813_v22 = vld [vmem:[#allocation7 + $0x6f8] sm:$0xff]  ;;  %8920 = vst [vmem:[#allocation240_spill] sm:$0xff] %v7196_v2  ;;  %v826_v11 = vld [vmem:[#allocation7 + $0x760] sm:$0xff] }
 0x1b2   :  { %4687 = vmatprep.subr.bf16.mxu0 %v7154_v55  ;;  %4815 = vmatprep.subr.bf16.mxu1 %v7156_v57  ;;  %v7178_v45 = vpack.c.bf16 %v811_v44, %v807_v28  ;;  %v7180_v60 = vpack.c.bf16 %v813_v22, %v809_v47  ;;  %v815_v57 = vld [vmem:[#allocation7 + $0x708] sm:$0xff]  ;;  %v817_v55 = vld [vmem:[#allocation7 + $0x718] sm:$0xff]  ;;  %8917 = vst [vmem:[#allocation237_spill] sm:$0xff] %v7186_v29  ;;  %v816_v44 = vld [vmem:[#allocation7 + $0x710] sm:$0xff] }
 0x1b3   :  { %v820_v22 = vld [vmem:[#allocation7 + $0x730] sm:$0xff]  ;;  %v7208_v40 = vpack.c.bf16 %v826_v11, %v822_v31 }
 0x1b4   :  { %8914 = vst [vmem:[#allocation234_spill] sm:$0xff] %v7178_v45  ;;  %8915 = vst [vmem:[#allocation235_spill] sm:$0xff] %v7180_v60  ;;  %v7198_v36 = vpack.c.bf16 %v820_v22, %v816_v44  ;;  %v830_v44 = vld [vmem:[#allocation7 + $0x780] sm:$0xff] }
 0x1b5   :  { %4689 = vmatpush1.bf16.msra.mxu0 %v7160_v54  ;;  %4817 = vmatpush1.bf16.msra.mxu1 %v7162_v24  ;;  %v819_v54 = vld [vmem:[#allocation7 + $0x728] sm:$0xff]  ;;  %v821_v24 = vld [vmem:[#allocation7 + $0x738] sm:$0xff]  ;;  %8924 = vst [vmem:[#allocation244_spill] sm:$0xff] %v7208_v40  ;;  %v834_v22 = vld [vmem:[#allocation7 + $0x7a0] sm:$0xff] }
 0x1b6   :  { %4691 = vmatprep.subr.bf16.mxu0 %v7166_v27  ;;  %4819 = vmatprep.subr.bf16.mxu1 %v7168_v10  ;;  %v7190_v47 = vpack.c.bf16 %v819_v54, %v815_v57  ;;  %v7192_v28 = vpack.c.bf16 %v821_v24, %v817_v55  ;;  %v823_v10 = vld [vmem:[#allocation7 + $0x748] sm:$0xff]  ;;  %v825_v27 = vld [vmem:[#allocation7 + $0x758] sm:$0xff]  ;;  %8921 = vst [vmem:[#allocation241_spill] sm:$0xff] %v7198_v36  ;;  %v824_v54 = vld [vmem:[#allocation7 + $0x750] sm:$0xff] }
 0x1b7   :  { %v828_v24 = vld [vmem:[#allocation7 + $0x770] sm:$0xff]  ;;  %v7220_v31 = vpack.c.bf16 %v834_v22, %v830_v44  ;;  %v867_v44 = vld [vmem:[%s8294_s8 + $0x88] sm:$0xff]  ;;  %v898_v22 = vld [vmem:[%s8294_s8 + $0x180] sm:$0xff] }
 0x1b8   :  { %8918 = vst [vmem:[#allocation238_spill] sm:$0xff] %v7190_v47  ;;  %8919 = vst [vmem:[#allocation239_spill] sm:$0xff] %v7192_v28  ;;  %v7210_v20 = vpack.c.bf16 %v828_v24, %v824_v54  ;;  %v838_v54 = vld [vmem:[#allocation7 + $0x7c0] sm:$0xff] }
 0x1b9   :  { %4693 = vmatpush1.bf16.msra.mxu0 %v7172_v46  ;;  %4821 = vmatpush1.bf16.msra.mxu1 %v7174_v42  ;;  %v827_v46 = vld [vmem:[#allocation7 + $0x768] sm:$0xff]  ;;  %v829_v42 = vld [vmem:[#allocation7 + $0x778] sm:$0xff]  ;;  %8928 = vst [vmem:[#allocation248_spill] sm:$0xff] %v7220_v31  ;;  %v842_v24 = vld [vmem:[#allocation7 + $0x7e0] sm:$0xff] }
 0x1ba   :  { %4695 = vmatprep.subr.bf16.mxu0 %v7178_v45  ;;  %4823 = vmatprep.subr.bf16.mxu1 %v7180_v60  ;;  %v7202_v55 = vpack.c.bf16 %v827_v46, %v823_v10  ;;  %v7204_v57 = vpack.c.bf16 %v829_v42, %v825_v27  ;;  %v831_v60 = vld [vmem:[#allocation7 + $0x788] sm:$0xff]  ;;  %v833_v45 = vld [vmem:[#allocation7 + $0x798] sm:$0xff]  ;;  %8925 = vst [vmem:[#allocation245_spill] sm:$0xff] %v7210_v20  ;;  %v832_v46 = vld [vmem:[#allocation7 + $0x790] sm:$0xff] }
 0x1bb   :  { %v836_v42 = vld [vmem:[#allocation7 + $0x7b0] sm:$0xff] }
 0x1bc   :  { %8922 = vst [vmem:[#allocation242_spill] sm:$0xff] %v7202_v55  ;;  %8923 = vst [vmem:[#allocation243_spill] sm:$0xff] %v7204_v57  ;;  %v7222_v11 = vpack.c.bf16 %v836_v42, %v832_v46  ;;  %v851_v46 = vld [vmem:[%s8294_s8 + $0x8] sm:$0xff] }
 0x1bd   :  { %4697 = vmatpush1.bf16.msra.mxu0 %v7184_v13  ;;  %4825 = vmatpush1.bf16.msra.mxu1 %v7186_v29  ;;  %v835_v13 = vld [vmem:[#allocation7 + $0x7a8] sm:$0xff]  ;;  %v837_v29 = vld [vmem:[#allocation7 + $0x7b8] sm:$0xff] }
 0x1be   :  { %4699 = vmatprep.subr.bf16.mxu0 %v7190_v47  ;;  %4827 = vmatprep.subr.bf16.mxu1 %v7192_v28  ;;  %v7214_v27 = vpack.c.bf16 %v835_v13, %v831_v60  ;;  %v7216_v10 = vpack.c.bf16 %v837_v29, %v833_v45  ;;  %v839_v28 = vld [vmem:[#allocation7 + $0x7c8] sm:$0xff]  ;;  %v841_v47 = vld [vmem:[#allocation7 + $0x7d8] sm:$0xff]  ;;  %8929 = vst [vmem:[#allocation249_spill] sm:$0xff] %v7222_v11  ;;  %v840_v13 = vld [vmem:[#allocation7 + $0x7d0] sm:$0xff] }
 0x1bf   :  { %v844_v29 = vld [vmem:[#allocation7 + $0x7f0] sm:$0xff] }
 0x1c0   :  { %8926 = vst [vmem:[#allocation246_spill] sm:$0xff] %v7214_v27  ;;  %8927 = vst [vmem:[#allocation247_spill] sm:$0xff] %v7216_v10 }
 0x1c1   :  { %4701 = vmatpush1.bf16.msra.mxu0 %v7196_v2  ;;  %4829 = vmatpush1.bf16.msra.mxu1 %v7198_v36  ;;  %v843_v2 = vld [vmem:[#allocation7 + $0x7e8] sm:$0xff]  ;;  %v845_v36 = vld [vmem:[#allocation7 + $0x7f8] sm:$0xff] }
 0x1c2   :  { %4703 = vmatprep.subr.bf16.mxu0 %v7202_v55  ;;  %4831 = vmatprep.subr.bf16.mxu1 %v7204_v57  ;;  %v7226_v45 = vpack.c.bf16 %v843_v2, %v839_v28  ;;  %v7228_v60 = vpack.c.bf16 %v845_v36, %v841_v47  ;;  %v899_v28 = vld [vmem:[%s8294_s8 + $0x188] sm:$0xff]  ;;  %v7244_v47 = vpack.c.bf16 %v842_v24, %v838_v54  ;;  %v850_v36 = vld [vmem:[%s8294_s8] sm:$0xff]  ;;  %v857_v57 = vld [vmem:[%s8294_s8 + $0x38] sm:$0xff] }
 0x1c3   :  { %v7246_v2 = vpack.c.bf16 %v844_v29, %v840_v13  ;;  %v882_v54 = vld [vmem:[%s8294_s8 + $0x100] sm:$0xff]  ;;  %v883_v24 = vld [vmem:[%s8294_s8 + $0x108] sm:$0xff]  ;;  %v868_v13 = vld [vmem:[%s8294_s8 + $0x90] sm:$0xff] }
 0x1c4   :  { %8930 = vst [vmem:[#allocation250_spill] sm:$0xff] %v7226_v45  ;;  %8931 = vst [vmem:[#allocation251_spill] sm:$0xff] %v7228_v60  ;;  %v869_v29 = vld [vmem:[%s8294_s8 + $0x98] sm:$0xff] }
 0x1c5   :  { %4705 = vmatpush1.bf16.msra.mxu0 %v7208_v40  ;;  %4833 = vmatpush1.bf16.msra.mxu1 %v7210_v20  ;;  %v866_v20 = vld [vmem:[%s8294_s8 + $0x80] sm:$0xff]  ;;  %8932 = vst [vmem:[#allocation252_spill] sm:$0xff] %v7244_v47  ;;  %8933 = vst [vmem:[#allocation253_spill] sm:$0xff] %v7246_v2  ;;  %v856_v40 = vld [vmem:[%s8294_s8 + $0x30] sm:$0xff] }
 0x1c6   :  { %4707 = vmatprep.subr.bf16.mxu0 %v7214_v27  ;;  %4835 = vmatprep.subr.bf16.mxu1 %v7216_v10  ;;  %v7256_v42 = vpack.c.bf16 %v867_v44, %v866_v20  ;;  %v900_v20 = vld [vmem:[%s8294_s8 + $0x190] sm:$0xff]  ;;  %v901_v44 = vld [vmem:[%s8294_s8 + $0x198] sm:$0xff]  ;;  %v855_v10 = vld [vmem:[%s8294_s8 + $0x28] sm:$0xff] }
 0x1c9   :  { %4709 = vmatpush1.bf16.msra.mxu0 %v7220_v31  ;;  %4837 = vmatpush1.bf16.msra.mxu1 %v7222_v11  ;;  %v7258_v31 = vpack.c.bf16 %v899_v28, %v898_v22  ;;  %v7280_v22 = vpack.c.bf16 %v851_v46, %v850_v36  ;;  %v7282_v28 = vpack.c.bf16 %v883_v24, %v882_v54  ;;  %v884_v36 = vld [vmem:[%s8294_s8 + $0x110] sm:$0xff]  ;;  %v885_v46 = vld [vmem:[%s8294_s8 + $0x118] sm:$0xff]  ;;  %v870_v54 = vld [vmem:[%s8294_s8 + $0xa0] sm:$0xff] }
 0x1ca   :  { %4711 = vmatprep.subr.bf16.mxu0 %v7226_v45  ;;  %4839 = vmatprep.subr.bf16.mxu1 %v7228_v60  ;;  %v852_v60 = vld [vmem:[%s8294_s8 + $0x10] sm:$0xff]  ;;  %v853_v45 = vld [vmem:[%s8294_s8 + $0x18] sm:$0xff]  ;;  %v7292_v11 = vpack.c.bf16 %v869_v29, %v868_v13  ;;  %v871_v24 = vld [vmem:[%s8294_s8 + $0xa8] sm:$0xff] }
 0x1cb   :  { %v902_v13 = vld [vmem:[%s8294_s8 + $0x1a0] sm:$0xff]  ;;  %v903_v29 = vld [vmem:[%s8294_s8 + $0x1a8] sm:$0xff] }
 0x1cc   :  { %v7332_v27 = vpack.c.bf16 %v903_v29, %v902_v13 }
 0x1cd   :  { %4713 = vmatpush1.bf16.msra.mxu0 %v7244_v47  ;;  %4841 = vmatpush1.bf16.msra.mxu1 %v7246_v2  ;;  %v7294_v47 = vpack.c.bf16 %v901_v44, %v900_v20  ;;  %v7318_v20 = vpack.c.bf16 %v853_v45, %v852_v60  ;;  %v7320_v44 = vpack.c.bf16 %v885_v46, %v884_v36  ;;  %v854_v2 = vld [vmem:[%s8294_s8 + $0x20] sm:$0xff]  ;;  %v887_v60 = vld [vmem:[%s8294_s8 + $0x128] sm:$0xff]  ;;  %v872_v36 = vld [vmem:[%s8294_s8 + $0xb0] sm:$0xff] }
 0x1ce   :  { %4843 = vmatprep.subr.bf16.mxu0 %v7256_v42  ;;  %4875 = vmatprep.subr.bf16.mxu1 %v7258_v31  ;;  %v886_v45 = vld [vmem:[%s8294_s8 + $0x120] sm:$0xff]  ;;  %v873_v46 = vld [vmem:[%s8294_s8 + $0xb8] sm:$0xff]  ;;  %v7354_v13 = vpack.c.bf16 %v855_v10, %v854_v2  ;;  %v888_v10 = vld [vmem:[%s8294_s8 + $0x130] sm:$0xff] }
 0x1cf   :  { %v7356_v29 = vpack.c.bf16 %v887_v60, %v886_v45  ;;  %v7366_v55 = vpack.c.bf16 %v873_v46, %v872_v36  ;;  %v889_v2 = vld [vmem:[%s8294_s8 + $0x138] sm:$0xff]  ;;  %v874_v45 = vld [vmem:[%s8294_s8 + $0xc0] sm:$0xff]  ;;  %v875_v60 = vld [vmem:[%s8294_s8 + $0xc8] sm:$0xff] }
 0x1d0   :  { %1388 = vmatmul.mubr.f32.vlgmr.msra.gmra.mrb[2].mxu0 %v7056_v61  ;;  %1530 = vmatmul.mubr.f32.vlgmr.msra.gmra.mrb[2].mxu1 %v7056_v61  ;;  %v7330_v61 = vpack.c.bf16 %v871_v24, %v870_v54  ;;  %v904_v54 = vld [vmem:[%s8294_s8 + $0x1b0] sm:$0xff]  ;;  %v905_v24 = vld [vmem:[%s8294_s8 + $0x1b8] sm:$0xff]  ;;  %v906_v36 = vld [vmem:[%s8294_s8 + $0x1c0] sm:$0xff]  ;;  %v7402_v9 = vpack.c.bf16 %v875_v60, %v874_v45 }
 0x1d1   :  { %4845 = vmatpush3.bf16.msra.mxu0 %v7280_v22  ;;  %4877 = vmatpush3.bf16.msra.mxu1 %v7282_v28  ;;  %v7368_v59 = vpack.c.bf16 %v905_v24, %v904_v54  ;;  %v907_v46 = vld [vmem:[%s8294_s8 + $0x1c8] sm:$0xff]  ;;  %v7390_v54 = vpack.c.bf16 %v857_v57, %v856_v40  ;;  %v7392_v24 = vpack.c.bf16 %v889_v2, %v888_v10  ;;  %v890_v57 = vld [vmem:[%s8294_s8 + $0x140] sm:$0xff]  ;;  %v876_v10 = vld [vmem:[%s8294_s8 + $0xd0] sm:$0xff] }
 0x1d2   :  { %4847 = vmatprep.subr.bf16.mxu0 %v7292_v11  ;;  %4879 = vmatprep.subr.bf16.mxu1 %v7294_v47  ;;  %v7404_v6 = vpack.c.bf16 %v907_v46, %v906_v36  ;;  %v891_v40 = vld [vmem:[%s8294_s8 + $0x148] sm:$0xff]  ;;  %v877_v2 = vld [vmem:[%s8294_s8 + $0xd8] sm:$0xff]  ;;  %v908_v45 = vld [vmem:[%s8294_s8 + $0x1d0] sm:$0xff]  ;;  %v7426_v36 = vpack.c.bf16 %v859_v19, %v858_v37 }
 0x1d3   :  { %v909_v60 = vld [vmem:[%s8294_s8 + $0x1d8] sm:$0xff]  ;;  %v7428_v46 = vpack.c.bf16 %v891_v40, %v890_v57  ;;  %v7438_v53 = vpack.c.bf16 %v877_v2, %v876_v10  ;;  %v892_v19 = vld [vmem:[%s8294_s8 + $0x150] sm:$0xff]  ;;  %v878_v57 = vld [vmem:[%s8294_s8 + $0xe0] sm:$0xff] }
 0x1d4   :  { %v7440_v49 = vpack.c.bf16 %v909_v60, %v908_v45  ;;  %v893_v37 = vld [vmem:[%s8294_s8 + $0x158] sm:$0xff]  ;;  %v879_v40 = vld [vmem:[%s8294_s8 + $0xe8] sm:$0xff]  ;;  %v910_v10 = vld [vmem:[%s8294_s8 + $0x1e0] sm:$0xff]  ;;  %v7462_v45 = vpack.c.bf16 %v861_v58, %v860_v4 }
 0x1d5   :  { %4849 = vmatpush3.bf16.msra.mxu0 %v7318_v20  ;;  %4881 = vmatpush3.bf16.msra.mxu1 %v7320_v44  ;;  %v911_v2 = vld [vmem:[%s8294_s8 + $0x1e8] sm:$0xff]  ;;  %v7464_v60 = vpack.c.bf16 %v893_v37, %v892_v19  ;;  %v7471_v41 = vpack.c.bf16 %v879_v40, %v878_v57  ;;  %v894_v58 = vld [vmem:[%s8294_s8 + $0x160] sm:$0xff]  ;;  %v7486_v19 = vpack.c.bf16 %v863_v33, %v862_v48  ;;  %v880_v57 = vld [vmem:[%s8294_s8 + $0xf0] sm:$0xff] }
 0x1d6   :  { %4851 = vmatprep.subr.bf16.mxu0 %v7330_v61  ;;  %4883 = vmatprep.subr.bf16.mxu1 %v7332_v27  ;;  %v7473_v35 = vpack.c.bf16 %v911_v2, %v910_v10  ;;  %v895_v4 = vld [vmem:[%s8294_s8 + $0x168] sm:$0xff]  ;;  %v881_v40 = vld [vmem:[%s8294_s8 + $0xf8] sm:$0xff]  ;;  %v912_v33 = vld [vmem:[%s8294_s8 + $0x1f0] sm:$0xff] }
 0x1d7   :  { %v7488_v37 = vpack.c.bf16 %v895_v4, %v894_v58  ;;  %v7503_v48 = vpack.c.bf16 %v881_v40, %v880_v57  ;;  %v913_v10 = vld [vmem:[%s8294_s8 + $0x1f8] sm:$0xff]  ;;  %v864_v2 = vld [vmem:[%s8294_s8 + $0x70] sm:$0xff] }
 0x1d8   :  { %v865_v58 = vld [vmem:[%s8294_s8 + $0x78] sm:$0xff]  ;;  %v7514_v4 = vpack.c.bf16 %v913_v10, %v912_v33  ;;  %v896_v57 = vld [vmem:[%s8294_s8 + $0x170] sm:$0xff]  ;;  %v7531_v33 = vsub.s32 1, %v6562_v1  ;;  %v7534_v10 = vsub.s32 3, %v6562_v1 }
 0x1d9   :  { %4853 = vmatpush3.bf16.msra.mxu0 %v7354_v13  ;;  %4885 = vmatpush3.bf16.msra.mxu1 %v7356_v29  ;;  %v7516_v32 = vpack.c.bf16 %v865_v58, %v864_v2  ;;  %v897_v40 = vld [vmem:[%s8294_s8 + $0x178] sm:$0xff]  ;;  %v846_v2 = vld [vmem:[%s8288_s2] sm:$0xf]  ;;  %v7540_v58 = vsub.s32 0, %v6562_v1 }
 0x1da   :  { %4855 = vmatprep.subr.bf16.mxu0 %v7366_v55  ;;  %4887 = vmatprep.subr.bf16.mxu1 %v7368_v59  ;;  %v7525_v23 = vpack.c.bf16 %v897_v40, %v896_v57  ;;  %8934 = vst [vmem:[#allocation254_spill] sm:$0xff] %v7531_v33  ;;  %8935 = vst [vmem:[#allocation255_spill] sm:$0xff] %v7534_v10  ;;  %v7543_v57 = vsub.s32 2, %v6562_v1  ;;  %v7546_v40 = vrot.slane %v846_v2, %v7531_v33 }
 0x1db   :  { %8936 = vst [vmem:[#allocation256_spill] sm:$0xff] %v7540_v58  ;;  %v7549_v18 = vrot.slane %v846_v2, %v7534_v10  ;;  %v7552_v15 = vrot.slane %v846_v2, %v7540_v58 }
 0x1dc   :  { %8937 = vst [vmem:[#allocation257_spill] sm:$0xff] %v7543_v57  ;;  %8938 = vst [vmem:[#allocation258_spill] sm:$0xff] %v7546_v40  ;;  %v7555_v14 = vrot.slane %v846_v2, %v7543_v57  ;;  %v921_v2 = vld [vmem:[%s8295_s9 + $0x38] sm:$0xff] }
 0x1dd   :  { %4857 = vmatpush3.bf16.msra.mxu0 %v7390_v54  ;;  %4889 = vmatpush3.bf16.msra.mxu1 %v7392_v24  ;;  %8939 = vst [vmem:[#allocation259_spill] sm:$0xff] %v7549_v18  ;;  %8940 = vst [vmem:[#allocation260_spill] sm:$0xff] %v7552_v15 }
 0x1de   :  { %4859 = vmatprep.subr.bf16.mxu0 %v7402_v9  ;;  %4891 = vmatprep.subr.bf16.mxu1 %v7404_v6  ;;  %8941 = vst [vmem:[#allocation261_spill] sm:$0xff] %v7555_v14 }
 0x1e1   :  { %4861 = vmatpush3.bf16.msra.mxu0 %v7426_v36  ;;  %4893 = vmatpush3.bf16.msra.mxu1 %v7428_v46 }
 0x1e2   :  { %4863 = vmatprep.subr.bf16.mxu0 %v7438_v53  ;;  %4895 = vmatprep.subr.bf16.mxu1 %v7440_v49 }
 0x1e5   :  { %4865 = vmatpush3.bf16.msra.mxu0 %v7462_v45  ;;  %4897 = vmatpush3.bf16.msra.mxu1 %v7464_v60 }
 0x1e6   :  { %4867 = vmatprep.subr.bf16.mxu0 %v7471_v41  ;;  %4899 = vmatprep.subr.bf16.mxu1 %v7473_v35 }
 0x1e9   :  { %4869 = vmatpush3.bf16.msra.mxu0 %v7486_v19  ;;  %4901 = vmatpush3.bf16.msra.mxu1 %v7488_v37 }
 0x1ea   :  { %4871 = vmatprep.subr.bf16.mxu0 %v7503_v48  ;;  %4903 = vmatprep.subr.bf16.mxu1 %v7514_v4 }
 0x1ed   :  { %4873 = vmatpush3.bf16.msra.mxu0 %v7516_v32  ;;  %4905 = vmatpush3.bf16.msra.mxu1 %v7525_v23 }
 0x2a3   :  { %v1389_v5 = vpop.f32.mrb[2].mxu0  ;;  %v1531_v0 = vpop.f32.mrb[2].mxu1 }
 0x2a4   :  { %v1391_v63 = vpop.f32.mrb[3].mxu0  ;;  %v1533_v62 = vpop.f32.mrb[3].mxu1  ;;  %v7564_v33 = vadd.f32 %v1389_v5, %v7552_v15  ;;  %v7567_v10 = vadd.f32 %v1531_v0, %v7555_v14  ;;  %v917_v0 = vld [vmem:[%s8295_s9 + $0x18] sm:$0xff]  ;;  %v914_v14 = vld [vmem:[%s8295_s9] sm:$0xff] }
 0x2a5   :  { %v7558_v56 = vadd.f32 %v1391_v63, %v7546_v40  ;;  %v7561_v1 = vadd.f32 %v1533_v62, %v7549_v18  ;;  %v915_v63 = vld [vmem:[%s8295_s9 + $0x8] sm:$0xff]  ;;  %v918_v15 = vld [vmem:[%s8295_s9 + $0x20] sm:$0xff]  ;;  %v7593_v18 = vpack.c.bf16 %v921_v2, %v917_v0 }
 0x2a6   :  { %v919_v62 = vld [vmem:[%s8295_s9 + $0x28] sm:$0xff]  ;;  %v7595_v40 = vpack.c.bf16 %v918_v15, %v914_v14  ;;  %v8681_v14 = vmov 0.0  }
 0x2a7   :  { %1600 = vmatprep.mubr.f32.mxu0 %v7558_v56  ;;  %1670 = vmatprep.mubr.f32.mxu1 %v7561_v1  ;;  %v7582_v5 = vpack.c.bf16 %v919_v62, %v915_v63  ;;  %8943 = vst [vmem:[#allocation263_spill] sm:$0xff] %v7593_v18  ;;  %v916_v63 = vld [vmem:[%s8295_s9 + $0x10] sm:$0xff] }
 0x2a8   :  { %1601 = vmatmul.mubr.f32.vlgmr.msra.gmra.mrb[4].mxu0 %v7564_v33  ;;  %1671 = vmatmul.mubr.f32.vlgmr.msra.gmra.mrb[4].mxu1 %v7567_v10  ;;  %v920_v62 = vld [vmem:[%s8295_s9 + $0x30] sm:$0xff] }
 0x2a9   :  { %8942 = vst [vmem:[#allocation262_spill] sm:$0xff] %v7582_v5  ;;  %4907 = vmatprep.subr.bf16.mxu0 %v7582_v5  ;;  %v7604_v57 = vpack.c.bf16 %v920_v62, %v916_v63  ;;  %4911 = vmatprep.subr.bf16.mxu1 %v7593_v18 }
 0x2aa   :  { %4909 = vmatpush1.bf16.msra.mxu0 %v7595_v40  ;;  %1744 = vmatprep.mubr.f32.mxu0 %v8681_v14 }
 0x2ab   :  { %4913 = vmatpush1.bf16.msra.mxu1 %v7604_v57  ;;  %4915 = vmatprep.subr.bf16.mxu0 %v7256_v42 }
 0x2ac   :  { %1815 = vmatprep.mubr.f32.mxu1 %v8681_v14  ;;  %4947 = vmatprep.subr.bf16.mxu1 %v7258_v31 }
 0x37b   :  { %v4082_v15 = vpop.f32.mrb[4].mxu0  ;;  %v4117_v0 = vpop.f32.mrb[4].mxu1 }
 0x37c   :  { %v4083_v2 = vpop.f32.mrb[5].mxu0  ;;  %v4118_v63 = vpop.f32.mrb[5].mxu1 }
 0x37d   :  { %v4084_v62 = vadd.f32 %v4083_v2, %v4082_v15  ;;  %v4119_v58 = vadd.f32 %v4118_v63, %v4117_v0 }
 0x37f   :  { %v1673_v52 = vadd.f32 %v4119_v58, %v4084_v62 }
 0x381   :  { %4042 = vmatmul.mubr.msk.f32.vlgmr.msra.gmra.mrb[6].mxu0 %vm1676_vm0, %v1673_v52  ;;  %4043 = vmatmul.mubr.msk.f32.vlgmr.msra.gmra.mrb[6].mxu1 %vm1676_vm0, %v1673_v52 }
 0x382   :  { %4917 = vmatpush3.bf16.msra.mxu0 %v7280_v22  ;;  %4949 = vmatpush3.bf16.msra.mxu1 %v7282_v28 }
 0x383   :  { %4919 = vmatprep.subr.bf16.mxu0 %v7292_v11  ;;  %4951 = vmatprep.subr.bf16.mxu1 %v7294_v47 }
 0x386   :  { %4921 = vmatpush3.bf16.msra.mxu0 %v7318_v20  ;;  %4953 = vmatpush3.bf16.msra.mxu1 %v7320_v44 }
 0x387   :  { %4923 = vmatprep.subr.bf16.mxu0 %v7330_v61  ;;  %4955 = vmatprep.subr.bf16.mxu1 %v7332_v27 }
 0x38a   :  { %4925 = vmatpush3.bf16.msra.mxu0 %v7354_v13  ;;  %4957 = vmatpush3.bf16.msra.mxu1 %v7356_v29 }
 0x38b   :  { %4927 = vmatprep.subr.bf16.mxu0 %v7366_v55  ;;  %4959 = vmatprep.subr.bf16.mxu1 %v7368_v59 }
 0x38e   :  { %4929 = vmatpush3.bf16.msra.mxu0 %v7390_v54  ;;  %4961 = vmatpush3.bf16.msra.mxu1 %v7392_v24 }
 0x38f   :  { %4931 = vmatprep.subr.bf16.mxu0 %v7402_v9  ;;  %4963 = vmatprep.subr.bf16.mxu1 %v7404_v6 }
 0x392   :  { %4933 = vmatpush3.bf16.msra.mxu0 %v7426_v36  ;;  %4965 = vmatpush3.bf16.msra.mxu1 %v7428_v46 }
 0x393   :  { %4935 = vmatprep.subr.bf16.mxu0 %v7438_v53  ;;  %4967 = vmatprep.subr.bf16.mxu1 %v7440_v49 }
 0x396   :  { %4937 = vmatpush3.bf16.msra.mxu0 %v7462_v45  ;;  %4969 = vmatpush3.bf16.msra.mxu1 %v7464_v60 }
 0x397   :  { %4939 = vmatprep.subr.bf16.mxu0 %v7471_v41  ;;  %4971 = vmatprep.subr.bf16.mxu1 %v7473_v35 }
 0x39a   :  { %4941 = vmatpush3.bf16.msra.mxu0 %v7486_v19  ;;  %4973 = vmatpush3.bf16.msra.mxu1 %v7488_v37 }
 0x39b   :  { %4943 = vmatprep.subr.bf16.mxu0 %v7503_v48  ;;  %4975 = vmatprep.subr.bf16.mxu1 %v7514_v4 }
 0x39e   :  { %4945 = vmatpush3.bf16.msra.mxu0 %v7516_v32  ;;  %4977 = vmatpush3.bf16.msra.mxu1 %v7525_v23 }
 0x39f   :  { %4979 = vmatprep.subr.bf16.mxu0 %v7582_v5  ;;  %4983 = vmatprep.subr.bf16.mxu1 %v7593_v18 }
 0x454   :  { %v1746_v52 = vpop.f32.mrb[6].mxu0  ;;  %v1817_v58 = vpop.f32.mrb[6].mxu1 }
 0x455   :  { %v7648_v15 = vsub.f32 %v7564_v33, %v1746_v52  ;;  %v7651_v0 = vsub.f32 %v7567_v10, %v1817_v58  ;;  %v1748_v2 = vpop.f32.mrb[7].mxu0  ;;  %v1819_v63 = vpop.f32.mrb[7].mxu1 }
 0x456   :  { %v7654_v62 = vsub.f32 %v7558_v56, %v1748_v2  ;;  %v7657_v14 = vsub.f32 %v7561_v1, %v1819_v63  ;;  %v8944_v56 = vmov 0.0  }
 0x457   :  { %v1826_v33 = vmul.f32 %v7648_v15, %v7648_v15  ;;  %v1828_v10 = vmul.f32 %v7651_v0, %v7651_v0 }
 0x458   :  { %v1827_v5 = vmul.f32 %v7654_v62, %v7654_v62  ;;  %v1829_v18 = vmul.f32 %v7657_v14, %v7657_v14 }
 0x45a   :  { %1894 = vmatprep.mubr.f32.mxu0 %v1827_v5  ;;  %1964 = vmatprep.mubr.f32.mxu1 %v1829_v18 }
 0x45b   :  { %1895 = vmatmul.mubr.f32.vlgmr.msra.gmra.mrb[8].mxu0 %v1826_v33  ;;  %1965 = vmatmul.mubr.f32.vlgmr.msra.gmra.mrb[8].mxu1 %v1828_v10  ;;  %v8961_v33 = vld [vmem:[#allocation28_spill] sm:$0xff]  ;;  %v8962_v10 = vld [vmem:[#allocation29_spill] sm:$0xff] }
 0x45c   :  { %4981 = vmatpush1.bf16.msra.mxu0 %v7595_v40  ;;  %4985 = vmatpush1.bf16.msra.mxu1 %v7604_v57 }
 0x45d   :  { %2037 = vmatprep.mubr.f32.mxu0 %v8944_v56  ;;  %2108 = vmatprep.mubr.f32.mxu1 %v8944_v56 }
 0x45e   :  { %4987 = vmatprep.subr.bf16.mxu0 %v6440_v3  ;;  %5115 = vmatprep.subr.bf16.mxu1 %v6442_v7  ;;  %v8945_v3 = vld [vmem:[#allocation12_spill] sm:$0xff]  ;;  %v8946_v7 = vld [vmem:[#allocation13_spill] sm:$0xff] }
 0x52e   :  { %v4152_v1 = vpop.f32.mrb[8].mxu0  ;;  %v4187_v52 = vpop.f32.mrb[8].mxu1 }
 0x52f   :  { %v4153_v58 = vpop.f32.mrb[9].mxu0  ;;  %v4188_v2 = vpop.f32.mrb[9].mxu1 }
 0x530   :  { %v4154_v5 = vadd.f32 %v4153_v58, %v4152_v1  ;;  %v4189_v18 = vadd.f32 %v4188_v2, %v4187_v52  ;;  %v8963_v1 = vld [vmem:[#allocation30_spill] sm:$0xff]  ;;  %v8964_v52 = vld [vmem:[#allocation31_spill] sm:$0xff]  ;;  %v8965_v58 = vld [vmem:[#allocation32_spill] sm:$0xff] }
 0x531   :  { %v8966_v2 = vld [vmem:[#allocation33_spill] sm:$0xff] }
 0x532   :  { %v1967_v63 = vadd.f32 %v4189_v18, %v4154_v5  ;;  %v8967_v5 = vld [vmem:[#allocation34_spill] sm:$0xff]  ;;  %v8968_v18 = vld [vmem:[#allocation35_spill] sm:$0xff] }
 0x534   :  { %4044 = vmatmul.mubr.msk.f32.vlgmr.msra.gmra.mrb[10].mxu0 %vm1676_vm0, %v1967_v63  ;;  %4045 = vmatmul.mubr.msk.f32.vlgmr.msra.gmra.mrb[10].mxu1 %vm1676_vm0, %v1967_v63  ;;  %v8969_v63 = vld [vmem:[#allocation36_spill] sm:$0xff] }
 0x535   :  { %4989 = vmatpush1.bf16.msra.mxu0 %v6444_v8  ;;  %5117 = vmatpush1.bf16.msra.mxu1 %v6447_v12  ;;  %v8947_v8 = vld [vmem:[#allocation14_spill] sm:$0xff]  ;;  %v8948_v12 = vld [vmem:[#allocation15_spill] sm:$0xff] }
 0x536   :  { %4991 = vmatprep.subr.bf16.mxu0 %v6451_v16  ;;  %5119 = vmatprep.subr.bf16.mxu1 %v6453_v17  ;;  %v8949_v16 = vld [vmem:[#allocation16_spill] sm:$0xff]  ;;  %v8950_v17 = vld [vmem:[#allocation17_spill] sm:$0xff] }
 0x539   :  { %4993 = vmatpush1.bf16.msra.mxu0 %v6456_v21  ;;  %5121 = vmatpush1.bf16.msra.mxu1 %v6460_v25  ;;  %v8951_v21 = vld [vmem:[#allocation18_spill] sm:$0xff]  ;;  %v8952_v25 = vld [vmem:[#allocation19_spill] sm:$0xff] }
 0x53a   :  { %4995 = vmatprep.subr.bf16.mxu0 %v6462_v26  ;;  %5123 = vmatprep.subr.bf16.mxu1 %v6464_v30  ;;  %v8953_v26 = vld [vmem:[#allocation20_spill] sm:$0xff]  ;;  %v8954_v30 = vld [vmem:[#allocation21_spill] sm:$0xff] }
 0x53d   :  { %4997 = vmatpush1.bf16.msra.mxu0 %v6467_v34  ;;  %5125 = vmatpush1.bf16.msra.mxu1 %v6471_v38  ;;  %v8955_v34 = vld [vmem:[#allocation22_spill] sm:$0xff]  ;;  %v8956_v38 = vld [vmem:[#allocation23_spill] sm:$0xff] }
 0x53e   :  { %4999 = vmatprep.subr.bf16.mxu0 %v6473_v39  ;;  %5127 = vmatprep.subr.bf16.mxu1 %v6476_v43  ;;  %v8957_v39 = vld [vmem:[#allocation24_spill] sm:$0xff]  ;;  %v8958_v43 = vld [vmem:[#allocation25_spill] sm:$0xff] }
 0x541   :  { %5001 = vmatpush1.bf16.msra.mxu0 %v6479_v50  ;;  %5129 = vmatpush1.bf16.msra.mxu1 %v6483_v51  ;;  %v8959_v50 = vld [vmem:[#allocation26_spill] sm:$0xff]  ;;  %v8960_v51 = vld [vmem:[#allocation27_spill] sm:$0xff] }
 0x542   :  { %5003 = vmatprep.subr.bf16.mxu0 %v8945_v3  ;;  %5131 = vmatprep.subr.bf16.mxu1 %v8946_v7  ;;  %v8970_v3 = vld [vmem:[#allocation37_spill] sm:$0xff]  ;;  %v8971_v7 = vld [vmem:[#allocation38_spill] sm:$0xff] }
 0x545   :  { %5005 = vmatpush1.bf16.msra.mxu0 %v8947_v8  ;;  %5133 = vmatpush1.bf16.msra.mxu1 %v8948_v12  ;;  %v8972_v8 = vld [vmem:[#allocation39_spill] sm:$0xff]  ;;  %v8973_v12 = vld [vmem:[#allocation40_spill] sm:$0xff] }
 0x546   :  { %5007 = vmatprep.subr.bf16.mxu0 %v8949_v16  ;;  %5135 = vmatprep.subr.bf16.mxu1 %v8950_v17  ;;  %v8974_v16 = vld [vmem:[#allocation41_spill] sm:$0xff]  ;;  %v8975_v17 = vld [vmem:[#allocation44_spill] sm:$0xff] }
 0x549   :  { %5009 = vmatpush1.bf16.msra.mxu0 %v8951_v21  ;;  %5137 = vmatpush1.bf16.msra.mxu1 %v8952_v25  ;;  %v8976_v21 = vld [vmem:[#allocation45_spill] sm:$0xff]  ;;  %v8977_v25 = vld [vmem:[#allocation46_spill] sm:$0xff] }
 0x54a   :  { %5011 = vmatprep.subr.bf16.mxu0 %v8953_v26  ;;  %5139 = vmatprep.subr.bf16.mxu1 %v8954_v30  ;;  %v8978_v26 = vld [vmem:[#allocation47_spill] sm:$0xff]  ;;  %v8979_v30 = vld [vmem:[#allocation48_spill] sm:$0xff] }
 0x54d   :  { %5013 = vmatpush1.bf16.msra.mxu0 %v8955_v34  ;;  %5141 = vmatpush1.bf16.msra.mxu1 %v8956_v38  ;;  %v8980_v34 = vld [vmem:[#allocation49_spill] sm:$0xff]  ;;  %v8981_v38 = vld [vmem:[#allocation50_spill] sm:$0xff] }
 0x54e   :  { %5015 = vmatprep.subr.bf16.mxu0 %v8957_v39  ;;  %5143 = vmatprep.subr.bf16.mxu1 %v8958_v43  ;;  %v8982_v39 = vld [vmem:[#allocation51_spill] sm:$0xff]  ;;  %v8983_v43 = vld [vmem:[#allocation52_spill] sm:$0xff] }
 0x551   :  { %5017 = vmatpush1.bf16.msra.mxu0 %v8959_v50  ;;  %5145 = vmatpush1.bf16.msra.mxu1 %v8960_v51  ;;  %v8984_v50 = vld [vmem:[#allocation53_spill] sm:$0xff]  ;;  %v8985_v51 = vld [vmem:[#allocation54_spill] sm:$0xff] }
 0x552   :  { %5019 = vmatprep.subr.bf16.mxu0 %v8961_v33  ;;  %5147 = vmatprep.subr.bf16.mxu1 %v8962_v10  ;;  %v8986_v33 = vld [vmem:[#allocation55_spill] sm:$0xff]  ;;  %v8987_v10 = vld [vmem:[#allocation56_spill] sm:$0xff] }
 0x555   :  { %5021 = vmatpush1.bf16.msra.mxu0 %v8963_v1  ;;  %5149 = vmatpush1.bf16.msra.mxu1 %v8964_v52  ;;  %v8988_v1 = vld [vmem:[#allocation57_spill] sm:$0xff]  ;;  %v8989_v52 = vld [vmem:[#allocation58_spill] sm:$0xff] }
 0x556   :  { %5023 = vmatprep.subr.bf16.mxu0 %v8965_v58  ;;  %5151 = vmatprep.subr.bf16.mxu1 %v8966_v2  ;;  %v8990_v58 = vld [vmem:[#allocation59_spill] sm:$0xff]  ;;  %v8991_v2 = vld [vmem:[#allocation60_spill] sm:$0xff] }
 0x559   :  { %5025 = vmatpush1.bf16.msra.mxu0 %v8967_v5  ;;  %5153 = vmatpush1.bf16.msra.mxu1 %v8968_v18  ;;  %v8992_v5 = vld [vmem:[#allocation61_spill] sm:$0xff]  ;;  %v8993_v18 = vld [vmem:[#allocation62_spill] sm:$0xff] }
 0x55a   :  { %5027 = vmatprep.subr.bf16.mxu0 %v8969_v63  ;;  %5155 = vmatprep.subr.bf16.mxu1 %v8970_v3  ;;  %v8994_v63 = vld [vmem:[#allocation63_spill] sm:$0xff] }
 0x55d   :  { %5029 = vmatpush1.bf16.msra.mxu0 %v8971_v7  ;;  %5157 = vmatpush1.bf16.msra.mxu1 %v8972_v8 }
 0x55e   :  { %5031 = vmatprep.subr.bf16.mxu0 %v8973_v12  ;;  %5159 = vmatprep.subr.bf16.mxu1 %v8974_v16 }
 0x561   :  { %5033 = vmatpush1.bf16.msra.mxu0 %v8975_v17  ;;  %5161 = vmatpush1.bf16.msra.mxu1 %v8976_v21 }
 0x562   :  { %5035 = vmatprep.subr.bf16.mxu0 %v8977_v25  ;;  %5163 = vmatprep.subr.bf16.mxu1 %v8978_v26  ;;  %v7744_v25 = vld [vmem:[%s8289_s3] sm:$0xf] }
 0x563   :  { %v7749_v26 = vld [vmem:[%s8290_s4] sm:$0xf] }
 0x565   :  { %5037 = vmatpush1.bf16.msra.mxu0 %v8979_v30  ;;  %5165 = vmatpush1.bf16.msra.mxu1 %v8980_v34  ;;  %v8995_v30 = vld [vmem:[#allocation256_spill] sm:$0xff] }
 0x566   :  { %5039 = vmatprep.subr.bf16.mxu0 %v8981_v38  ;;  %5167 = vmatprep.subr.bf16.mxu1 %v8982_v39  ;;  %v7753_v34 = vrot.slane %v7744_v25, %v8995_v30 }
 0x569   :  { %5041 = vmatpush1.bf16.msra.mxu0 %v8983_v43  ;;  %5169 = vmatpush1.bf16.msra.mxu1 %v8984_v50  ;;  %v8996_v43 = vld [vmem:[#allocation254_spill] sm:$0xff] }
 0x56a   :  { %5043 = vmatprep.subr.bf16.mxu0 %v8985_v51  ;;  %5171 = vmatprep.subr.bf16.mxu1 %v8986_v33  ;;  %v7758_v50 = vrot.slane %v7744_v25, %v8996_v43  ;;  %v7762_v51 = vrot.slane %v7749_v26, %v8995_v30  ;;  %v9079_v30 = vld [vmem:[#allocation142_spill] sm:$0xff] }
 0x56d   :  { %5045 = vmatpush1.bf16.msra.mxu0 %v8987_v10  ;;  %5173 = vmatpush1.bf16.msra.mxu1 %v8988_v1  ;;  %v8997_v10 = vld [vmem:[#allocation255_spill] sm:$0xff] }
 0x56e   :  { %5047 = vmatprep.subr.bf16.mxu0 %v8989_v52  ;;  %5175 = vmatprep.subr.bf16.mxu1 %v8990_v58  ;;  %v7766_v1 = vrot.slane %v7744_v25, %v8997_v10  ;;  %v8998_v52 = vld [vmem:[#allocation42_spill] sm:$0xff] }
 0x56f   :  { %v2178_v58 = vcombine.high %v8998_v52, %v8998_v52 }
 0x571   :  { %5049 = vmatpush1.bf16.msra.mxu0 %v8991_v2  ;;  %5177 = vmatpush1.bf16.msra.mxu1 %v8992_v5 }
 0x572   :  { %5051 = vmatprep.subr.bf16.mxu0 %v8993_v18  ;;  %5179 = vmatprep.subr.bf16.mxu1 %v8994_v63  ;;  %v8999_v18 = vld [vmem:[#allocation43_spill] sm:$0xff] }
 0x573   :  { %v7777_v63 = vrot.slane %v8998_v52, %v8999_v18 }
 0x607   :  { %v2039_v3 = vpop.f32.mrb[10].mxu0  ;;  %v7739_v7 = vpop.f32.mrb[10].mxu1 }
 0x608   :  { %v2040_v8 = vadd.f32 1e-10, %v2039_v3  ;;  %v2041_v12 = vpop.f32.mrb[11].mxu0  ;;  %v2112_v16 = vpop.f32.mrb[11].mxu1 }
 0x609   :  { %v2042_v17 = vadd.f32 1e-10, %v2041_v12  ;;  %v2113_v21 = vadd.f32 1e-10, %v2112_v16  ;;  %v7783_v12 = vrot.slane %v7749_v26, %v8997_v10  ;;  %v9076_v10 = vld [vmem:[#allocation139_spill] sm:$0xff] }
 0x60a   :  { %6198 = vrsqrt.f32 %v2040_v8 }
 0x60b   :  { %6200 = vrsqrt.f32 %v2042_v17 }
 0x60c   :  { %6202 = vrsqrt.f32 %v2113_v21  ;;  %v7789_v21 = vrot.slane %v2178_v58, %v8999_v18  ;;  %v9074_v18 = vld [vmem:[#allocation137_spill] sm:$0xff] }
 0x614   :  { %v6199_v38 = vpop.eup %6198 }
 0x615   :  { %v2119_v39 = vmul.f32 %v6199_v38, %v7648_v15  ;;  %v6201_v33 = vpop.eup %6200  ;;  %v7773_v15 = vrot.slane %v7749_v26, %v8996_v43  ;;  %v9077_v43 = vld [vmem:[#allocation140_spill] sm:$0xff] }
 0x616   :  { %v6203_v2 = vpop.eup %6202  ;;  %v2120_v5 = vmul.f32 %v6201_v33, %v7654_v62 }
 0x617   :  { %v2144_v3 = vmul.f32 %v7753_v34, %v2119_v39  ;;  %v2122_v8 = vmul.f32 %v6203_v2, %v7657_v14  ;;  %v7794_v39 = vcombine.high %v7777_v63, %v7777_v63 }
 0x618   :  { %v2145_v16 = vmul.f32 %v7758_v50, %v2120_v5  ;;  %v7799_v5 = vcombine.high %v7789_v21, %v7789_v21 }
 0x619   :  { %v2169_v62 = vadd.f32 %v7762_v51, %v2144_v3  ;;  %v2147_v17 = vmul.f32 %v7766_v1, %v2122_v8 }
 0x61a   :  { %v2170_v38 = vadd.f32 %v7773_v15, %v2145_v16  ;;  %v9000_v16 = vld [vmem:[#allocation64_spill] sm:$0xff] }
 0x61b   :  { %v2173_v14 = vmul.f32 0.7, %v2169_v62  ;;  %v2172_v33 = vadd.f32 %v7783_v12, %v2147_v17  ;;  %v9001_v62 = vld [vmem:[#allocation65_spill] sm:$0xff]  ;;  %v9002_v17 = vld [vmem:[#allocation66_spill] sm:$0xff] }
 0x61c   :  { %v2174_v52 = vmul.f32 0.7, %v2170_v38  ;;  %v9003_v38 = vld [vmem:[#allocation67_spill] sm:$0xff] }
 0x61d   :  { %v2176_v2 = vmul.f32 0.7, %v2172_v33  ;;  %v2199_v58 = vadd.f32 %v7777_v63, %v2173_v14  ;;  %v9004_v33 = vld [vmem:[#allocation68_spill] sm:$0xff]  ;;  %v9006_v14 = vld [vmem:[#allocation70_spill] sm:$0xff] }
 0x61e   :  { %v2200_v3 = vadd.f32 %v7794_v39, %v2174_v52  ;;  %v9005_v52 = vld [vmem:[#allocation69_spill] sm:$0xff] }
 0x61f   :  { %v2202_v8 = vadd.f32 %v7799_v5, %v2176_v2  ;;  %v9009_v2 = vld [vmem:[#allocation73_spill] sm:$0xff] }
 0x620   :  { %2267 = vmatprep.mubr.f32.mxu0 %v2200_v3  ;;  %2409 = vmatprep.mubr.f32.mxu1 %v2200_v3  ;;  %v9007_v3 = vld [vmem:[#allocation71_spill] sm:$0xff] }
 0x621   :  { %2268 = vmatmul.mubr.f32.vlgmr.msra.gmra.mrb[12].mxu0 %v2199_v58  ;;  %2410 = vmatmul.mubr.f32.vlgmr.msra.gmra.mrb[12].mxu1 %v2199_v58  ;;  %v9008_v58 = vld [vmem:[#allocation72_spill] sm:$0xff] }
 0x622   :  { %5053 = vmatpush1.bf16.msra.mxu0 %v9000_v16  ;;  %5181 = vmatpush1.bf16.msra.mxu1 %v9001_v62  ;;  %v9010_v16 = vld [vmem:[#allocation74_spill] sm:$0xff]  ;;  %v9011_v62 = vld [vmem:[#allocation75_spill] sm:$0xff] }
 0x623   :  { %2338 = vmatprep.mubr.f32.mxu0 %v2202_v8  ;;  %2480 = vmatprep.mubr.f32.mxu1 %v2202_v8  ;;  %v9012_v8 = vld [vmem:[#allocation76_spill] sm:$0xff] }
 0x624   :  { %5055 = vmatprep.subr.bf16.mxu0 %v9002_v17  ;;  %5183 = vmatprep.subr.bf16.mxu1 %v9003_v38  ;;  %v9013_v17 = vld [vmem:[#allocation77_spill] sm:$0xff]  ;;  %v9014_v38 = vld [vmem:[#allocation78_spill] sm:$0xff] }
 0x626   :  { %5057 = vmatpush1.bf16.msra.mxu0 %v9004_v33  ;;  %5185 = vmatpush1.bf16.msra.mxu1 %v9005_v52  ;;  %v9015_v33 = vld [vmem:[#allocation79_spill] sm:$0xff]  ;;  %v9016_v52 = vld [vmem:[#allocation80_spill] sm:$0xff] }
 0x627   :  { %5059 = vmatprep.subr.bf16.mxu0 %v9006_v14  ;;  %5187 = vmatprep.subr.bf16.mxu1 %v9007_v3  ;;  %v9017_v14 = vld [vmem:[#allocation81_spill] sm:$0xff]  ;;  %v9018_v3 = vld [vmem:[#allocation82_spill] sm:$0xff] }
 0x62a   :  { %5061 = vmatpush1.bf16.msra.mxu0 %v9008_v58  ;;  %5189 = vmatpush1.bf16.msra.mxu1 %v9009_v2  ;;  %v9019_v58 = vld [vmem:[#allocation83_spill] sm:$0xff]  ;;  %v9020_v2 = vld [vmem:[#allocation84_spill] sm:$0xff] }
 0x62b   :  { %5063 = vmatprep.subr.bf16.mxu0 %v9010_v16  ;;  %5191 = vmatprep.subr.bf16.mxu1 %v9011_v62  ;;  %v9021_v16 = vld [vmem:[#allocation85_spill] sm:$0xff]  ;;  %v9022_v62 = vld [vmem:[#allocation86_spill] sm:$0xff] }
 0x62e   :  { %5065 = vmatpush1.bf16.msra.mxu0 %v9012_v8  ;;  %5193 = vmatpush1.bf16.msra.mxu1 %v9013_v17  ;;  %v9023_v8 = vld [vmem:[#allocation87_spill] sm:$0xff]  ;;  %v9024_v17 = vld [vmem:[#allocation88_spill] sm:$0xff] }
 0x62f   :  { %5067 = vmatprep.subr.bf16.mxu0 %v9014_v38  ;;  %5195 = vmatprep.subr.bf16.mxu1 %v9015_v33  ;;  %v9025_v38 = vld [vmem:[#allocation89_spill] sm:$0xff]  ;;  %v9026_v33 = vld [vmem:[#allocation90_spill] sm:$0xff] }
 0x632   :  { %5069 = vmatpush1.bf16.msra.mxu0 %v9016_v52  ;;  %5197 = vmatpush1.bf16.msra.mxu1 %v9017_v14  ;;  %v9027_v52 = vld [vmem:[#allocation91_spill] sm:$0xff]  ;;  %v2111_v14 = vadd.f32 1e-10, %v7739_v7  ;;  %v9037_v7 = vld [vmem:[#allocation101_spill] sm:$0xff] }
 0x633   :  { %5071 = vmatprep.subr.bf16.mxu0 %v9018_v3  ;;  %5199 = vmatprep.subr.bf16.mxu1 %v9019_v58  ;;  %v9028_v3 = vld [vmem:[#allocation92_spill] sm:$0xff]  ;;  %v9029_v58 = vld [vmem:[#allocation93_spill] sm:$0xff] }
 0x634   :  { %6204 = vrsqrt.f32 %v2111_v14  ;;  %v9042_v14 = vld [vmem:[#allocation106_spill] sm:$0xff] }
 0x636   :  { %5073 = vmatpush1.bf16.msra.mxu0 %v9020_v2  ;;  %5201 = vmatpush1.bf16.msra.mxu1 %v9021_v16  ;;  %v9030_v2 = vld [vmem:[#allocation94_spill] sm:$0xff]  ;;  %v9031_v16 = vld [vmem:[#allocation95_spill] sm:$0xff] }
 0x637   :  { %5075 = vmatprep.subr.bf16.mxu0 %v9022_v62  ;;  %5203 = vmatprep.subr.bf16.mxu1 %v9023_v8  ;;  %v9032_v62 = vld [vmem:[#allocation96_spill] sm:$0xff]  ;;  %v9033_v8 = vld [vmem:[#allocation97_spill] sm:$0xff] }
 0x63a   :  { %5077 = vmatpush1.bf16.msra.mxu0 %v9024_v17  ;;  %5205 = vmatpush1.bf16.msra.mxu1 %v9025_v38  ;;  %v9034_v17 = vld [vmem:[#allocation98_spill] sm:$0xff]  ;;  %v9035_v38 = vld [vmem:[#allocation99_spill] sm:$0xff] }
 0x63b   :  { %5079 = vmatprep.subr.bf16.mxu0 %v9026_v33  ;;  %5207 = vmatprep.subr.bf16.mxu1 %v9027_v52  ;;  %v9036_v33 = vld [vmem:[#allocation100_spill] sm:$0xff]  ;;  %v9038_v52 = vld [vmem:[#allocation102_spill] sm:$0xff] }
 0x63e   :  { %5081 = vmatpush1.bf16.msra.mxu0 %v9028_v3  ;;  %5209 = vmatpush1.bf16.msra.mxu1 %v9029_v58  ;;  %v9039_v3 = vld [vmem:[#allocation103_spill] sm:$0xff]  ;;  %v9040_v58 = vld [vmem:[#allocation104_spill] sm:$0xff] }
 0x63f   :  { %5083 = vmatprep.subr.bf16.mxu0 %v9030_v2  ;;  %5211 = vmatprep.subr.bf16.mxu1 %v9031_v16  ;;  %v9041_v2 = vld [vmem:[#allocation105_spill] sm:$0xff]  ;;  %v9043_v16 = vld [vmem:[#allocation107_spill] sm:$0xff] }
 0x642   :  { %5085 = vmatpush1.bf16.msra.mxu0 %v9032_v62  ;;  %5213 = vmatpush1.bf16.msra.mxu1 %v9033_v8  ;;  %v6205_v62 = vpop.eup %6204  ;;  %v9044_v8 = vld [vmem:[#allocation108_spill] sm:$0xff] }
 0x643   :  { %5087 = vmatprep.subr.bf16.mxu0 %v9034_v17  ;;  %5215 = vmatprep.subr.bf16.mxu1 %v9035_v38  ;;  %v9045_v17 = vld [vmem:[#allocation109_spill] sm:$0xff]  ;;  %v2121_v38 = vmul.f32 %v6205_v62, %v7651_v0  ;;  %v9053_v62 = vld [vmem:[#allocation116_spill] sm:$0xff] }
 0x646   :  { %5089 = vmatpush1.bf16.msra.mxu0 %v9036_v33  ;;  %5217 = vmatpush1.bf16.msra.mxu1 %v9037_v7  ;;  %v9046_v33 = vld [vmem:[#allocation110_spill] sm:$0xff]  ;;  %v9047_v7 = vld [vmem:[#allocation111_spill] sm:$0xff] }
 0x647   :  { %5091 = vmatprep.subr.bf16.mxu0 %v9038_v52  ;;  %5219 = vmatprep.subr.bf16.mxu1 %v9039_v3  ;;  %v9048_v52 = vld [vmem:[#allocation257_spill] sm:$0xff] }
 0x648   :  { %v7856_v3 = vrot.slane %v7744_v25, %v9048_v52  ;;  %v7865_v0 = vrot.slane %v7749_v26, %v9048_v52  ;;  %v9055_v25 = vld [vmem:[#allocation118_spill] sm:$0xff]  ;;  %v9078_v52 = vld [vmem:[#allocation141_spill] sm:$0xff] }
 0x64a   :  { %5093 = vmatpush1.bf16.msra.mxu0 %v9040_v58  ;;  %5221 = vmatpush1.bf16.msra.mxu1 %v9041_v2  ;;  %v9049_v58 = vld [vmem:[#allocation112_spill] sm:$0xff]  ;;  %v9050_v2 = vld [vmem:[#allocation113_spill] sm:$0xff] }
 0x64b   :  { %5095 = vmatprep.subr.bf16.mxu0 %v9042_v14  ;;  %5223 = vmatprep.subr.bf16.mxu1 %v9043_v16  ;;  %v9051_v14 = vld [vmem:[#allocation114_spill] sm:$0xff]  ;;  %v9052_v16 = vld [vmem:[#allocation115_spill] sm:$0xff] }
 0x64e   :  { %5097 = vmatpush1.bf16.msra.mxu0 %v9044_v8  ;;  %5225 = vmatpush1.bf16.msra.mxu1 %v9045_v17  ;;  %v2146_v8 = vmul.f32 %v7856_v3, %v2121_v38  ;;  %v9054_v17 = vld [vmem:[#allocation117_spill] sm:$0xff]  ;;  %v9060_v38 = vld [vmem:[#allocation123_spill] sm:$0xff] }
 0x64f   :  { %5099 = vmatprep.subr.bf16.mxu0 %v9046_v33  ;;  %5227 = vmatprep.subr.bf16.mxu1 %v9047_v7  ;;  %v9056_v33 = vld [vmem:[#allocation119_spill] sm:$0xff] }
 0x650   :  { %v2171_v7 = vadd.f32 %v7865_v0, %v2146_v8  ;;  %v9065_v8 = vld [vmem:[#allocation128_spill] sm:$0xff] }
 0x652   :  { %5101 = vmatpush1.bf16.msra.mxu0 %v9049_v58  ;;  %5229 = vmatpush1.bf16.msra.mxu1 %v9050_v2  ;;  %v9057_v58 = vld [vmem:[#allocation120_spill] sm:$0xff]  ;;  %v9058_v2 = vld [vmem:[#allocation121_spill] sm:$0xff]  ;;  %v2175_v26 = vmul.f32 0.7, %v2171_v7 }
 0x653   :  { %5103 = vmatprep.subr.bf16.mxu0 %v9051_v14  ;;  %5231 = vmatprep.subr.bf16.mxu1 %v9052_v16  ;;  %v9059_v14 = vld [vmem:[#allocation122_spill] sm:$0xff]  ;;  %v9061_v16 = vld [vmem:[#allocation124_spill] sm:$0xff] }
 0x654   :  { %v9069_v7 = vld [vmem:[#allocation132_spill] sm:$0xff] }
 0x656   :  { %5105 = vmatpush1.bf16.msra.mxu0 %v9053_v62  ;;  %5233 = vmatpush1.bf16.msra.mxu1 %v9054_v17  ;;  %v9062_v62 = vld [vmem:[#allocation125_spill] sm:$0xff]  ;;  %v2201_v17 = vadd.f32 %v7789_v21, %v2175_v26  ;;  %v9072_v26 = vld [vmem:[#allocation135_spill] sm:$0xff] }
 0x657   :  { %5107 = vmatprep.subr.bf16.mxu0 %v9055_v25  ;;  %5235 = vmatprep.subr.bf16.mxu1 %v9056_v33  ;;  %v9063_v25 = vld [vmem:[#allocation126_spill] sm:$0xff]  ;;  %v9064_v33 = vld [vmem:[#allocation127_spill] sm:$0xff] }
 0x65a   :  { %5109 = vmatpush1.bf16.msra.mxu0 %v9057_v58  ;;  %5237 = vmatpush1.bf16.msra.mxu1 %v9058_v2  ;;  %v9066_v58 = vld [vmem:[#allocation129_spill] sm:$0xff]  ;;  %v9067_v2 = vld [vmem:[#allocation130_spill] sm:$0xff] }
 0x65b   :  { %5111 = vmatprep.subr.bf16.mxu0 %v9059_v14  ;;  %5239 = vmatprep.subr.bf16.mxu1 %v9060_v38  ;;  %v9068_v14 = vld [vmem:[#allocation131_spill] sm:$0xff]  ;;  %v9070_v38 = vld [vmem:[#allocation133_spill] sm:$0xff] }
 0x65e   :  { %5113 = vmatpush1.bf16.msra.mxu0 %v9061_v16  ;;  %5241 = vmatpush1.bf16.msra.mxu1 %v9062_v62  ;;  %v9071_v16 = vld [vmem:[#allocation134_spill] sm:$0xff]  ;;  %v9073_v62 = vld [vmem:[#allocation136_spill] sm:$0xff] }
 0x65f   :  { %5243 = vmatprep.subr.bf16.mxu0 %v9063_v25  ;;  %5371 = vmatprep.subr.bf16.mxu1 %v9064_v33 }
 0x661   :  { %2339 = vmatmul.mubr.f32.vlgmr.msra.gmra.mrb[12].mxu0 %v2201_v17  ;;  %2481 = vmatmul.mubr.f32.vlgmr.msra.gmra.mrb[12].mxu1 %v2201_v17  ;;  %v9075_v17 = vld [vmem:[#allocation138_spill] sm:$0xff] }
 0x662   :  { %5245 = vmatpush1.bf16.msra.mxu0 %v9065_v8  ;;  %5373 = vmatpush1.bf16.msra.mxu1 %v9066_v58 }
 0x663   :  { %5247 = vmatprep.subr.bf16.mxu0 %v9067_v2  ;;  %5375 = vmatprep.subr.bf16.mxu1 %v9068_v14  ;;  %v9196_v2 = vld [vmem:[#allocation261_spill] sm:$0xff] }
 0x666   :  { %5249 = vmatpush1.bf16.msra.mxu0 %v9069_v7  ;;  %5377 = vmatpush1.bf16.msra.mxu1 %v9070_v38  ;;  %v9080_v7 = vld [vmem:[#allocation143_spill] sm:$0xff]  ;;  %v9081_v38 = vld [vmem:[#allocation144_spill] sm:$0xff] }
 0x667   :  { %5251 = vmatprep.subr.bf16.mxu0 %v9071_v16  ;;  %5379 = vmatprep.subr.bf16.mxu1 %v9072_v26  ;;  %v9082_v16 = vld [vmem:[#allocation145_spill] sm:$0xff]  ;;  %v9083_v26 = vld [vmem:[#allocation146_spill] sm:$0xff] }
 0x66a   :  { %5253 = vmatpush1.bf16.msra.mxu0 %v9073_v62  ;;  %5381 = vmatpush1.bf16.msra.mxu1 %v9074_v18  ;;  %v9084_v62 = vld [vmem:[#allocation147_spill] sm:$0xff]  ;;  %v9085_v18 = vld [vmem:[#allocation148_spill] sm:$0xff] }
 0x66b   :  { %5255 = vmatprep.subr.bf16.mxu0 %v9075_v17  ;;  %5383 = vmatprep.subr.bf16.mxu1 %v9076_v10  ;;  %v9086_v17 = vld [vmem:[#allocation149_spill] sm:$0xff]  ;;  %v9087_v10 = vld [vmem:[#allocation150_spill] sm:$0xff] }
 0x66e   :  { %5257 = vmatpush1.bf16.msra.mxu0 %v9077_v43  ;;  %5385 = vmatpush1.bf16.msra.mxu1 %v9078_v52  ;;  %v9088_v43 = vld [vmem:[#allocation151_spill] sm:$0xff]  ;;  %v9089_v52 = vld [vmem:[#allocation152_spill] sm:$0xff] }
 0x66f   :  { %5259 = vmatprep.subr.bf16.mxu0 %v9079_v30  ;;  %5387 = vmatprep.subr.bf16.mxu1 %v9080_v7  ;;  %v9090_v30 = vld [vmem:[#allocation153_spill] sm:$0xff]  ;;  %v9091_v7 = vld [vmem:[#allocation154_spill] sm:$0xff] }
 0x672   :  { %5261 = vmatpush1.bf16.msra.mxu0 %v9081_v38  ;;  %5389 = vmatpush1.bf16.msra.mxu1 %v9082_v16  ;;  %v9092_v38 = vld [vmem:[#allocation155_spill] sm:$0xff]  ;;  %v9093_v16 = vld [vmem:[#allocation156_spill] sm:$0xff] }
 0x673   :  { %5263 = vmatprep.subr.bf16.mxu0 %v9083_v26  ;;  %5391 = vmatprep.subr.bf16.mxu1 %v9084_v62  ;;  %v9094_v26 = vld [vmem:[#allocation157_spill] sm:$0xff]  ;;  %v9095_v62 = vld [vmem:[#allocation158_spill] sm:$0xff] }
 0x676   :  { %5265 = vmatpush1.bf16.msra.mxu0 %v9085_v18  ;;  %5393 = vmatpush1.bf16.msra.mxu1 %v9086_v17  ;;  %v9096_v18 = vld [vmem:[#allocation159_spill] sm:$0xff]  ;;  %v9097_v17 = vld [vmem:[#allocation160_spill] sm:$0xff] }
 0x677   :  { %5267 = vmatprep.subr.bf16.mxu0 %v9087_v10  ;;  %5395 = vmatprep.subr.bf16.mxu1 %v9088_v43  ;;  %v9098_v10 = vld [vmem:[#allocation161_spill] sm:$0xff]  ;;  %v9099_v43 = vld [vmem:[#allocation162_spill] sm:$0xff] }
 0x67a   :  { %5269 = vmatpush1.bf16.msra.mxu0 %v9089_v52  ;;  %5397 = vmatpush1.bf16.msra.mxu1 %v9090_v30  ;;  %v9100_v52 = vld [vmem:[#allocation163_spill] sm:$0xff]  ;;  %v9101_v30 = vld [vmem:[#allocation164_spill] sm:$0xff] }
 0x67b   :  { %5271 = vmatprep.subr.bf16.mxu0 %v9091_v7  ;;  %5399 = vmatprep.subr.bf16.mxu1 %v9092_v38  ;;  %v9102_v7 = vld [vmem:[#allocation165_spill] sm:$0xff]  ;;  %v9103_v38 = vld [vmem:[#allocation166_spill] sm:$0xff] }
 0x67e   :  { %5273 = vmatpush1.bf16.msra.mxu0 %v9093_v16  ;;  %5401 = vmatpush1.bf16.msra.mxu1 %v9094_v26  ;;  %v9104_v16 = vld [vmem:[#allocation167_spill] sm:$0xff]  ;;  %v9105_v26 = vld [vmem:[#allocation168_spill] sm:$0xff] }
 0x67f   :  { %5275 = vmatprep.subr.bf16.mxu0 %v9095_v62  ;;  %5403 = vmatprep.subr.bf16.mxu1 %v9096_v18  ;;  %v9106_v62 = vld [vmem:[#allocation169_spill] sm:$0xff]  ;;  %v9107_v18 = vld [vmem:[#allocation170_spill] sm:$0xff] }
 0x682   :  { %5277 = vmatpush1.bf16.msra.mxu0 %v9097_v17  ;;  %5405 = vmatpush1.bf16.msra.mxu1 %v9098_v10  ;;  %v9108_v17 = vld [vmem:[#allocation171_spill] sm:$0xff]  ;;  %v9109_v10 = vld [vmem:[#allocation172_spill] sm:$0xff] }
 0x683   :  { %5279 = vmatprep.subr.bf16.mxu0 %v9099_v43  ;;  %5407 = vmatprep.subr.bf16.mxu1 %v9100_v52  ;;  %v9110_v43 = vld [vmem:[#allocation173_spill] sm:$0xff]  ;;  %v9111_v52 = vld [vmem:[#allocation174_spill] sm:$0xff] }
 0x686   :  { %5281 = vmatpush1.bf16.msra.mxu0 %v9101_v30  ;;  %5409 = vmatpush1.bf16.msra.mxu1 %v9102_v7  ;;  %v9112_v30 = vld [vmem:[#allocation175_spill] sm:$0xff]  ;;  %v9113_v7 = vld [vmem:[#allocation176_spill] sm:$0xff] }
 0x687   :  { %5283 = vmatprep.subr.bf16.mxu0 %v9103_v38  ;;  %5411 = vmatprep.subr.bf16.mxu1 %v9104_v16  ;;  %v9114_v38 = vld [vmem:[#allocation177_spill] sm:$0xff]  ;;  %v9115_v16 = vld [vmem:[#allocation178_spill] sm:$0xff] }
 0x68a   :  { %5285 = vmatpush1.bf16.msra.mxu0 %v9105_v26  ;;  %5413 = vmatpush1.bf16.msra.mxu1 %v9106_v62  ;;  %v9116_v26 = vld [vmem:[#allocation179_spill] sm:$0xff]  ;;  %v9117_v62 = vld [vmem:[#allocation180_spill] sm:$0xff] }
 0x68b   :  { %5287 = vmatprep.subr.bf16.mxu0 %v9107_v18  ;;  %5415 = vmatprep.subr.bf16.mxu1 %v9108_v17  ;;  %v9118_v18 = vld [vmem:[#allocation181_spill] sm:$0xff]  ;;  %v9119_v17 = vld [vmem:[#allocation182_spill] sm:$0xff] }
 0x68e   :  { %5289 = vmatpush1.bf16.msra.mxu0 %v9109_v10  ;;  %5417 = vmatpush1.bf16.msra.mxu1 %v9110_v43  ;;  %v9120_v10 = vld [vmem:[#allocation183_spill] sm:$0xff]  ;;  %v9121_v43 = vld [vmem:[#allocation184_spill] sm:$0xff] }
 0x68f   :  { %5291 = vmatprep.subr.bf16.mxu0 %v9111_v52  ;;  %5419 = vmatprep.subr.bf16.mxu1 %v9112_v30  ;;  %v9122_v52 = vld [vmem:[#allocation185_spill] sm:$0xff]  ;;  %v9123_v30 = vld [vmem:[#allocation186_spill] sm:$0xff] }
 0x692   :  { %5293 = vmatpush1.bf16.msra.mxu0 %v9113_v7  ;;  %5421 = vmatpush1.bf16.msra.mxu1 %v9114_v38  ;;  %v9124_v7 = vld [vmem:[#allocation187_spill] sm:$0xff]  ;;  %v9125_v38 = vld [vmem:[#allocation188_spill] sm:$0xff] }
 0x693   :  { %5295 = vmatprep.subr.bf16.mxu0 %v9115_v16  ;;  %5423 = vmatprep.subr.bf16.mxu1 %v9116_v26  ;;  %v9126_v16 = vld [vmem:[#allocation189_spill] sm:$0xff]  ;;  %v9127_v26 = vld [vmem:[#allocation190_spill] sm:$0xff] }
 0x696   :  { %5297 = vmatpush1.bf16.msra.mxu0 %v9117_v62  ;;  %5425 = vmatpush1.bf16.msra.mxu1 %v9118_v18  ;;  %v9128_v62 = vld [vmem:[#allocation191_spill] sm:$0xff] }
 0x697   :  { %5299 = vmatprep.subr.bf16.mxu0 %v9119_v17  ;;  %5427 = vmatprep.subr.bf16.mxu1 %v9120_v10 }
 0x69a   :  { %5301 = vmatpush1.bf16.msra.mxu0 %v9121_v43  ;;  %5429 = vmatpush1.bf16.msra.mxu1 %v9122_v52  ;;  %v9135_v52 = vld [vmem:[#allocation198_spill] sm:$0xff]  ;;  %v9136_v43 = vld [vmem:[#allocation199_spill] sm:$0xff] }
 0x69b   :  { %5303 = vmatprep.subr.bf16.mxu0 %v9123_v30  ;;  %5431 = vmatprep.subr.bf16.mxu1 %v9124_v7  ;;  %v9129_v30 = vld [vmem:[#allocation192_spill] sm:$0xff]  ;;  %v9130_v7 = vld [vmem:[#allocation193_spill] sm:$0xff] }
 0x69e   :  { %5305 = vmatpush1.bf16.msra.mxu0 %v9125_v38  ;;  %5433 = vmatpush1.bf16.msra.mxu1 %v9126_v16  ;;  %v9131_v16 = vld [vmem:[#allocation194_spill] sm:$0xff]  ;;  %v9134_v38 = vld [vmem:[#allocation197_spill] sm:$0xff] }
 0x69f   :  { %5307 = vmatprep.subr.bf16.mxu0 %v9127_v26  ;;  %5435 = vmatprep.subr.bf16.mxu1 %v9128_v62  ;;  %v9132_v26 = vld [vmem:[#allocation195_spill] sm:$0xff]  ;;  %v9133_v62 = vld [vmem:[#allocation196_spill] sm:$0xff] }
 0x734   :  { %v2340_v18 = vpop.f32.mrb[12].mxu0  ;;  %v7945_v17 = vpop.f32.mrb[12].mxu1 }
 0x735   :  { %v2342_v10 = vpop.f32.mrb[13].mxu0  ;;  %v2484_v14 = vpop.f32.mrb[13].mxu1 }
 0x736   :  { %2551 = vmatprep.mubr.f32.mxu0 %v2342_v10  ;;  %2693 = vmatprep.mubr.f32.mxu1 %v2342_v10  ;;  %v9137_v10 = vld [vmem:[#allocation200_spill] sm:$0xff] }
 0x737   :  { %2552 = vmatmul.mubr.f32.vlgmr.msra.gmra.mrb[14].mxu0 %v2340_v18  ;;  %2694 = vmatmul.mubr.f32.vlgmr.msra.gmra.mrb[14].mxu1 %v2340_v18  ;;  %v9138_v18 = vld [vmem:[#allocation201_spill] sm:$0xff] }
 0x738   :  { %5309 = vmatpush1.bf16.msra.mxu0 %v9129_v30  ;;  %5437 = vmatpush1.bf16.msra.mxu1 %v9130_v7  ;;  %v9139_v30 = vld [vmem:[#allocation202_spill] sm:$0xff]  ;;  %v9140_v7 = vld [vmem:[#allocation203_spill] sm:$0xff] }
 0x739   :  { %2622 = vmatprep.mubr.f32.mxu0 %v2484_v14  ;;  %2764 = vmatprep.mubr.f32.mxu1 %v2484_v14  ;;  %v9141_v14 = vld [vmem:[#allocation204_spill] sm:$0xff] }
 0x73a   :  { %5311 = vmatprep.subr.bf16.mxu0 %v9131_v16  ;;  %5439 = vmatprep.subr.bf16.mxu1 %v9132_v26  ;;  %v9142_v16 = vld [vmem:[#allocation205_spill] sm:$0xff]  ;;  %v9143_v26 = vld [vmem:[#allocation206_spill] sm:$0xff] }
 0x73c   :  { %5313 = vmatpush1.bf16.msra.mxu0 %v9133_v62  ;;  %5441 = vmatpush1.bf16.msra.mxu1 %v9134_v38  ;;  %v9144_v62 = vld [vmem:[#allocation207_spill] sm:$0xff]  ;;  %v9145_v38 = vld [vmem:[#allocation208_spill] sm:$0xff] }
 0x73d   :  { %5315 = vmatprep.subr.bf16.mxu0 %v9135_v52  ;;  %5443 = vmatprep.subr.bf16.mxu1 %v9136_v43  ;;  %v9146_v52 = vld [vmem:[#allocation209_spill] sm:$0xff]  ;;  %v9147_v43 = vld [vmem:[#allocation210_spill] sm:$0xff] }
 0x740   :  { %5317 = vmatpush1.bf16.msra.mxu0 %v9137_v10  ;;  %5445 = vmatpush1.bf16.msra.mxu1 %v9138_v18  ;;  %v9148_v10 = vld [vmem:[#allocation211_spill] sm:$0xff]  ;;  %v9149_v18 = vld [vmem:[#allocation212_spill] sm:$0xff] }
 0x741   :  { %5319 = vmatprep.subr.bf16.mxu0 %v9139_v30  ;;  %5447 = vmatprep.subr.bf16.mxu1 %v9140_v7  ;;  %v9150_v30 = vld [vmem:[#allocation213_spill] sm:$0xff]  ;;  %v9151_v7 = vld [vmem:[#allocation214_spill] sm:$0xff] }
 0x744   :  { %5321 = vmatpush1.bf16.msra.mxu0 %v9141_v14  ;;  %5449 = vmatpush1.bf16.msra.mxu1 %v9142_v16  ;;  %v9152_v14 = vld [vmem:[#allocation215_spill] sm:$0xff]  ;;  %v9153_v16 = vld [vmem:[#allocation216_spill] sm:$0xff] }
 0x745   :  { %5323 = vmatprep.subr.bf16.mxu0 %v9143_v26  ;;  %5451 = vmatprep.subr.bf16.mxu1 %v9144_v62  ;;  %v9154_v26 = vld [vmem:[#allocation217_spill] sm:$0xff]  ;;  %v9155_v62 = vld [vmem:[#allocation218_spill] sm:$0xff] }
 0x748   :  { %5325 = vmatpush1.bf16.msra.mxu0 %v9145_v38  ;;  %5453 = vmatpush1.bf16.msra.mxu1 %v9146_v52  ;;  %v9156_v38 = vld [vmem:[#allocation219_spill] sm:$0xff]  ;;  %v9157_v52 = vld [vmem:[#allocation220_spill] sm:$0xff] }
 0x749   :  { %5327 = vmatprep.subr.bf16.mxu0 %v9147_v43  ;;  %5455 = vmatprep.subr.bf16.mxu1 %v9148_v10  ;;  %v9158_v43 = vld [vmem:[#allocation221_spill] sm:$0xff]  ;;  %v9159_v10 = vld [vmem:[#allocation222_spill] sm:$0xff] }
 0x74c   :  { %5329 = vmatpush1.bf16.msra.mxu0 %v9149_v18  ;;  %5457 = vmatpush1.bf16.msra.mxu1 %v9150_v30  ;;  %v9160_v18 = vld [vmem:[#allocation223_spill] sm:$0xff]  ;;  %v9161_v30 = vld [vmem:[#allocation224_spill] sm:$0xff] }
 0x74d   :  { %5331 = vmatprep.subr.bf16.mxu0 %v9151_v7  ;;  %5459 = vmatprep.subr.bf16.mxu1 %v9152_v14  ;;  %v9162_v7 = vld [vmem:[#allocation225_spill] sm:$0xff]  ;;  %v9163_v14 = vld [vmem:[#allocation226_spill] sm:$0xff] }
 0x750   :  { %5333 = vmatpush1.bf16.msra.mxu0 %v9153_v16  ;;  %5461 = vmatpush1.bf16.msra.mxu1 %v9154_v26  ;;  %v9164_v16 = vld [vmem:[#allocation227_spill] sm:$0xff]  ;;  %v9165_v26 = vld [vmem:[#allocation228_spill] sm:$0xff] }
 0x751   :  { %5335 = vmatprep.subr.bf16.mxu0 %v9155_v62  ;;  %5463 = vmatprep.subr.bf16.mxu1 %v9156_v38  ;;  %v9166_v62 = vld [vmem:[#allocation229_spill] sm:$0xff]  ;;  %v9167_v38 = vld [vmem:[#allocation230_spill] sm:$0xff] }
 0x754   :  { %5337 = vmatpush1.bf16.msra.mxu0 %v9157_v52  ;;  %5465 = vmatpush1.bf16.msra.mxu1 %v9158_v43  ;;  %v9168_v52 = vld [vmem:[#allocation231_spill] sm:$0xff]  ;;  %v9169_v43 = vld [vmem:[#allocation232_spill] sm:$0xff] }
 0x755   :  { %5339 = vmatprep.subr.bf16.mxu0 %v9159_v10  ;;  %5467 = vmatprep.subr.bf16.mxu1 %v9160_v18  ;;  %v9170_v10 = vld [vmem:[#allocation233_spill] sm:$0xff]  ;;  %v9171_v18 = vld [vmem:[#allocation234_spill] sm:$0xff] }
 0x758   :  { %5341 = vmatpush1.bf16.msra.mxu0 %v9161_v30  ;;  %5469 = vmatpush1.bf16.msra.mxu1 %v9162_v7  ;;  %v9172_v30 = vld [vmem:[#allocation235_spill] sm:$0xff]  ;;  %v9173_v7 = vld [vmem:[#allocation236_spill] sm:$0xff] }
 0x759   :  { %5343 = vmatprep.subr.bf16.mxu0 %v9163_v14  ;;  %5471 = vmatprep.subr.bf16.mxu1 %v9164_v16  ;;  %v9174_v14 = vld [vmem:[#allocation237_spill] sm:$0xff]  ;;  %v9175_v16 = vld [vmem:[#allocation238_spill] sm:$0xff] }
 0x75c   :  { %5345 = vmatpush1.bf16.msra.mxu0 %v9165_v26  ;;  %5473 = vmatpush1.bf16.msra.mxu1 %v9166_v62  ;;  %v9176_v26 = vld [vmem:[#allocation239_spill] sm:$0xff]  ;;  %v9177_v62 = vld [vmem:[#allocation240_spill] sm:$0xff] }
 0x75d   :  { %5347 = vmatprep.subr.bf16.mxu0 %v9167_v38  ;;  %5475 = vmatprep.subr.bf16.mxu1 %v9168_v52  ;;  %v9178_v38 = vld [vmem:[#allocation241_spill] sm:$0xff]  ;;  %v9179_v52 = vld [vmem:[#allocation242_spill] sm:$0xff] }
 0x760   :  { %5349 = vmatpush1.bf16.msra.mxu0 %v9169_v43  ;;  %5477 = vmatpush1.bf16.msra.mxu1 %v9170_v10  ;;  %v9180_v43 = vld [vmem:[#allocation243_spill] sm:$0xff]  ;;  %v9181_v10 = vld [vmem:[#allocation244_spill] sm:$0xff] }
 0x761   :  { %5351 = vmatprep.subr.bf16.mxu0 %v9171_v18  ;;  %5479 = vmatprep.subr.bf16.mxu1 %v9172_v30  ;;  %v9182_v18 = vld [vmem:[#allocation245_spill] sm:$0xff]  ;;  %v9183_v30 = vld [vmem:[#allocation246_spill] sm:$0xff] }
 0x764   :  { %5353 = vmatpush1.bf16.msra.mxu0 %v9173_v7  ;;  %5481 = vmatpush1.bf16.msra.mxu1 %v9174_v14  ;;  %v9184_v7 = vld [vmem:[#allocation247_spill] sm:$0xff]  ;;  %v9185_v14 = vld [vmem:[#allocation248_spill] sm:$0xff] }
 0x765   :  { %5355 = vmatprep.subr.bf16.mxu0 %v9175_v16  ;;  %5483 = vmatprep.subr.bf16.mxu1 %v9176_v26  ;;  %v9186_v16 = vld [vmem:[#allocation249_spill] sm:$0xff]  ;;  %v9187_v26 = vld [vmem:[#allocation250_spill] sm:$0xff] }
 0x768   :  { %5357 = vmatpush1.bf16.msra.mxu0 %v9177_v62  ;;  %5485 = vmatpush1.bf16.msra.mxu1 %v9178_v38  ;;  %v9188_v62 = vld [vmem:[#allocation251_spill] sm:$0xff]  ;;  %v9189_v38 = vld [vmem:[#allocation252_spill] sm:$0xff] }
 0x769   :  { %5359 = vmatprep.subr.bf16.mxu0 %v9179_v52  ;;  %5487 = vmatprep.subr.bf16.mxu1 %v9180_v43  ;;  %v9190_v52 = vld [vmem:[#allocation253_spill] sm:$0xff] }
 0x76c   :  { %5361 = vmatpush1.bf16.msra.mxu0 %v9181_v10  ;;  %5489 = vmatpush1.bf16.msra.mxu1 %v9182_v18  ;;  %v9195_v10 = vld [vmem:[#allocation260_spill] sm:$0xff] }
 0x76d   :  { %5363 = vmatprep.subr.bf16.mxu0 %v9183_v30  ;;  %5491 = vmatprep.subr.bf16.mxu1 %v9184_v7  ;;  %v9194_v30 = vld [vmem:[#allocation259_spill] sm:$0xff] }
 0x770   :  { %5365 = vmatpush1.bf16.msra.mxu0 %v9185_v14  ;;  %5493 = vmatpush1.bf16.msra.mxu1 %v9186_v16  ;;  %v9193_v14 = vld [vmem:[#allocation258_spill] sm:$0xff] }
 0x771   :  { %5367 = vmatprep.subr.bf16.mxu0 %v9187_v26  ;;  %5495 = vmatprep.subr.bf16.mxu1 %v9188_v62 }
 0x774   :  { %5369 = vmatpush1.bf16.msra.mxu0 %v9189_v38  ;;  %5497 = vmatpush1.bf16.msra.mxu1 %v9190_v52  ;;  %v9192_v52 = vld [vmem:[#allocation263_spill] sm:$0xff] }
 0x775   :  { %5499 = vmatprep.subr.bf16.mxu0 %v7256_v42  ;;  %5531 = vmatprep.subr.bf16.mxu1 %v7258_v31 }
 0x777   :  { %2623 = vmatmul.mubr.f32.vlgmr.msra.gmra.mrb[14].mxu0 %v7945_v17  ;;  %2765 = vmatmul.mubr.f32.vlgmr.msra.gmra.mrb[14].mxu1 %v7945_v17  ;;  %v9191_v17 = vld [vmem:[#allocation262_spill] sm:$0xff] }
 0x778   :  { %5501 = vmatpush3.bf16.msra.mxu0 %v7280_v22  ;;  %5533 = vmatpush3.bf16.msra.mxu1 %v7282_v28 }
 0x779   :  { %5503 = vmatprep.subr.bf16.mxu0 %v7292_v11  ;;  %5535 = vmatprep.subr.bf16.mxu1 %v7294_v47 }
 0x77c   :  { %5505 = vmatpush3.bf16.msra.mxu0 %v7318_v20  ;;  %5537 = vmatpush3.bf16.msra.mxu1 %v7320_v44 }
 0x77d   :  { %5507 = vmatprep.subr.bf16.mxu0 %v7330_v61  ;;  %5539 = vmatprep.subr.bf16.mxu1 %v7332_v27 }
 0x780   :  { %5509 = vmatpush3.bf16.msra.mxu0 %v7354_v13  ;;  %5541 = vmatpush3.bf16.msra.mxu1 %v7356_v29 }
 0x781   :  { %5511 = vmatprep.subr.bf16.mxu0 %v7366_v55  ;;  %5543 = vmatprep.subr.bf16.mxu1 %v7368_v59 }
 0x784   :  { %5513 = vmatpush3.bf16.msra.mxu0 %v7390_v54  ;;  %5545 = vmatpush3.bf16.msra.mxu1 %v7392_v24 }
 0x785   :  { %5515 = vmatprep.subr.bf16.mxu0 %v7402_v9  ;;  %5547 = vmatprep.subr.bf16.mxu1 %v7404_v6 }
 0x788   :  { %5517 = vmatpush3.bf16.msra.mxu0 %v7426_v36  ;;  %5549 = vmatpush3.bf16.msra.mxu1 %v7428_v46 }
 0x789   :  { %5519 = vmatprep.subr.bf16.mxu0 %v7438_v53  ;;  %5551 = vmatprep.subr.bf16.mxu1 %v7440_v49 }
 0x78c   :  { %5521 = vmatpush3.bf16.msra.mxu0 %v7462_v45  ;;  %5553 = vmatpush3.bf16.msra.mxu1 %v7464_v60 }
 0x78d   :  { %5523 = vmatprep.subr.bf16.mxu0 %v7471_v41  ;;  %5555 = vmatprep.subr.bf16.mxu1 %v7473_v35 }
 0x790   :  { %5525 = vmatpush3.bf16.msra.mxu0 %v7486_v19  ;;  %5557 = vmatpush3.bf16.msra.mxu1 %v7488_v37 }
 0x791   :  { %5527 = vmatprep.subr.bf16.mxu0 %v7503_v48  ;;  %5559 = vmatprep.subr.bf16.mxu1 %v7514_v4 }
 0x794   :  { %5529 = vmatpush3.bf16.msra.mxu0 %v7516_v32  ;;  %5561 = vmatpush3.bf16.msra.mxu1 %v7525_v23 }
 0x795   :  { %5563 = vmatprep.subr.bf16.mxu0 %v9191_v17  ;;  %5567 = vmatprep.subr.bf16.mxu1 %v9192_v52 }
 0x84a   :  { %v2624_v38 = vpop.f32.mrb[14].mxu0  ;;  %v2766_v62 = vpop.f32.mrb[14].mxu1 }
 0x84b   :  { %v2626_v26 = vpop.f32.mrb[15].mxu0  ;;  %v2768_v16 = vpop.f32.mrb[15].mxu1  ;;  %v6158_v43 = vadd.f32 %v2624_v38, %v9195_v10  ;;  %v6160_v58 = vadd.f32 %v2766_v62, %v9196_v2 }
 0x84c   :  { %v6159_v7 = vadd.f32 %v2626_v26, %v9193_v14  ;;  %v6161_v18 = vadd.f32 %v2768_v16, %v9194_v30  ;;  %v348_v14 = vld [vmem:[#allocation5 + $0x70] sm:$0xff] }
 0x84e   :  { %2835 = vmatprep.mubr.f32.mxu0 %v6159_v7  ;;  %2905 = vmatprep.mubr.f32.mxu1 %v6161_v18 }
 0x84f   :  { %2836 = vmatmul.mubr.f32.vlgmr.msra.gmra.mrb[16].mxu0 %v6158_v43  ;;  %2906 = vmatmul.mubr.f32.vlgmr.msra.gmra.mrb[16].mxu1 %v6160_v58 }
 0x850   :  { %5565 = vmatpush1.bf16.msra.mxu0 %v7595_v40  ;;  %5569 = vmatpush1.bf16.msra.mxu1 %v7604_v57 }
 0x851   :  { %2978 = vmatprep.mubr.f32.mxu0 %v8944_v56  ;;  %3049 = vmatprep.mubr.f32.mxu1 %v8944_v56 }
 0x852   :  { %5571 = vmatprep.subr.bf16.mxu0 %v7256_v42  ;;  %5603 = vmatprep.subr.bf16.mxu1 %v7258_v31  ;;  %v337_v42 = vld [vmem:[#allocation5 + $0x18] sm:$0xff] }
 0x922   :  { %v4222_v30 = vpop.f32.mrb[16].mxu0  ;;  %v4257_v38 = vpop.f32.mrb[16].mxu1 }
 0x923   :  { %v4223_v16 = vpop.f32.mrb[17].mxu0  ;;  %v4258_v2 = vpop.f32.mrb[17].mxu1 }
 0x924   :  { %v4224_v26 = vadd.f32 %v4223_v16, %v4222_v30  ;;  %v4259_v62 = vadd.f32 %v4258_v2, %v4257_v38  ;;  %v355_v30 = vld [vmem:[#allocation5 + $0xa8] sm:$0xff]  ;;  %v353_v38 = vld [vmem:[#allocation5 + $0x98] sm:$0xff] }
 0x925   :  { %v357_v16 = vld [vmem:[#allocation5 + $0xb8] sm:$0xff] }
 0x926   :  { %v2908_v10 = vadd.f32 %v4259_v62, %v4224_v26  ;;  %v350_v62 = vld [vmem:[#allocation5 + $0x80] sm:$0xff] }
 0x928   :  { %4046 = vmatmul.mubr.msk.f32.vlgmr.msra.gmra.mrb[18].mxu0 %vm1676_vm0, %v2908_v10  ;;  %4047 = vmatmul.mubr.msk.f32.vlgmr.msra.gmra.mrb[18].mxu1 %vm1676_vm0, %v2908_v10  ;;  %v354_v10 = vld [vmem:[#allocation5 + $0xa0] sm:$0xff] }
 0x929   :  { %5573 = vmatpush3.bf16.msra.mxu0 %v7280_v22  ;;  %5605 = vmatpush3.bf16.msra.mxu1 %v7282_v28  ;;  %v341_v28 = vld [vmem:[#allocation5 + $0x38] sm:$0xff] }
 0x92a   :  { %5575 = vmatprep.subr.bf16.mxu0 %v7292_v11  ;;  %5607 = vmatprep.subr.bf16.mxu1 %v7294_v47  ;;  %v335_v11 = vld [vmem:[#allocation5 + $0x8] sm:$0xff] }
 0x92b   :  { %v339_v47 = vld [vmem:[#allocation5 + $0x28] sm:$0xff] }
 0x92c   :  { %v5642_v22 = vpack.c.bf16 %v339_v47, %v335_v11  ;;  %v5652_v11 = vpack.c.bf16 %v354_v10, %v350_v62  ;;  %v389_v62 = vld [vmem:[#allocation5 + $0x1b8] sm:$0xff] }
 0x92d   :  { %5577 = vmatpush3.bf16.msra.mxu0 %v7318_v20  ;;  %5609 = vmatpush3.bf16.msra.mxu1 %v7320_v44  ;;  %v5770_v20 = vpack.c.bf16 %v341_v28, %v337_v42  ;;  %v334_v44 = vld [vmem:[#allocation5] sm:$0xff] }
 0x92e   :  { %5579 = vmatprep.subr.bf16.mxu0 %v7330_v61  ;;  %5611 = vmatprep.subr.bf16.mxu1 %v7332_v27  ;;  %v338_v61 = vld [vmem:[#allocation5 + $0x20] sm:$0xff] }
 0x92f   :  { %v358_v42 = vld [vmem:[#allocation5 + $0xc0] sm:$0xff] }
 0x931   :  { %5581 = vmatpush3.bf16.msra.mxu0 %v7354_v13  ;;  %5613 = vmatpush3.bf16.msra.mxu1 %v7356_v29 }
 0x932   :  { %5583 = vmatprep.subr.bf16.mxu0 %v7366_v55  ;;  %5615 = vmatprep.subr.bf16.mxu1 %v7368_v59 }
 0x935   :  { %5585 = vmatpush3.bf16.msra.mxu0 %v7390_v54  ;;  %5617 = vmatpush3.bf16.msra.mxu1 %v7392_v24  ;;  %v336_v54 = vld [vmem:[#allocation5 + $0x10] sm:$0xff] }
 0x936   :  { %5587 = vmatprep.subr.bf16.mxu0 %v7402_v9  ;;  %5619 = vmatprep.subr.bf16.mxu1 %v7404_v6  ;;  %v340_v24 = vld [vmem:[#allocation5 + $0x30] sm:$0xff] }
 0x939   :  { %5589 = vmatpush3.bf16.msra.mxu0 %v7426_v36  ;;  %5621 = vmatpush3.bf16.msra.mxu1 %v7428_v46  ;;  %v343_v36 = vld [vmem:[#allocation5 + $0x48] sm:$0xff] }
 0x93a   :  { %5591 = vmatprep.subr.bf16.mxu0 %v7438_v53  ;;  %5623 = vmatprep.subr.bf16.mxu1 %v7440_v49 }
 0x93d   :  { %5593 = vmatpush3.bf16.msra.mxu0 %v7462_v45  ;;  %5625 = vmatpush3.bf16.msra.mxu1 %v7464_v60  ;;  %v347_v60 = vld [vmem:[#allocation5 + $0x68] sm:$0xff] }
 0x93e   :  { %5595 = vmatprep.subr.bf16.mxu0 %v7471_v41  ;;  %5627 = vmatprep.subr.bf16.mxu1 %v7473_v35 }
 0x941   :  { %5597 = vmatpush3.bf16.msra.mxu0 %v7486_v19  ;;  %5629 = vmatpush3.bf16.msra.mxu1 %v7488_v37  ;;  %v345_v19 = vld [vmem:[#allocation5 + $0x58] sm:$0xff] }
 0x942   :  { %5599 = vmatprep.subr.bf16.mxu0 %v7503_v48  ;;  %5631 = vmatprep.subr.bf16.mxu1 %v7514_v4  ;;  %v349_v37 = vld [vmem:[#allocation5 + $0x78] sm:$0xff] }
 0x945   :  { %5601 = vmatpush3.bf16.msra.mxu0 %v7516_v32  ;;  %5633 = vmatpush3.bf16.msra.mxu1 %v7525_v23 }
 0x946   :  { %5635 = vmatprep.subr.bf16.mxu0 %v9191_v17  ;;  %5639 = vmatprep.subr.bf16.mxu1 %v9192_v52  ;;  %v351_v17 = vld [vmem:[#allocation5 + $0x88] sm:$0xff] }
 0x9fb   :  { %v2980_v49 = vpop.f32.mrb[18].mxu0  ;;  %v3051_v41 = vpop.f32.mrb[18].mxu1 }
 0x9fc   :  { %v8089_v53 = vsub.f32 %v6158_v43, %v2980_v49  ;;  %v8091_v35 = vsub.f32 %v6160_v58, %v3051_v41  ;;  %v2982_v6 = vpop.f32.mrb[19].mxu0  ;;  %v3053_v9 = vpop.f32.mrb[19].mxu1  ;;  %v346_v43 = vld [vmem:[#allocation5 + $0x60] sm:$0xff]  ;;  %v5646_v58 = vpack.c.bf16 %v347_v60, %v343_v36  ;;  %v5650_v49 = vpack.c.bf16 %v355_v30, %v351_v17  ;;  %v376_v30 = vld [vmem:[#allocation5 + $0x150] sm:$0xff] }
 0x9fd   :  { %v8093_v59 = vsub.f32 %v6159_v7, %v2982_v6  ;;  %v8095_v55 = vsub.f32 %v6161_v18, %v3053_v9  ;;  %v5774_v7 = vpack.c.bf16 %v349_v37, %v345_v19  ;;  %v344_v18 = vld [vmem:[#allocation5 + $0x50] sm:$0xff]  ;;  %v5778_v41 = vpack.c.bf16 %v357_v16, %v353_v38  ;;  %v370_v60 = vld [vmem:[#allocation5 + $0x120] sm:$0xff]  ;;  %v383_v16 = vld [vmem:[#allocation5 + $0x188] sm:$0xff] }
 0x9fe   :  { %v3060_v27 = vmul.f32 %v8089_v53, %v8089_v53  ;;  %v3062_v31 = vmul.f32 %v8091_v35, %v8091_v35  ;;  %v5776_v26 = vpack.c.bf16 %v348_v14, %v344_v18  ;;  %v352_v6 = vld [vmem:[#allocation5 + $0x90] sm:$0xff]  ;;  %v378_v18 = vld [vmem:[#allocation5 + $0x160] sm:$0xff] }
 0x9ff   :  { %v3061_v32 = vmul.f32 %v8093_v59, %v8093_v59  ;;  %v3063_v23 = vmul.f32 %v8095_v55, %v8095_v55  ;;  %v356_v9 = vld [vmem:[#allocation5 + $0xb0] sm:$0xff] }
 0xa00   :  { %v5780_v47 = vpack.c.bf16 %v356_v9, %v352_v6  ;;  %v380_v38 = vld [vmem:[#allocation5 + $0x170] sm:$0xff]  ;;  %v386_v6 = vld [vmem:[#allocation5 + $0x1a0] sm:$0xff] }
 0xa01   :  { %3128 = vmatprep.mubr.f32.mxu0 %v3061_v32  ;;  %3198 = vmatprep.mubr.f32.mxu1 %v3063_v23  ;;  %v359_v32 = vld [vmem:[#allocation5 + $0xc8] sm:$0xff] }
 0xa02   :  { %3129 = vmatmul.mubr.f32.vlgmr.msra.gmra.mrb[20].mxu0 %v3060_v27  ;;  %3199 = vmatmul.mubr.f32.vlgmr.msra.gmra.mrb[20].mxu1 %v3062_v31  ;;  %v363_v23 = vld [vmem:[#allocation5 + $0xe8] sm:$0xff]  ;;  %v361_v27 = vld [vmem:[#allocation5 + $0xd8] sm:$0xff] }
 0xa03   :  { %5637 = vmatpush1.bf16.msra.mxu0 %v7595_v40  ;;  %5641 = vmatpush1.bf16.msra.mxu1 %v7604_v57  ;;  %v5644_v57 = vpack.c.bf16 %v338_v61, %v334_v44  ;;  %v5772_v40 = vpack.c.bf16 %v340_v24, %v336_v54  ;;  %v365_v31 = vld [vmem:[#allocation5 + $0xf8] sm:$0xff]  ;;  %v5654_v28 = vpack.c.bf16 %v363_v23, %v359_v32  ;;  %v360_v44 = vld [vmem:[#allocation5 + $0xd0] sm:$0xff] }
 0xa04   :  { %3271 = vmatprep.mubr.f32.mxu0 %v8944_v56  ;;  %3342 = vmatprep.mubr.f32.mxu1 %v8944_v56  ;;  %v342_v56 = vld [vmem:[#allocation5 + $0x40] sm:$0xff]  ;;  %v364_v61 = vld [vmem:[#allocation5 + $0xf0] sm:$0xff]  ;;  %v369_v54 = vld [vmem:[#allocation5 + $0x118] sm:$0xff] }
 0xa05   :  { %5643 = vmatprep.subr.bf16.mxu0 %v5642_v22  ;;  %5771 = vmatprep.subr.bf16.mxu1 %v5770_v20  ;;  %v5648_v2 = vpack.c.bf16 %v346_v43, %v342_v56  ;;  %v362_v22 = vld [vmem:[#allocation5 + $0xe0] sm:$0xff]  ;;  %v5782_v20 = vpack.c.bf16 %v365_v31, %v361_v27  ;;  %v373_v24 = vld [vmem:[#allocation5 + $0x138] sm:$0xff]  ;;  %v384_v23 = vld [vmem:[#allocation5 + $0x190] sm:$0xff] }
 0xa06   :  { %v5656_v36 = vpack.c.bf16 %v362_v22, %v358_v42  ;;  %v5786_v37 = vpack.c.bf16 %v373_v24, %v369_v54  ;;  %v377_v56 = vld [vmem:[#allocation5 + $0x158] sm:$0xff]  ;;  %v388_v27 = vld [vmem:[#allocation5 + $0x1b0] sm:$0xff]  ;;  %v391_v31 = vld [vmem:[#allocation5 + $0x1c8] sm:$0xff] }
 0xa07   :  { %v381_v43 = vld [vmem:[#allocation5 + $0x178] sm:$0xff]  ;;  %v396_v54 = vld [vmem:[#allocation5 + $0x1f0] sm:$0xff]  ;;  %v399_v24 = vld [vmem:[#allocation5 + $0x208] sm:$0xff] }
 0xa08   :  { %v5790_v17 = vpack.c.bf16 %v381_v43, %v377_v56  ;;  %v397_v42 = vld [vmem:[#allocation5 + $0x1f8] sm:$0xff]  ;;  %v404_v56 = vld [vmem:[#allocation5 + $0x230] sm:$0xff]  ;;  %v407_v43 = vld [vmem:[#allocation5 + $0x248] sm:$0xff] }
 0xad5   :  { %v4292_v13 = vpop.f32.mrb[20].mxu0  ;;  %v4327_v29 = vpop.f32.mrb[20].mxu1 }
 0xad6   :  { %v4293_v46 = vpop.f32.mrb[21].mxu0  ;;  %v4328_v45 = vpop.f32.mrb[21].mxu1 }
 0xad7   :  { %v4294_v48 = vadd.f32 %v4293_v46, %v4292_v13  ;;  %v4329_v4 = vadd.f32 %v4328_v45, %v4327_v29  ;;  %v367_v13 = vld [vmem:[#allocation5 + $0x108] sm:$0xff]  ;;  %v5784_v46 = vpack.c.bf16 %v364_v61, %v360_v44  ;;  %v366_v45 = vld [vmem:[#allocation5 + $0x100] sm:$0xff] }
 0xad8   :  { %v371_v29 = vld [vmem:[#allocation5 + $0x128] sm:$0xff]  ;;  %v394_v44 = vld [vmem:[#allocation5 + $0x1e0] sm:$0xff] }
 0xad9   :  { %v3201_v52 = vadd.f32 %v4329_v4, %v4294_v48  ;;  %v5658_v19 = vpack.c.bf16 %v371_v29, %v367_v13  ;;  %v368_v48 = vld [vmem:[#allocation5 + $0x110] sm:$0xff] }
 0xada   :  { %v372_v4 = vld [vmem:[#allocation5 + $0x130] sm:$0xff] }
 0xadb   :  { %4048 = vmatmul.mubr.msk.f32.vlgmr.msra.gmra.mrb[22].mxu0 %vm1676_vm0, %v3201_v52  ;;  %4049 = vmatmul.mubr.msk.f32.vlgmr.msra.gmra.mrb[22].mxu1 %vm1676_vm0, %v3201_v52  ;;  %v5660_v52 = vpack.c.bf16 %v370_v60, %v366_v45  ;;  %v392_v29 = vld [vmem:[#allocation5 + $0x1d0] sm:$0xff]  ;;  %v405_v45 = vld [vmem:[#allocation5 + $0x238] sm:$0xff] }
 0xadc   :  { %5645 = vmatpush1.bf16.msra.mxu0 %v5644_v57  ;;  %5773 = vmatpush1.bf16.msra.mxu1 %v5772_v40  ;;  %v375_v57 = vld [vmem:[#allocation5 + $0x148] sm:$0xff] }
 0xadd   :  { %5647 = vmatprep.subr.bf16.mxu0 %v5646_v58  ;;  %5775 = vmatprep.subr.bf16.mxu1 %v5774_v7  ;;  %v379_v40 = vld [vmem:[#allocation5 + $0x168] sm:$0xff]  ;;  %v5788_v58 = vpack.c.bf16 %v372_v4, %v368_v48  ;;  %v374_v7 = vld [vmem:[#allocation5 + $0x140] sm:$0xff] }
 0xade   :  { %v5662_v14 = vpack.c.bf16 %v379_v40, %v375_v57  ;;  %v5664_v10 = vpack.c.bf16 %v378_v18, %v374_v7  ;;  %v402_v48 = vld [vmem:[#allocation5 + $0x220] sm:$0xff]  ;;  %v400_v40 = vld [vmem:[#allocation5 + $0x210] sm:$0xff]  ;;  %v413_v7 = vld [vmem:[#allocation5 + $0x278] sm:$0xff] }
 0xae0   :  { %5649 = vmatpush1.bf16.msra.mxu0 %v5648_v2  ;;  %5777 = vmatpush1.bf16.msra.mxu1 %v5776_v26  ;;  %v387_v2 = vld [vmem:[#allocation5 + $0x1a8] sm:$0xff]  ;;  %v385_v26 = vld [vmem:[#allocation5 + $0x198] sm:$0xff] }
 0xae1   :  { %5651 = vmatprep.subr.bf16.mxu0 %v5650_v49  ;;  %5779 = vmatprep.subr.bf16.mxu1 %v5778_v41  ;;  %v5792_v49 = vpack.c.bf16 %v380_v38, %v376_v30  ;;  %v382_v41 = vld [vmem:[#allocation5 + $0x180] sm:$0xff]  ;;  %v5666_v9 = vpack.c.bf16 %v387_v2, %v383_v16  ;;  %v5794_v32 = vpack.c.bf16 %v389_v62, %v385_v26  ;;  %v408_v2 = vld [vmem:[#allocation5 + $0x250] sm:$0xff] }
 0xae2   :  { %v5668_v22 = vpack.c.bf16 %v386_v6, %v382_v41  ;;  %v410_v16 = vld [vmem:[#allocation5 + $0x260] sm:$0xff]  ;;  %v412_v26 = vld [vmem:[#allocation5 + $0x270] sm:$0xff]  ;;  %v419_v41 = vld [vmem:[#allocation5 + $0x2a8] sm:$0xff] }
 0xae3   :  { %v417_v6 = vld [vmem:[#allocation5 + $0x298] sm:$0xff] }
 0xae4   :  { %5653 = vmatpush1.bf16.msra.mxu0 %v5652_v11  ;;  %5781 = vmatpush1.bf16.msra.mxu1 %v5780_v47  ;;  %v395_v11 = vld [vmem:[#allocation5 + $0x1e8] sm:$0xff]  ;;  %v393_v47 = vld [vmem:[#allocation5 + $0x1d8] sm:$0xff] }
 0xae5   :  { %5655 = vmatprep.subr.bf16.mxu0 %v5654_v28  ;;  %5783 = vmatprep.subr.bf16.mxu1 %v5782_v20  ;;  %v5796_v28 = vpack.c.bf16 %v388_v27, %v384_v23  ;;  %v390_v20 = vld [vmem:[#allocation5 + $0x1c0] sm:$0xff]  ;;  %v5670_v61 = vpack.c.bf16 %v395_v11, %v391_v31  ;;  %v5798_v13 = vpack.c.bf16 %v397_v42, %v393_v47  ;;  %v416_v47 = vld [vmem:[#allocation5 + $0x290] sm:$0xff] }
 0xae6   :  { %v5672_v60 = vpack.c.bf16 %v394_v44, %v390_v20  ;;  %v414_v23 = vld [vmem:[#allocation5 + $0x280] sm:$0xff]  ;;  %v420_v42 = vld [vmem:[#allocation5 + $0x2b0] sm:$0xff]  ;;  %v427_v20 = vld [vmem:[#allocation5 + $0x2e8] sm:$0xff] }
 0xae7   :  { %v418_v27 = vld [vmem:[#allocation5 + $0x2a0] sm:$0xff]  ;;  %v425_v44 = vld [vmem:[#allocation5 + $0x2d8] sm:$0xff] }
 0xae8   :  { %5657 = vmatpush1.bf16.msra.mxu0 %v5656_v36  ;;  %5785 = vmatpush1.bf16.msra.mxu1 %v5784_v46  ;;  %v403_v36 = vld [vmem:[#allocation5 + $0x228] sm:$0xff]  ;;  %v401_v46 = vld [vmem:[#allocation5 + $0x218] sm:$0xff]  ;;  %v5684_v11 = vpack.c.bf16 %v418_v27, %v414_v23 }
 0xae9   :  { %5659 = vmatprep.subr.bf16.mxu0 %v5658_v19  ;;  %5787 = vmatprep.subr.bf16.mxu1 %v5786_v37  ;;  %v5800_v19 = vpack.c.bf16 %v396_v54, %v392_v29  ;;  %v398_v37 = vld [vmem:[#allocation5 + $0x200] sm:$0xff]  ;;  %v5674_v4 = vpack.c.bf16 %v403_v36, %v399_v24  ;;  %v5802_v57 = vpack.c.bf16 %v405_v45, %v401_v46  ;;  %v424_v46 = vld [vmem:[#allocation5 + $0x2d0] sm:$0xff]  ;;  %v449_v23 = vld [vmem:[#allocation5 + $0x398] sm:$0xff] }
 0xaea   :  { %v5676_v18 = vpack.c.bf16 %v402_v48, %v398_v37  ;;  %v422_v29 = vld [vmem:[#allocation5 + $0x2c0] sm:$0xff]  ;;  %v428_v45 = vld [vmem:[#allocation5 + $0x2f0] sm:$0xff]  ;;  %v435_v37 = vld [vmem:[#allocation5 + $0x328] sm:$0xff] }
 0xaeb   :  { %v426_v54 = vld [vmem:[#allocation5 + $0x2e0] sm:$0xff]  ;;  %v433_v48 = vld [vmem:[#allocation5 + $0x318] sm:$0xff] }
 0xaec   :  { %5661 = vmatpush1.bf16.msra.mxu0 %v5660_v52  ;;  %5789 = vmatpush1.bf16.msra.mxu1 %v5788_v58  ;;  %v411_v52 = vld [vmem:[#allocation5 + $0x268] sm:$0xff]  ;;  %v409_v58 = vld [vmem:[#allocation5 + $0x258] sm:$0xff]  ;;  %v5688_v36 = vpack.c.bf16 %v426_v54, %v422_v29 }
 0xaed   :  { %5663 = vmatprep.subr.bf16.mxu0 %v5662_v14  ;;  %5791 = vmatprep.subr.bf16.mxu1 %v5790_v17  ;;  %v5804_v14 = vpack.c.bf16 %v404_v56, %v400_v40  ;;  %v406_v17 = vld [vmem:[#allocation5 + $0x240] sm:$0xff]  ;;  %v5678_v30 = vpack.c.bf16 %v411_v52, %v407_v43  ;;  %v5806_v38 = vpack.c.bf16 %v413_v7, %v409_v58  ;;  %v432_v58 = vld [vmem:[#allocation5 + $0x310] sm:$0xff]  ;;  %v457_v29 = vld [vmem:[#allocation5 + $0x3d8] sm:$0xff] }
 0xaee   :  { %v5680_v62 = vpack.c.bf16 %v410_v16, %v406_v17  ;;  %v430_v40 = vld [vmem:[#allocation5 + $0x300] sm:$0xff]  ;;  %v436_v7 = vld [vmem:[#allocation5 + $0x330] sm:$0xff]  ;;  %v443_v17 = vld [vmem:[#allocation5 + $0x368] sm:$0xff] }
 0xaef   :  { %v434_v56 = vld [vmem:[#allocation5 + $0x320] sm:$0xff]  ;;  %v445_v16 = vld [vmem:[#allocation5 + $0x378] sm:$0xff] }
 0xaf0   :  { %5665 = vmatpush1.bf16.msra.mxu0 %v5664_v10  ;;  %5793 = vmatpush1.bf16.msra.mxu1 %v5792_v49  ;;  %v5808_v10 = vpack.c.bf16 %v412_v26, %v408_v2  ;;  %v415_v49 = vld [vmem:[#allocation5 + $0x288] sm:$0xff]  ;;  %v5692_v52 = vpack.c.bf16 %v434_v56, %v430_v40  ;;  %v438_v2 = vld [vmem:[#allocation5 + $0x340] sm:$0xff]  ;;  %v461_v54 = vld [vmem:[#allocation5 + $0x3f8] sm:$0xff] }
 0xaf1   :  { %5667 = vmatprep.subr.bf16.mxu0 %v5666_v9  ;;  %5795 = vmatprep.subr.bf16.mxu1 %v5794_v32  ;;  %v5682_v9 = vpack.c.bf16 %v419_v41, %v415_v49  ;;  %v421_v32 = vld [vmem:[#allocation5 + $0x2b8] sm:$0xff]  ;;  %v442_v26 = vld [vmem:[#allocation5 + $0x360] sm:$0xff]  ;;  %v440_v49 = vld [vmem:[#allocation5 + $0x350] sm:$0xff] }
 0xaf2   :  { %v5810_v31 = vpack.c.bf16 %v421_v32, %v417_v6  ;;  %v444_v41 = vld [vmem:[#allocation5 + $0x370] sm:$0xff]  ;;  %v451_v32 = vld [vmem:[#allocation5 + $0x3a8] sm:$0xff]  ;;  %v465_v40 = vld [vmem:[#allocation5 + $0x418] sm:$0xff] }
 0xaf3   :  { %v5824_v6 = vpack.c.bf16 %v444_v41, %v440_v49 }
 0xaf4   :  { %5669 = vmatpush1.bf16.msra.mxu0 %v5668_v22  ;;  %5797 = vmatpush1.bf16.msra.mxu1 %v5796_v28  ;;  %v5812_v22 = vpack.c.bf16 %v420_v42, %v416_v47  ;;  %v423_v28 = vld [vmem:[#allocation5 + $0x2c8] sm:$0xff]  ;;  %v450_v47 = vld [vmem:[#allocation5 + $0x3a0] sm:$0xff] }
 0xaf5   :  { %5671 = vmatprep.subr.bf16.mxu0 %v5670_v61  ;;  %5799 = vmatprep.subr.bf16.mxu1 %v5798_v13  ;;  %v5686_v61 = vpack.c.bf16 %v427_v20, %v423_v28  ;;  %v429_v13 = vld [vmem:[#allocation5 + $0x2f8] sm:$0xff]  ;;  %v448_v28 = vld [vmem:[#allocation5 + $0x390] sm:$0xff] }
 0xaf6   :  { %v5814_v24 = vpack.c.bf16 %v429_v13, %v425_v44  ;;  %v452_v20 = vld [vmem:[#allocation5 + $0x3b0] sm:$0xff]  ;;  %v455_v44 = vld [vmem:[#allocation5 + $0x3c8] sm:$0xff] }
 0xaf7   :  { %v459_v13 = vld [vmem:[#allocation5 + $0x3e8] sm:$0xff] }
 0xaf8   :  { %5673 = vmatpush1.bf16.msra.mxu0 %v5672_v60  ;;  %5801 = vmatpush1.bf16.msra.mxu1 %v5800_v19  ;;  %v5816_v60 = vpack.c.bf16 %v428_v45, %v424_v46  ;;  %v431_v19 = vld [vmem:[#allocation5 + $0x308] sm:$0xff]  ;;  %v454_v46 = vld [vmem:[#allocation5 + $0x3c0] sm:$0xff] }
 0xaf9   :  { %5675 = vmatprep.subr.bf16.mxu0 %v5674_v4  ;;  %5803 = vmatprep.subr.bf16.mxu1 %v5802_v57  ;;  %v5690_v4 = vpack.c.bf16 %v435_v37, %v431_v19  ;;  %v437_v57 = vld [vmem:[#allocation5 + $0x338] sm:$0xff]  ;;  %v458_v45 = vld [vmem:[#allocation5 + $0x3e0] sm:$0xff]  ;;  %v460_v37 = vld [vmem:[#allocation5 + $0x3f0] sm:$0xff] }
 0xafa   :  { %v5818_v43 = vpack.c.bf16 %v437_v57, %v433_v48  ;;  %v5704_v19 = vpack.c.bf16 %v458_v45, %v454_v46  ;;  %v467_v57 = vld [vmem:[#allocation5 + $0x428] sm:$0xff]  ;;  %v481_v46 = vld [vmem:[#allocation5 + $0x498] sm:$0xff] }
 0xafb   :  { %v485_v45 = vld [vmem:[#allocation5 + $0x4b8] sm:$0xff] }
 0xafc   :  { %5677 = vmatpush1.bf16.msra.mxu0 %v5676_v18  ;;  %5805 = vmatpush1.bf16.msra.mxu1 %v5804_v14  ;;  %v5820_v18 = vpack.c.bf16 %v436_v7, %v432_v58  ;;  %v439_v14 = vld [vmem:[#allocation5 + $0x348] sm:$0xff] }
 0xafd   :  { %5679 = vmatprep.subr.bf16.mxu0 %v5678_v30  ;;  %5807 = vmatprep.subr.bf16.mxu1 %v5806_v38  ;;  %v441_v30 = vld [vmem:[#allocation5 + $0x358] sm:$0xff]  ;;  %v5694_v38 = vpack.c.bf16 %v443_v17, %v439_v14 }
 0xb00   :  { %5681 = vmatpush1.bf16.msra.mxu0 %v5680_v62  ;;  %5809 = vmatpush1.bf16.msra.mxu1 %v5808_v10  ;;  %v5822_v62 = vpack.c.bf16 %v445_v16, %v441_v30  ;;  %v5696_v10 = vpack.c.bf16 %v442_v26, %v438_v2 }
 0xb01   :  { %5683 = vmatprep.subr.bf16.mxu0 %v5682_v9  ;;  %5811 = vmatprep.subr.bf16.mxu1 %v5810_v31  ;;  %v447_v9 = vld [vmem:[#allocation5 + $0x388] sm:$0xff]  ;;  %v453_v31 = vld [vmem:[#allocation5 + $0x3b8] sm:$0xff] }
 0xb02   :  { %v5698_v27 = vpack.c.bf16 %v451_v32, %v447_v9  ;;  %v5826_v42 = vpack.c.bf16 %v453_v31, %v449_v23 }
 0xb04   :  { %5685 = vmatpush1.bf16.msra.mxu0 %v5684_v11  ;;  %5813 = vmatpush1.bf16.msra.mxu1 %v5812_v22  ;;  %v446_v11 = vld [vmem:[#allocation5 + $0x380] sm:$0xff] }
 0xb05   :  { %5687 = vmatprep.subr.bf16.mxu0 %v5686_v61  ;;  %5815 = vmatprep.subr.bf16.mxu1 %v5814_v24  ;;  %v5700_v22 = vpack.c.bf16 %v450_v47, %v446_v11  ;;  %v5828_v61 = vpack.c.bf16 %v452_v20, %v448_v28  ;;  %v5702_v24 = vpack.c.bf16 %v459_v13, %v455_v44  ;;  %v466_v11 = vld [vmem:[#allocation5 + $0x420] sm:$0xff]  ;;  %v468_v47 = vld [vmem:[#allocation5 + $0x430] sm:$0xff]  ;;  %v475_v28 = vld [vmem:[#allocation5 + $0x468] sm:$0xff] }
 0xb06   :  { %v477_v20 = vld [vmem:[#allocation5 + $0x478] sm:$0xff]  ;;  %v472_v13 = vld [vmem:[#allocation5 + $0x450] sm:$0xff] }
 0xb08   :  { %5689 = vmatpush1.bf16.msra.mxu0 %v5688_v36  ;;  %5817 = vmatpush1.bf16.msra.mxu1 %v5816_v60  ;;  %v5830_v36 = vpack.c.bf16 %v461_v54, %v457_v29  ;;  %v456_v60 = vld [vmem:[#allocation5 + $0x3d0] sm:$0xff]  ;;  %v479_v54 = vld [vmem:[#allocation5 + $0x488] sm:$0xff] }
 0xb09   :  { %5691 = vmatprep.subr.bf16.mxu0 %v5690_v4  ;;  %5819 = vmatprep.subr.bf16.mxu1 %v5818_v43  ;;  %v5832_v48 = vpack.c.bf16 %v460_v37, %v456_v60  ;;  %v463_v4 = vld [vmem:[#allocation5 + $0x408] sm:$0xff]  ;;  %v469_v43 = vld [vmem:[#allocation5 + $0x438] sm:$0xff]  ;;  %v476_v29 = vld [vmem:[#allocation5 + $0x470] sm:$0xff] }
 0xb0a   :  { %v5706_v56 = vpack.c.bf16 %v467_v57, %v463_v4  ;;  %v478_v37 = vld [vmem:[#allocation5 + $0x480] sm:$0xff]  ;;  %v5842_v4 = vpack.c.bf16 %v485_v45, %v481_v46  ;;  %v480_v57 = vld [vmem:[#allocation5 + $0x490] sm:$0xff] }
 0xb0b   :  { %v512_v45 = vld [vmem:[#allocation5 + $0x590] sm:$0xff] }
 0xb0c   :  { %5693 = vmatpush1.bf16.msra.mxu0 %v5692_v52  ;;  %5821 = vmatpush1.bf16.msra.mxu1 %v5820_v18  ;;  %v5834_v52 = vpack.c.bf16 %v469_v43, %v465_v40  ;;  %v484_v40 = vld [vmem:[#allocation5 + $0x4b0] sm:$0xff]  ;;  %v491_v43 = vld [vmem:[#allocation5 + $0x4e8] sm:$0xff] }
 0xb0d   :  { %5695 = vmatprep.subr.bf16.mxu0 %v5694_v38  ;;  %5823 = vmatprep.subr.bf16.mxu1 %v5822_v62 }
 0xb10   :  { %5697 = vmatpush1.bf16.msra.mxu0 %v5696_v10  ;;  %5825 = vmatpush1.bf16.msra.mxu1 %v5824_v6 }
 0xb11   :  { %5699 = vmatprep.subr.bf16.mxu0 %v5698_v27  ;;  %5827 = vmatprep.subr.bf16.mxu1 %v5826_v42  ;;  %v462_v27 = vld [vmem:[#allocation5 + $0x400] sm:$0xff] }
 0xb14   :  { %5701 = vmatpush1.bf16.msra.mxu0 %v5700_v22  ;;  %5829 = vmatpush1.bf16.msra.mxu1 %v5828_v61  ;;  %v471_v22 = vld [vmem:[#allocation5 + $0x448] sm:$0xff]  ;;  %v474_v61 = vld [vmem:[#allocation5 + $0x460] sm:$0xff] }
 0xb15   :  { %5703 = vmatprep.subr.bf16.mxu0 %v5702_v24  ;;  %5831 = vmatprep.subr.bf16.mxu1 %v5830_v36  ;;  %v483_v36 = vld [vmem:[#allocation5 + $0x4a8] sm:$0xff] }
 0xb18   :  { %5705 = vmatpush1.bf16.msra.mxu0 %v5704_v19  ;;  %5833 = vmatpush1.bf16.msra.mxu1 %v5832_v48  ;;  %v5840_v19 = vpack.c.bf16 %v476_v29, %v472_v13  ;;  %v5714_v48 = vpack.c.bf16 %v483_v36, %v479_v54  ;;  %v517_v13 = vld [vmem:[#allocation5 + $0x5b8] sm:$0xff] }
 0xb19   :  { %5707 = vmatprep.subr.bf16.mxu0 %v5706_v56  ;;  %5835 = vmatprep.subr.bf16.mxu1 %v5834_v52  ;;  %v487_v56 = vld [vmem:[#allocation5 + $0x4c8] sm:$0xff]  ;;  %v489_v52 = vld [vmem:[#allocation5 + $0x4d8] sm:$0xff] }
 0xbae   :  { %v3273_v58 = vpop.f32.mrb[22].mxu0  ;;  %v8111_v7 = vpop.f32.mrb[22].mxu1 }
 0xbaf   :  { %v3274_v18 = vadd.f32 1e-10, %v3273_v58  ;;  %v3275_v14 = vpop.f32.mrb[23].mxu0  ;;  %v3346_v17 = vpop.f32.mrb[23].mxu1  ;;  %v493_v58 = vld [vmem:[#allocation5 + $0x4f8] sm:$0xff] }
 0xbb0   :  { %v3276_v30 = vadd.f32 1e-10, %v3275_v14  ;;  %v3347_v38 = vadd.f32 1e-10, %v3346_v17  ;;  %v486_v14 = vld [vmem:[#allocation5 + $0x4c0] sm:$0xff] }
 0xbb1   :  { %6206 = vrsqrt.f32 %v3274_v18  ;;  %v5844_v18 = vpack.c.bf16 %v484_v40, %v480_v57  ;;  %v490_v17 = vld [vmem:[#allocation5 + $0x4e0] sm:$0xff] }
 0xbb2   :  { %6208 = vrsqrt.f32 %v3276_v30  ;;  %v5718_v30 = vpack.c.bf16 %v491_v43, %v487_v56  ;;  %v518_v57 = vld [vmem:[#allocation5 + $0x5c0] sm:$0xff] }
 0xbb3   :  { %6210 = vrsqrt.f32 %v3347_v38  ;;  %v5846_v38 = vpack.c.bf16 %v493_v58, %v489_v52  ;;  %v522_v40 = vld [vmem:[#allocation5 + $0x5e0] sm:$0xff]  ;;  %v520_v52 = vld [vmem:[#allocation5 + $0x5d0] sm:$0xff] }
 0xbb4   :  { %v524_v58 = vld [vmem:[#allocation5 + $0x5f0] sm:$0xff] }
 0xbbb   :  { %v6207_v16 = vpop.eup %6206 }
 0xbbc   :  { %v3353_v2 = vmul.f32 %v6207_v16, %v8089_v53  ;;  %v6209_v26 = vpop.eup %6208  ;;  %v464_v53 = vld [vmem:[#allocation5 + $0x410] sm:$0xff] }
 0xbbd   :  { %v6211_v62 = vpop.eup %6210  ;;  %v3354_v10 = vmul.f32 %v6209_v26, %v8093_v59  ;;  %v5836_v44 = vpack.c.bf16 %v468_v47, %v464_v53  ;;  %v488_v16 = vld [vmem:[#allocation5 + $0x4d0] sm:$0xff]  ;;  %v495_v26 = vld [vmem:[#allocation5 + $0x508] sm:$0xff] }
 0xbbe   :  { %v3357_v49 = vmul.f32 %v3353_v2, %v7753_v34  ;;  %v3356_v41 = vmul.f32 %v6211_v62, %v8095_v55  ;;  %v473_v55 = vld [vmem:[#allocation5 + $0x458] sm:$0xff]  ;;  %v492_v2 = vld [vmem:[#allocation5 + $0x4f0] sm:$0xff]  ;;  %v499_v62 = vld [vmem:[#allocation5 + $0x528] sm:$0xff] }
 0xbbf   :  { %v3358_v6 = vmul.f32 %v3354_v10, %v7758_v50  ;;  %v5838_v24 = vpack.c.bf16 %v477_v20, %v473_v55  ;;  %v497_v10 = vld [vmem:[#allocation5 + $0x518] sm:$0xff]  ;;  %v503_v53 = vld [vmem:[#allocation5 + $0x548] sm:$0xff]  ;;  %v506_v55 = vld [vmem:[#allocation5 + $0x560] sm:$0xff] }
 0xbc0   :  { %v3361_v9 = vadd.f32 %v3357_v49, %v7762_v51  ;;  %v3360_v32 = vmul.f32 %v3356_v41, %v7766_v1  ;;  %v5708_v51 = vpack.c.bf16 %v466_v11, %v462_v27  ;;  %v470_v1 = vld [vmem:[#allocation5 + $0x440] sm:$0xff]  ;;  %v501_v49 = vld [vmem:[#allocation5 + $0x538] sm:$0xff]  ;;  %v5720_v41 = vpack.c.bf16 %v490_v17, %v486_v14  ;;  %v500_v11 = vld [vmem:[#allocation5 + $0x530] sm:$0xff] }
 0xbc1   :  { %v3362_v23 = vadd.f32 %v3358_v6, %v7773_v15  ;;  %v5712_v60 = vpack.c.bf16 %v474_v61, %v470_v1  ;;  %v5848_v6 = vpack.c.bf16 %v492_v2, %v488_v16  ;;  %v5850_v27 = vpack.c.bf16 %v501_v49, %v497_v10  ;;  %v507_v47 = vld [vmem:[#allocation5 + $0x568] sm:$0xff]  ;;  %v529_v14 = vld [vmem:[#allocation5 + $0x618] sm:$0xff]  ;;  %v526_v16 = vld [vmem:[#allocation5 + $0x600] sm:$0xff] }
 0xbc2   :  { %v3365_v31 = vmul.f32 0.7, %v3361_v9  ;;  %v3364_v42 = vadd.f32 %v3360_v32, %v7783_v12  ;;  %v5710_v12 = vpack.c.bf16 %v475_v28, %v471_v22  ;;  %v494_v9 = vld [vmem:[#allocation5 + $0x500] sm:$0xff]  ;;  %v5726_v20 = vpack.c.bf16 %v507_v47, %v503_v53  ;;  %v511_v1 = vld [vmem:[#allocation5 + $0x588] sm:$0xff]  ;;  %v533_v17 = vld [vmem:[#allocation5 + $0x638] sm:$0xff] }
 0xbc3   :  { %v3366_v59 = vmul.f32 0.7, %v3362_v23  ;;  %v498_v32 = vld [vmem:[#allocation5 + $0x520] sm:$0xff]  ;;  %v5722_v23 = vpack.c.bf16 %v499_v62, %v495_v26  ;;  %v515_v61 = vld [vmem:[#allocation5 + $0x5a8] sm:$0xff]  ;;  %v5866_v62 = vpack.c.bf16 %v533_v17, %v529_v14  ;;  %v528_v10 = vld [vmem:[#allocation5 + $0x610] sm:$0xff] }
 0xbc4   :  { %v3368_v34 = vmul.f32 0.7, %v3364_v42  ;;  %v3369_v15 = vadd.f32 %v3365_v31, %v7777_v63  ;;  %v482_v63 = vld [vmem:[#allocation5 + $0x4a0] sm:$0xff]  ;;  %v496_v31 = vld [vmem:[#allocation5 + $0x510] sm:$0xff]  ;;  %v505_v42 = vld [vmem:[#allocation5 + $0x558] sm:$0xff]  ;;  %v5724_v22 = vpack.c.bf16 %v498_v32, %v494_v9  ;;  %v5730_v36 = vpack.c.bf16 %v515_v61, %v511_v1 }
 0xbc5   :  { %v3370_v50 = vadd.f32 %v3366_v59, %v7794_v39  ;;  %v509_v59 = vld [vmem:[#allocation5 + $0x578] sm:$0xff]  ;;  %v502_v28 = vld [vmem:[#allocation5 + $0x540] sm:$0xff]  ;;  %v532_v49 = vld [vmem:[#allocation5 + $0x630] sm:$0xff] }
 0xbc6   :  { %v3372_v39 = vadd.f32 %v3368_v34, %v7799_v5  ;;  %v5716_v5 = vpack.c.bf16 %v482_v63, %v478_v37  ;;  %v5852_v34 = vpack.c.bf16 %v500_v11, %v496_v31  ;;  %v5728_v29 = vpack.c.bf16 %v506_v55, %v502_v28  ;;  %v521_v37 = vld [vmem:[#allocation5 + $0x5d8] sm:$0xff]  ;;  %v530_v2 = vld [vmem:[#allocation5 + $0x620] sm:$0xff]  ;;  %v547_v28 = vld [vmem:[#allocation5 + $0x6a8] sm:$0xff] }
 0xbc7   :  { %3437 = vmatprep.mubr.f32.mxu0 %v3370_v50  ;;  %3579 = vmatprep.mubr.f32.mxu1 %v3370_v50  ;;  %v5854_v50 = vpack.c.bf16 %v509_v59, %v505_v42  ;;  %v525_v63 = vld [vmem:[#allocation5 + $0x5f8] sm:$0xff]  ;;  %v5868_v31 = vpack.c.bf16 %v532_v49, %v528_v10  ;;  %v534_v11 = vld [vmem:[#allocation5 + $0x640] sm:$0xff]  ;;  %v536_v59 = vld [vmem:[#allocation5 + $0x650] sm:$0xff] }
 0xbc8   :  { %3438 = vmatmul.mubr.f32.vlgmr.msra.gmra.mrb[24].mxu0 %v3369_v15  ;;  %3580 = vmatmul.mubr.f32.vlgmr.msra.gmra.mrb[24].mxu1 %v3369_v15  ;;  %v513_v15 = vld [vmem:[#allocation5 + $0x598] sm:$0xff]  ;;  %v5862_v43 = vpack.c.bf16 %v525_v63, %v521_v37  ;;  %v538_v53 = vld [vmem:[#allocation5 + $0x660] sm:$0xff]  ;;  %v552_v37 = vld [vmem:[#allocation5 + $0x6d0] sm:$0xff] }
 0xbc9   :  { %5709 = vmatpush1.bf16.msra.mxu0 %v5708_v51  ;;  %5837 = vmatpush1.bf16.msra.mxu1 %v5836_v44  ;;  %v504_v51 = vld [vmem:[#allocation5 + $0x550] sm:$0xff]  ;;  %v5858_v46 = vpack.c.bf16 %v517_v13, %v513_v15  ;;  %v537_v9 = vld [vmem:[#allocation5 + $0x658] sm:$0xff]  ;;  %v566_v49 = vld [vmem:[#allocation5 + $0x740] sm:$0xff] }
 0xbca   :  { %3508 = vmatprep.mubr.f32.mxu0 %v3372_v39  ;;  %3650 = vmatprep.mubr.f32.mxu1 %v3372_v39  ;;  %v508_v44 = vld [vmem:[#allocation5 + $0x570] sm:$0xff]  ;;  %v541_v32 = vld [vmem:[#allocation5 + $0x678] sm:$0xff] }
 0xbcb   :  { %5711 = vmatprep.subr.bf16.mxu0 %v5710_v12  ;;  %5839 = vmatprep.subr.bf16.mxu1 %v5838_v24  ;;  %v5856_v54 = vpack.c.bf16 %v508_v44, %v504_v51  ;;  %v510_v12 = vld [vmem:[#allocation5 + $0x580] sm:$0xff]  ;;  %v516_v39 = vld [vmem:[#allocation5 + $0x5b0] sm:$0xff]  ;;  %v5870_v42 = vpack.c.bf16 %v541_v32, %v537_v9  ;;  %v545_v55 = vld [vmem:[#allocation5 + $0x698] sm:$0xff] }
 0xbcc   :  { %v514_v24 = vld [vmem:[#allocation5 + $0x5a0] sm:$0xff]  ;;  %v544_v15 = vld [vmem:[#allocation5 + $0x690] sm:$0xff] }
 0xbcd   :  { %5713 = vmatpush1.bf16.msra.mxu0 %v5712_v60  ;;  %5841 = vmatpush1.bf16.msra.mxu1 %v5840_v19  ;;  %v519_v60 = vld [vmem:[#allocation5 + $0x5c8] sm:$0xff]  ;;  %v542_v51 = vld [vmem:[#allocation5 + $0x680] sm:$0xff]  ;;  %v548_v13 = vld [vmem:[#allocation5 + $0x6b0] sm:$0xff] }
 0xbce   :  { %5715 = vmatprep.subr.bf16.mxu0 %v5714_v48  ;;  %5843 = vmatprep.subr.bf16.mxu1 %v5842_v4  ;;  %v523_v19 = vld [vmem:[#allocation5 + $0x5e8] sm:$0xff]  ;;  %v5732_v48 = vpack.c.bf16 %v514_v24, %v510_v12  ;;  %v5860_v4 = vpack.c.bf16 %v516_v39, %v512_v45  ;;  %v546_v44 = vld [vmem:[#allocation5 + $0x6a0] sm:$0xff]  ;;  %v553_v12 = vld [vmem:[#allocation5 + $0x6d8] sm:$0xff] }
 0xbcf   :  { %v5734_v56 = vpack.c.bf16 %v523_v19, %v519_v60  ;;  %v557_v24 = vld [vmem:[#allocation5 + $0x6f8] sm:$0xff]  ;;  %v550_v45 = vld [vmem:[#allocation5 + $0x6c0] sm:$0xff]  ;;  %v556_v63 = vld [vmem:[#allocation5 + $0x6f0] sm:$0xff] }
 0xbd0   :  { %v554_v39 = vld [vmem:[#allocation5 + $0x6e0] sm:$0xff]  ;;  %v5878_v19 = vpack.c.bf16 %v557_v24, %v553_v12  ;;  %v560_v14 = vld [vmem:[#allocation5 + $0x710] sm:$0xff] }
 0xbd1   :  { %5717 = vmatpush1.bf16.msra.mxu0 %v5716_v5  ;;  %5845 = vmatpush1.bf16.msra.mxu1 %v5844_v18  ;;  %v527_v5 = vld [vmem:[#allocation5 + $0x608] sm:$0xff]  ;;  %v564_v17 = vld [vmem:[#allocation5 + $0x730] sm:$0xff]  ;;  %v586_v12 = vld [vmem:[#allocation5 + $0x7e0] sm:$0xff] }
 0xbd2   :  { %5719 = vmatprep.subr.bf16.mxu0 %v5718_v30  ;;  %5847 = vmatprep.subr.bf16.mxu1 %v5846_v38  ;;  %v531_v18 = vld [vmem:[#allocation5 + $0x628] sm:$0xff]  ;;  %v5736_v30 = vpack.c.bf16 %v522_v40, %v518_v57  ;;  %v5864_v38 = vpack.c.bf16 %v524_v58, %v520_v52  ;;  %v561_v57 = vld [vmem:[#allocation5 + $0x718] sm:$0xff]  ;;  %v558_v52 = vld [vmem:[#allocation5 + $0x700] sm:$0xff]  ;;  %v5884_v10 = vpack.c.bf16 %v564_v17, %v560_v14 }
 0xbd3   :  { %v5738_v26 = vpack.c.bf16 %v531_v18, %v527_v5  ;;  %v565_v40 = vld [vmem:[#allocation5 + $0x738] sm:$0xff]  ;;  %v562_v58 = vld [vmem:[#allocation5 + $0x720] sm:$0xff]  ;;  %v584_v24 = vld [vmem:[#allocation5 + $0x7d0] sm:$0xff] }
 0xbd4   :  { %v5882_v18 = vpack.c.bf16 %v565_v40, %v561_v57  ;;  %v9206_v57 = vld [vmem:[#allocation138_spill] sm:$0xff]  ;;  %v9208_v40 = vld [vmem:[#allocation140_spill] sm:$0xff]  ;;  %v9215_v14 = vld [vmem:[#allocation147_spill] sm:$0xff] }
 0xbd5   :  { %5721 = vmatpush1.bf16.msra.mxu0 %v5720_v41  ;;  %5849 = vmatpush1.bf16.msra.mxu1 %v5848_v6  ;;  %v535_v41 = vld [vmem:[#allocation5 + $0x648] sm:$0xff] }
 0xbd6   :  { %5723 = vmatprep.subr.bf16.mxu0 %v5722_v23  ;;  %5851 = vmatprep.subr.bf16.mxu1 %v5850_v27  ;;  %v539_v6 = vld [vmem:[#allocation5 + $0x668] sm:$0xff]  ;;  %v3345_v23 = vadd.f32 1e-10, %v8111_v7  ;;  %v5740_v27 = vpack.c.bf16 %v530_v2, %v526_v16  ;;  %v5744_v7 = vpack.c.bf16 %v538_v53, %v534_v11  ;;  %v569_v2 = vld [vmem:[#allocation5 + $0x758] sm:$0xff] }
 0xbd7   :  { %v5742_v47 = vpack.c.bf16 %v539_v6, %v535_v41  ;;  %v571_v16 = vld [vmem:[#allocation5 + $0x768] sm:$0xff]  ;;  %v570_v41 = vld [vmem:[#allocation5 + $0x760] sm:$0xff]  ;;  %v577_v53 = vld [vmem:[#allocation5 + $0x798] sm:$0xff] }
 0xbd8   :  { %6212 = vrsqrt.f32 %v3345_v23  ;;  %v568_v23 = vld [vmem:[#allocation5 + $0x750] sm:$0xff]  ;;  %v579_v11 = vld [vmem:[#allocation5 + $0x7a8] sm:$0xff] }
 0xbd9   :  { %5725 = vmatpush1.bf16.msra.mxu0 %v5724_v22  ;;  %5853 = vmatpush1.bf16.msra.mxu1 %v5852_v34  ;;  %v540_v22 = vld [vmem:[#allocation5 + $0x670] sm:$0xff]  ;;  %v543_v34 = vld [vmem:[#allocation5 + $0x688] sm:$0xff] }
 0xbda   :  { %5727 = vmatprep.subr.bf16.mxu0 %v5726_v20  ;;  %5855 = vmatprep.subr.bf16.mxu1 %v5854_v50  ;;  %v549_v20 = vld [vmem:[#allocation5 + $0x6b8] sm:$0xff]  ;;  %v5872_v50 = vpack.c.bf16 %v540_v22, %v536_v59  ;;  %v5746_v1 = vpack.c.bf16 %v547_v28, %v543_v34  ;;  %v574_v22 = vld [vmem:[#allocation5 + $0x780] sm:$0xff]  ;;  %v9216_v17 = vld [vmem:[#allocation148_spill] sm:$0xff] }
 0xbdb   :  { %v5874_v61 = vpack.c.bf16 %v549_v20, %v545_v55  ;;  %v578_v34 = vld [vmem:[#allocation5 + $0x7a0] sm:$0xff]  ;;  %v576_v55 = vld [vmem:[#allocation5 + $0x790] sm:$0xff] }
 0xbdc   :  { %v580_v20 = vld [vmem:[#allocation5 + $0x7b0] sm:$0xff] }
 0xbdd   :  { %5729 = vmatpush1.bf16.msra.mxu0 %v5728_v29  ;;  %5857 = vmatpush1.bf16.msra.mxu1 %v5856_v54  ;;  %v551_v29 = vld [vmem:[#allocation5 + $0x6c8] sm:$0xff] }
 0xbde   :  { %5731 = vmatprep.subr.bf16.mxu0 %v5730_v36  ;;  %5859 = vmatprep.subr.bf16.mxu1 %v5858_v46  ;;  %v555_v54 = vld [vmem:[#allocation5 + $0x6e8] sm:$0xff]  ;;  %v5748_v36 = vpack.c.bf16 %v546_v44, %v542_v51  ;;  %v5876_v46 = vpack.c.bf16 %v548_v13, %v544_v15  ;;  %v585_v44 = vld [vmem:[#allocation5 + $0x7d8] sm:$0xff]  ;;  %v5892_v15 = vpack.c.bf16 %v580_v20, %v576_v55  ;;  %v582_v13 = vld [vmem:[#allocation5 + $0x7c0] sm:$0xff] }
 0xbdf   :  { %v5750_v60 = vpack.c.bf16 %v555_v54, %v551_v29  ;;  %v587_v51 = vld [vmem:[#allocation5 + $0x7e8] sm:$0xff]  ;;  %v9241_v55 = vld [vmem:[#allocation173_spill] sm:$0xff]  ;;  %v9242_v20 = vld [vmem:[#allocation174_spill] sm:$0xff] }
 0xbe1   :  { %5733 = vmatpush1.bf16.msra.mxu0 %v5732_v48  ;;  %5861 = vmatpush1.bf16.msra.mxu1 %v5860_v4  ;;  %v559_v48 = vld [vmem:[#allocation5 + $0x708] sm:$0xff] }
 0xbe2   :  { %5735 = vmatprep.subr.bf16.mxu0 %v5734_v56  ;;  %5863 = vmatprep.subr.bf16.mxu1 %v5862_v43  ;;  %v563_v4 = vld [vmem:[#allocation5 + $0x728] sm:$0xff]  ;;  %v5752_v56 = vpack.c.bf16 %v554_v39, %v550_v45  ;;  %v5880_v43 = vpack.c.bf16 %v556_v63, %v552_v37  ;;  %v9199_v37 = vld [vmem:[#allocation131_spill] sm:$0xff] }
 0xbe3   :  { %v5754_v5 = vpack.c.bf16 %v563_v4, %v559_v48  ;;  %v9200_v63 = vld [vmem:[#allocation132_spill] sm:$0xff]  ;;  %v9201_v48 = vld [vmem:[#allocation133_spill] sm:$0xff]  ;;  %v9202_v4 = vld [vmem:[#allocation134_spill] sm:$0xff] }
 0xbe5   :  { %5737 = vmatpush1.bf16.msra.mxu0 %v5736_v30  ;;  %5865 = vmatpush1.bf16.msra.mxu1 %v5864_v38  ;;  %v567_v30 = vld [vmem:[#allocation5 + $0x748] sm:$0xff]  ;;  %v6213_v38 = vpop.eup %6212 }
 0xbe6   :  { %5739 = vmatprep.subr.bf16.mxu0 %v5738_v26  ;;  %5867 = vmatprep.subr.bf16.mxu1 %v5866_v62  ;;  %v573_v26 = vld [vmem:[#allocation5 + $0x778] sm:$0xff]  ;;  %v5756_v62 = vpack.c.bf16 %v562_v58, %v558_v52  ;;  %v3355_v6 = vmul.f32 %v6213_v38, %v8091_v35  ;;  %v5758_v9 = vpack.c.bf16 %v571_v16, %v567_v30  ;;  %v9211_v52 = vld [vmem:[#allocation143_spill] sm:$0xff]  ;;  %v9212_v58 = vld [vmem:[#allocation144_spill] sm:$0xff] }
 0xbe7   :  { %v5886_v32 = vpack.c.bf16 %v573_v26, %v569_v2  ;;  %v9217_v30 = vld [vmem:[#allocation149_spill] sm:$0xff]  ;;  %v9218_v38 = vld [vmem:[#allocation150_spill] sm:$0xff]  ;;  %v9219_v16 = vld [vmem:[#allocation151_spill] sm:$0xff] }
 0xbe8   :  { %v9220_v2 = vld [vmem:[#allocation152_spill] sm:$0xff]  ;;  %v9221_v26 = vld [vmem:[#allocation153_spill] sm:$0xff] }
 0xbe9   :  { %5741 = vmatpush1.bf16.msra.mxu0 %v5740_v27  ;;  %5869 = vmatpush1.bf16.msra.mxu1 %v5868_v31  ;;  %v572_v27 = vld [vmem:[#allocation5 + $0x770] sm:$0xff]  ;;  %v575_v31 = vld [vmem:[#allocation5 + $0x788] sm:$0xff] }
 0xbea   :  { %5743 = vmatprep.subr.bf16.mxu0 %v5742_v47  ;;  %5871 = vmatprep.subr.bf16.mxu1 %v5870_v42  ;;  %v581_v47 = vld [vmem:[#allocation5 + $0x7b8] sm:$0xff]  ;;  %v5760_v42 = vpack.c.bf16 %v570_v41, %v566_v49  ;;  %v5888_v59 = vpack.c.bf16 %v572_v27, %v568_v23  ;;  %v5762_v28 = vpack.c.bf16 %v579_v11, %v575_v31  ;;  %v9224_v49 = vld [vmem:[#allocation156_spill] sm:$0xff]  ;;  %v9225_v41 = vld [vmem:[#allocation157_spill] sm:$0xff] }
 0xbeb   :  { %v5890_v35 = vpack.c.bf16 %v581_v47, %v577_v53  ;;  %v9229_v23 = vld [vmem:[#allocation161_spill] sm:$0xff]  ;;  %v9230_v27 = vld [vmem:[#allocation162_spill] sm:$0xff]  ;;  %v9231_v31 = vld [vmem:[#allocation163_spill] sm:$0xff] }
 0xbec   :  { %v9232_v11 = vld [vmem:[#allocation164_spill] sm:$0xff]  ;;  %v9233_v53 = vld [vmem:[#allocation165_spill] sm:$0xff]  ;;  %v9234_v47 = vld [vmem:[#allocation166_spill] sm:$0xff] }
 0xbed   :  { %5745 = vmatpush1.bf16.msra.mxu0 %v5744_v7  ;;  %5873 = vmatpush1.bf16.msra.mxu1 %v5872_v50  ;;  %v583_v7 = vld [vmem:[#allocation5 + $0x7c8] sm:$0xff]  ;;  %v3359_v50 = vmul.f32 %v3355_v6, %v7856_v3  ;;  %v5768_v3 = vpack.c.bf16 %v586_v12, %v582_v13  ;;  %v9226_v6 = vld [vmem:[#allocation158_spill] sm:$0xff]  ;;  %v9253_v12 = vld [vmem:[#allocation185_spill] sm:$0xff] }
 0xbee   :  { %5747 = vmatprep.subr.bf16.mxu0 %v5746_v1  ;;  %5875 = vmatprep.subr.bf16.mxu1 %v5874_v61  ;;  %v589_v1 = vld [vmem:[#allocation5 + $0x7f8] sm:$0xff]  ;;  %v5764_v61 = vpack.c.bf16 %v578_v34, %v574_v22  ;;  %v5766_v29 = vpack.c.bf16 %v587_v51, %v583_v7  ;;  %v9237_v22 = vld [vmem:[#allocation169_spill] sm:$0xff]  ;;  %v9243_v7 = vld [vmem:[#allocation175_spill] sm:$0xff] }
 0xbef   :  { %v5894_v54 = vpack.c.bf16 %v589_v1, %v585_v44  ;;  %v9238_v34 = vld [vmem:[#allocation170_spill] sm:$0xff]  ;;  %v9245_v51 = vld [vmem:[#allocation177_spill] sm:$0xff]  ;;  %v9247_v1 = vld [vmem:[#allocation179_spill] sm:$0xff] }
 0xbf0   :  { %v9246_v44 = vld [vmem:[#allocation178_spill] sm:$0xff] }
 0xbf1   :  { %5749 = vmatpush1.bf16.msra.mxu0 %v5748_v36  ;;  %5877 = vmatpush1.bf16.msra.mxu1 %v5876_v46  ;;  %v588_v36 = vld [vmem:[#allocation5 + $0x7f0] sm:$0xff]  ;;  %v3363_v46 = vadd.f32 %v3359_v50, %v7865_v0  ;;  %v9244_v50 = vld [vmem:[#allocation176_spill] sm:$0xff]  ;;  %v9250_v13 = vld [vmem:[#allocation182_spill] sm:$0xff] }
 0xbf2   :  { %5751 = vmatprep.subr.bf16.mxu0 %v5750_v60  ;;  %5879 = vmatprep.subr.bf16.mxu1 %v5878_v19  ;;  %v5896_v45 = vpack.c.bf16 %v588_v36, %v584_v24  ;;  %v9197_v0 = vld [vmem:[#allocation129_spill] sm:$0xff]  ;;  %v9198_v19 = vld [vmem:[#allocation130_spill] sm:$0xff]  ;;  %v9255_v36 = vld [vmem:[#allocation187_spill] sm:$0xff] }
 0xbf3   :  { %v3367_v39 = vmul.f32 0.7, %v3363_v46  ;;  %v9254_v24 = vld [vmem:[#allocation186_spill] sm:$0xff]  ;;  %v9256_v46 = vld [vmem:[#allocation188_spill] sm:$0xff] }
 0xbf5   :  { %5753 = vmatpush1.bf16.msra.mxu0 %v5752_v56  ;;  %5881 = vmatpush1.bf16.msra.mxu1 %v5880_v43  ;;  %v3371_v60 = vadd.f32 %v3367_v39, %v7789_v21  ;;  %v9203_v21 = vld [vmem:[#allocation135_spill] sm:$0xff]  ;;  %v9209_v56 = vld [vmem:[#allocation141_spill] sm:$0xff]  ;;  %v9210_v43 = vld [vmem:[#allocation142_spill] sm:$0xff] }
 0xbf6   :  { %5755 = vmatprep.subr.bf16.mxu0 %v5754_v5  ;;  %5883 = vmatprep.subr.bf16.mxu1 %v5882_v18  ;;  %v9213_v5 = vld [vmem:[#allocation145_spill] sm:$0xff]  ;;  %v9214_v18 = vld [vmem:[#allocation146_spill] sm:$0xff]  ;;  %v9259_v39 = vld [vmem:[#allocation191_spill] sm:$0xff] }
 0xbf9   :  { %5757 = vmatpush1.bf16.msra.mxu0 %v5756_v62  ;;  %5885 = vmatpush1.bf16.msra.mxu1 %v5884_v10  ;;  %v9222_v62 = vld [vmem:[#allocation154_spill] sm:$0xff]  ;;  %v9223_v10 = vld [vmem:[#allocation155_spill] sm:$0xff] }
 0xbfa   :  { %5759 = vmatprep.subr.bf16.mxu0 %v5758_v9  ;;  %5887 = vmatprep.subr.bf16.mxu1 %v5886_v32  ;;  %v9227_v9 = vld [vmem:[#allocation159_spill] sm:$0xff]  ;;  %v9228_v32 = vld [vmem:[#allocation160_spill] sm:$0xff] }
 0xbfd   :  { %5761 = vmatpush1.bf16.msra.mxu0 %v5760_v42  ;;  %5889 = vmatpush1.bf16.msra.mxu1 %v5888_v59  ;;  %v9235_v42 = vld [vmem:[#allocation167_spill] sm:$0xff]  ;;  %v9236_v59 = vld [vmem:[#allocation168_spill] sm:$0xff] }
 0xbfe   :  { %5763 = vmatprep.subr.bf16.mxu0 %v5762_v28  ;;  %5891 = vmatprep.subr.bf16.mxu1 %v5890_v35  ;;  %v9239_v28 = vld [vmem:[#allocation171_spill] sm:$0xff]  ;;  %v9240_v35 = vld [vmem:[#allocation172_spill] sm:$0xff] }
 0xc01   :  { %5765 = vmatpush1.bf16.msra.mxu0 %v5764_v61  ;;  %5893 = vmatpush1.bf16.msra.mxu1 %v5892_v15  ;;  %v9248_v61 = vld [vmem:[#allocation180_spill] sm:$0xff]  ;;  %v9249_v15 = vld [vmem:[#allocation181_spill] sm:$0xff] }
 0xc02   :  { %5767 = vmatprep.subr.bf16.mxu0 %v5766_v29  ;;  %5895 = vmatprep.subr.bf16.mxu1 %v5894_v54  ;;  %v9251_v29 = vld [vmem:[#allocation183_spill] sm:$0xff]  ;;  %v9252_v54 = vld [vmem:[#allocation184_spill] sm:$0xff] }
 0xc05   :  { %5769 = vmatpush1.bf16.msra.mxu0 %v5768_v3  ;;  %5897 = vmatpush1.bf16.msra.mxu1 %v5896_v45  ;;  %v9257_v3 = vld [vmem:[#allocation189_spill] sm:$0xff]  ;;  %v9258_v45 = vld [vmem:[#allocation190_spill] sm:$0xff] }
 0xc06   :  { %5899 = vmatprep.subr.bf16.mxu0 %v9063_v25  ;;  %6027 = vmatprep.subr.bf16.mxu1 %v9064_v33  ;;  %v9204_v25 = vld [vmem:[#allocation136_spill] sm:$0xff]  ;;  %v9205_v33 = vld [vmem:[#allocation137_spill] sm:$0xff] }
 0xc08   :  { %3509 = vmatmul.mubr.f32.vlgmr.msra.gmra.mrb[24].mxu0 %v3371_v60  ;;  %3651 = vmatmul.mubr.f32.vlgmr.msra.gmra.mrb[24].mxu1 %v3371_v60 }
 0xc09   :  { %5901 = vmatpush1.bf16.msra.mxu0 %v9065_v8  ;;  %6029 = vmatpush1.bf16.msra.mxu1 %v9197_v0  ;;  %v9207_v8 = vld [vmem:[#allocation139_spill] sm:$0xff] }
 0xc0a   :  { %5903 = vmatprep.subr.bf16.mxu0 %v9198_v19  ;;  %6031 = vmatprep.subr.bf16.mxu1 %v9199_v37 }
 0xc0d   :  { %5905 = vmatpush1.bf16.msra.mxu0 %v9200_v63  ;;  %6033 = vmatpush1.bf16.msra.mxu1 %v9201_v48  ;;  %v9260_v63 = vld [vmem:[#allocation192_spill] sm:$0xff]  ;;  %v9261_v48 = vld [vmem:[#allocation193_spill] sm:$0xff] }
 0xc0e   :  { %5907 = vmatprep.subr.bf16.mxu0 %v9202_v4  ;;  %6035 = vmatprep.subr.bf16.mxu1 %v9203_v21  ;;  %v9262_v4 = vld [vmem:[#allocation194_spill] sm:$0xff]  ;;  %v9263_v21 = vld [vmem:[#allocation195_spill] sm:$0xff] }
 0xc11   :  { %5909 = vmatpush1.bf16.msra.mxu0 %v9204_v25  ;;  %6037 = vmatpush1.bf16.msra.mxu1 %v9205_v33  ;;  %v9264_v25 = vld [vmem:[#allocation196_spill] sm:$0xff]  ;;  %v9265_v33 = vld [vmem:[#allocation197_spill] sm:$0xff] }
 0xc12   :  { %5911 = vmatprep.subr.bf16.mxu0 %v9206_v57  ;;  %6039 = vmatprep.subr.bf16.mxu1 %v9207_v8  ;;  %v9266_v57 = vld [vmem:[#allocation198_spill] sm:$0xff]  ;;  %v9267_v8 = vld [vmem:[#allocation199_spill] sm:$0xff] }
 0xc15   :  { %5913 = vmatpush1.bf16.msra.mxu0 %v9208_v40  ;;  %6041 = vmatpush1.bf16.msra.mxu1 %v9209_v56  ;;  %v9268_v40 = vld [vmem:[#allocation200_spill] sm:$0xff]  ;;  %v9269_v56 = vld [vmem:[#allocation201_spill] sm:$0xff] }
 0xc16   :  { %5915 = vmatprep.subr.bf16.mxu0 %v9210_v43  ;;  %6043 = vmatprep.subr.bf16.mxu1 %v9211_v52  ;;  %v9270_v43 = vld [vmem:[#allocation202_spill] sm:$0xff]  ;;  %v9271_v52 = vld [vmem:[#allocation203_spill] sm:$0xff] }
 0xc19   :  { %5917 = vmatpush1.bf16.msra.mxu0 %v9212_v58  ;;  %6045 = vmatpush1.bf16.msra.mxu1 %v9213_v5  ;;  %v9272_v58 = vld [vmem:[#allocation204_spill] sm:$0xff]  ;;  %v9273_v5 = vld [vmem:[#allocation205_spill] sm:$0xff] }
 0xc1a   :  { %5919 = vmatprep.subr.bf16.mxu0 %v9214_v18  ;;  %6047 = vmatprep.subr.bf16.mxu1 %v9215_v14  ;;  %v9274_v18 = vld [vmem:[#allocation206_spill] sm:$0xff]  ;;  %v9275_v14 = vld [vmem:[#allocation207_spill] sm:$0xff] }
 0xc1d   :  { %5921 = vmatpush1.bf16.msra.mxu0 %v9216_v17  ;;  %6049 = vmatpush1.bf16.msra.mxu1 %v9217_v30  ;;  %v9276_v17 = vld [vmem:[#allocation208_spill] sm:$0xff]  ;;  %v9277_v30 = vld [vmem:[#allocation209_spill] sm:$0xff] }
 0xc1e   :  { %5923 = vmatprep.subr.bf16.mxu0 %v9218_v38  ;;  %6051 = vmatprep.subr.bf16.mxu1 %v9219_v16  ;;  %v9278_v38 = vld [vmem:[#allocation210_spill] sm:$0xff]  ;;  %v9279_v16 = vld [vmem:[#allocation211_spill] sm:$0xff] }
 0xc21   :  { %5925 = vmatpush1.bf16.msra.mxu0 %v9220_v2  ;;  %6053 = vmatpush1.bf16.msra.mxu1 %v9221_v26  ;;  %v9280_v2 = vld [vmem:[#allocation212_spill] sm:$0xff]  ;;  %v9281_v26 = vld [vmem:[#allocation213_spill] sm:$0xff] }
 0xc22   :  { %5927 = vmatprep.subr.bf16.mxu0 %v9222_v62  ;;  %6055 = vmatprep.subr.bf16.mxu1 %v9223_v10  ;;  %v9282_v62 = vld [vmem:[#allocation214_spill] sm:$0xff]  ;;  %v9283_v10 = vld [vmem:[#allocation215_spill] sm:$0xff] }
 0xc25   :  { %5929 = vmatpush1.bf16.msra.mxu0 %v9224_v49  ;;  %6057 = vmatpush1.bf16.msra.mxu1 %v9225_v41  ;;  %v9284_v49 = vld [vmem:[#allocation216_spill] sm:$0xff]  ;;  %v9285_v41 = vld [vmem:[#allocation217_spill] sm:$0xff] }
 0xc26   :  { %5931 = vmatprep.subr.bf16.mxu0 %v9226_v6  ;;  %6059 = vmatprep.subr.bf16.mxu1 %v9227_v9  ;;  %v9286_v6 = vld [vmem:[#allocation218_spill] sm:$0xff]  ;;  %v9287_v9 = vld [vmem:[#allocation219_spill] sm:$0xff] }
 0xc29   :  { %5933 = vmatpush1.bf16.msra.mxu0 %v9228_v32  ;;  %6061 = vmatpush1.bf16.msra.mxu1 %v9229_v23  ;;  %v9288_v32 = vld [vmem:[#allocation220_spill] sm:$0xff]  ;;  %v9289_v23 = vld [vmem:[#allocation221_spill] sm:$0xff] }
 0xc2a   :  { %5935 = vmatprep.subr.bf16.mxu0 %v9230_v27  ;;  %6063 = vmatprep.subr.bf16.mxu1 %v9231_v31  ;;  %v9290_v27 = vld [vmem:[#allocation222_spill] sm:$0xff]  ;;  %v9291_v31 = vld [vmem:[#allocation223_spill] sm:$0xff] }
 0xc2d   :  { %5937 = vmatpush1.bf16.msra.mxu0 %v9232_v11  ;;  %6065 = vmatpush1.bf16.msra.mxu1 %v9233_v53  ;;  %v9292_v11 = vld [vmem:[#allocation224_spill] sm:$0xff]  ;;  %v9293_v53 = vld [vmem:[#allocation225_spill] sm:$0xff] }
 0xc2e   :  { %5939 = vmatprep.subr.bf16.mxu0 %v9234_v47  ;;  %6067 = vmatprep.subr.bf16.mxu1 %v9235_v42  ;;  %v9294_v47 = vld [vmem:[#allocation226_spill] sm:$0xff]  ;;  %v9295_v42 = vld [vmem:[#allocation227_spill] sm:$0xff] }
 0xc31   :  { %5941 = vmatpush1.bf16.msra.mxu0 %v9236_v59  ;;  %6069 = vmatpush1.bf16.msra.mxu1 %v9237_v22  ;;  %v9296_v59 = vld [vmem:[#allocation228_spill] sm:$0xff]  ;;  %v9297_v22 = vld [vmem:[#allocation229_spill] sm:$0xff] }
 0xc32   :  { %5943 = vmatprep.subr.bf16.mxu0 %v9238_v34  ;;  %6071 = vmatprep.subr.bf16.mxu1 %v9239_v28  ;;  %v9298_v34 = vld [vmem:[#allocation230_spill] sm:$0xff]  ;;  %v9299_v28 = vld [vmem:[#allocation231_spill] sm:$0xff] }
 0xc35   :  { %5945 = vmatpush1.bf16.msra.mxu0 %v9240_v35  ;;  %6073 = vmatpush1.bf16.msra.mxu1 %v9241_v55  ;;  %v9300_v35 = vld [vmem:[#allocation232_spill] sm:$0xff]  ;;  %v9301_v55 = vld [vmem:[#allocation233_spill] sm:$0xff] }
 0xc36   :  { %5947 = vmatprep.subr.bf16.mxu0 %v9242_v20  ;;  %6075 = vmatprep.subr.bf16.mxu1 %v9243_v7  ;;  %v9302_v20 = vld [vmem:[#allocation234_spill] sm:$0xff]  ;;  %v9303_v7 = vld [vmem:[#allocation235_spill] sm:$0xff] }
 0xc39   :  { %5949 = vmatpush1.bf16.msra.mxu0 %v9244_v50  ;;  %6077 = vmatpush1.bf16.msra.mxu1 %v9245_v51  ;;  %v9304_v50 = vld [vmem:[#allocation236_spill] sm:$0xff]  ;;  %v9305_v51 = vld [vmem:[#allocation237_spill] sm:$0xff] }
 0xc3a   :  { %5951 = vmatprep.subr.bf16.mxu0 %v9246_v44  ;;  %6079 = vmatprep.subr.bf16.mxu1 %v9247_v1  ;;  %v9306_v44 = vld [vmem:[#allocation238_spill] sm:$0xff]  ;;  %v9307_v1 = vld [vmem:[#allocation239_spill] sm:$0xff] }
 0xc3d   :  { %5953 = vmatpush1.bf16.msra.mxu0 %v9248_v61  ;;  %6081 = vmatpush1.bf16.msra.mxu1 %v9249_v15  ;;  %v9308_v61 = vld [vmem:[#allocation240_spill] sm:$0xff]  ;;  %v9309_v15 = vld [vmem:[#allocation241_spill] sm:$0xff] }
 0xc3e   :  { %5955 = vmatprep.subr.bf16.mxu0 %v9250_v13  ;;  %6083 = vmatprep.subr.bf16.mxu1 %v9251_v29  ;;  %v9310_v13 = vld [vmem:[#allocation242_spill] sm:$0xff]  ;;  %v9311_v29 = vld [vmem:[#allocation243_spill] sm:$0xff] }
 0xc41   :  { %5957 = vmatpush1.bf16.msra.mxu0 %v9252_v54  ;;  %6085 = vmatpush1.bf16.msra.mxu1 %v9253_v12  ;;  %v9312_v54 = vld [vmem:[#allocation244_spill] sm:$0xff]  ;;  %v9313_v12 = vld [vmem:[#allocation245_spill] sm:$0xff] }
 0xc42   :  { %5959 = vmatprep.subr.bf16.mxu0 %v9254_v24  ;;  %6087 = vmatprep.subr.bf16.mxu1 %v9255_v36  ;;  %v9314_v24 = vld [vmem:[#allocation246_spill] sm:$0xff]  ;;  %v9315_v36 = vld [vmem:[#allocation247_spill] sm:$0xff] }
 0xc45   :  { %5961 = vmatpush1.bf16.msra.mxu0 %v9256_v46  ;;  %6089 = vmatpush1.bf16.msra.mxu1 %v9257_v3  ;;  %v9316_v46 = vld [vmem:[#allocation248_spill] sm:$0xff]  ;;  %v9317_v3 = vld [vmem:[#allocation249_spill] sm:$0xff] }
 0xc46   :  { %5963 = vmatprep.subr.bf16.mxu0 %v9258_v45  ;;  %6091 = vmatprep.subr.bf16.mxu1 %v9259_v39  ;;  %v9318_v45 = vld [vmem:[#allocation250_spill] sm:$0xff]  ;;  %v9319_v39 = vld [vmem:[#allocation251_spill] sm:$0xff] }
 0xcdb   :  { %v3510_v60 = vpop.f32.mrb[24].mxu0  ;;  %v8196_v0 = vpop.f32.mrb[24].mxu1 }
 0xcdc   :  { %v3512_v19 = vpop.f32.mrb[25].mxu0  ;;  %v3654_v37 = vpop.f32.mrb[25].mxu1 }
 0xcdd   :  { %3742 = vmatprep.mubr.f32.mxu0 %v3512_v19  ;;  %3884 = vmatprep.mubr.f32.mxu1 %v3512_v19  ;;  %v9321_v19 = vld [vmem:[#allocation253_spill] sm:$0xff] }
 0xcde   :  { %3743 = vmatmul.mubr.f32.vlgmr.msra.gmra.mrb[26].mxu0 %v3510_v60  ;;  %3885 = vmatmul.mubr.f32.vlgmr.msra.gmra.mrb[26].mxu1 %v3510_v60  ;;  %v9320_v60 = vld [vmem:[#allocation252_spill] sm:$0xff] }
 0xcdf   :  { %5965 = vmatpush1.bf16.msra.mxu0 %v9260_v63  ;;  %6093 = vmatpush1.bf16.msra.mxu1 %v9261_v48  ;;  %v9322_v63 = vld [vmem:[#allocation256_spill] sm:$0xff] }
 0xce0   :  { %3813 = vmatprep.mubr.f32.mxu0 %v3654_v37  ;;  %3955 = vmatprep.mubr.f32.mxu1 %v3654_v37  ;;  %v847_v37 = vld [vmem:[%s8292_s6] sm:$0xf]  ;;  %s6332_s6 = smov [#allocation8]  }
 0xce1   :  { %5967 = vmatprep.subr.bf16.mxu0 %v9262_v4  ;;  %6095 = vmatprep.subr.bf16.mxu1 %v9263_v21  ;;  %v3661_v48 = vrot.slane %v847_v37, %v9322_v63  ;;  %v9323_v4 = vld [vmem:[#allocation257_spill] sm:$0xff]  ;;  %s4032_s19 = sshll.u32 %s6332_s6, 4  ;;  %s4033_s19 = int_to_ptr.vmem [resolvable:$true] %s4032_s19 }
 0xce2   :  { %v3669_v21 = vrot.slane %v847_v37, %v9323_v4  ;;  %s6297_s22 = scalar_lea.vmem %s4033_s19, 128  ;;  %p6302_p11 = scmp.lt.s32.totalorder %s4033_s19, %s4033_s19 }
 0xce3   :  { %5969 = vmatpush1.bf16.msra.mxu0 %v9264_v25  ;;  %6097 = vmatpush1.bf16.msra.mxu1 %v9265_v33  ;;  %v9324_v25 = vld [vmem:[#allocation254_spill] sm:$0xff]  ;;  %p6298_p10 = scmp.ne.s32.totalorder %s4033_s19, %s6297_s22  ;;  %p6303_p12 = scmp.lt.s32.totalorder %s6297_s22, %s6297_s22 }
 0xce4   :  { %5971 = vmatprep.subr.bf16.mxu0 %v9266_v57  ;;  %6099 = vmatprep.subr.bf16.mxu1 %v9267_v8  ;;  %v3665_v33 = vrot.slane %v847_v37, %v9324_v25  ;;  %v9325_v57 = vld [vmem:[#allocation255_spill] sm:$0xff] }
 0xce5   :  { %v3673_v8 = vrot.slane %v847_v37, %v9325_v57  ;;  %p6304_p13 = por %p6303_p12, %p6302_p11 }
 0xce7   :  { %5973 = vmatpush1.bf16.msra.mxu0 %v9268_v40  ;;  %6101 = vmatpush1.bf16.msra.mxu1 %v9269_v56  ;;  %p6305_p0 = pnand %p6304_p13, %p6298_p10 }
 0xce8   :  { %5975 = vmatprep.subr.bf16.mxu0 %v9270_v43  ;;  %6103 = vmatprep.subr.bf16.mxu1 %v9271_v52 }
 0xceb   :  { %5977 = vmatpush1.bf16.msra.mxu0 %v9272_v58  ;;  %6105 = vmatpush1.bf16.msra.mxu1 %v9273_v5 }
 0xcec   :  { %5979 = vmatprep.subr.bf16.mxu0 %v9274_v18  ;;  %6107 = vmatprep.subr.bf16.mxu1 %v9275_v14 }
 0xcef   :  { %5981 = vmatpush1.bf16.msra.mxu0 %v9276_v17  ;;  %6109 = vmatpush1.bf16.msra.mxu1 %v9277_v30 }
 0xcf0   :  { %5983 = vmatprep.subr.bf16.mxu0 %v9278_v38  ;;  %6111 = vmatprep.subr.bf16.mxu1 %v9279_v16 }
 0xcf3   :  { %5985 = vmatpush1.bf16.msra.mxu0 %v9280_v2  ;;  %6113 = vmatpush1.bf16.msra.mxu1 %v9281_v26 }
 0xcf4   :  { %5987 = vmatprep.subr.bf16.mxu0 %v9282_v62  ;;  %6115 = vmatprep.subr.bf16.mxu1 %v9283_v10 }
 0xcf7   :  { %5989 = vmatpush1.bf16.msra.mxu0 %v9284_v49  ;;  %6117 = vmatpush1.bf16.msra.mxu1 %v9285_v41 }
 0xcf8   :  { %5991 = vmatprep.subr.bf16.mxu0 %v9286_v6  ;;  %6119 = vmatprep.subr.bf16.mxu1 %v9287_v9 }
 0xcfb   :  { %5993 = vmatpush1.bf16.msra.mxu0 %v9288_v32  ;;  %6121 = vmatpush1.bf16.msra.mxu1 %v9289_v23 }
 0xcfc   :  { %5995 = vmatprep.subr.bf16.mxu0 %v9290_v27  ;;  %6123 = vmatprep.subr.bf16.mxu1 %v9291_v31 }
 0xcff   :  { %5997 = vmatpush1.bf16.msra.mxu0 %v9292_v11  ;;  %6125 = vmatpush1.bf16.msra.mxu1 %v9293_v53 }
 0xd00   :  { %5999 = vmatprep.subr.bf16.mxu0 %v9294_v47  ;;  %6127 = vmatprep.subr.bf16.mxu1 %v9295_v42 }
 0xd03   :  { %6001 = vmatpush1.bf16.msra.mxu0 %v9296_v59  ;;  %6129 = vmatpush1.bf16.msra.mxu1 %v9297_v22 }
 0xd04   :  { %6003 = vmatprep.subr.bf16.mxu0 %v9298_v34  ;;  %6131 = vmatprep.subr.bf16.mxu1 %v9299_v28 }
 0xd07   :  { %6005 = vmatpush1.bf16.msra.mxu0 %v9300_v35  ;;  %6133 = vmatpush1.bf16.msra.mxu1 %v9301_v55 }
 0xd08   :  { %6007 = vmatprep.subr.bf16.mxu0 %v9302_v20  ;;  %6135 = vmatprep.subr.bf16.mxu1 %v9303_v7 }
 0xd0b   :  { %6009 = vmatpush1.bf16.msra.mxu0 %v9304_v50  ;;  %6137 = vmatpush1.bf16.msra.mxu1 %v9305_v51 }
 0xd0c   :  { %6011 = vmatprep.subr.bf16.mxu0 %v9306_v44  ;;  %6139 = vmatprep.subr.bf16.mxu1 %v9307_v1 }
 0xd0f   :  { %6013 = vmatpush1.bf16.msra.mxu0 %v9308_v61  ;;  %6141 = vmatpush1.bf16.msra.mxu1 %v9309_v15 }
 0xd10   :  { %6015 = vmatprep.subr.bf16.mxu0 %v9310_v13  ;;  %6143 = vmatprep.subr.bf16.mxu1 %v9311_v29 }
 0xd13   :  { %6017 = vmatpush1.bf16.msra.mxu0 %v9312_v54  ;;  %6145 = vmatpush1.bf16.msra.mxu1 %v9313_v12 }
 0xd14   :  { %6019 = vmatprep.subr.bf16.mxu0 %v9314_v24  ;;  %6147 = vmatprep.subr.bf16.mxu1 %v9315_v36 }
 0xd17   :  { %6021 = vmatpush1.bf16.msra.mxu0 %v9316_v46  ;;  %6149 = vmatpush1.bf16.msra.mxu1 %v9317_v3  ;;  %v9326_v3 = vld [vmem:[#allocation43_spill] sm:$0xff] }
 0xd18   :  { %6023 = vmatprep.subr.bf16.mxu0 %v9318_v45  ;;  %6151 = vmatprep.subr.bf16.mxu1 %v9319_v39 }
 0xd1b   :  { %6025 = vmatpush1.bf16.msra.mxu0 %v9320_v60  ;;  %6153 = vmatpush1.bf16.msra.mxu1 %v9321_v19  ;;  %v6230_v19 = vld [vmem:[%s8286_s0] sm:$0xff] }
 0xd1e   :  { %3814 = vmatmul.mubr.f32.vlgmr.msra.gmra.mrb[26].mxu0 %v8196_v0  ;;  %3956 = vmatmul.mubr.f32.vlgmr.msra.gmra.mrb[26].mxu1 %v8196_v0 }
 0xdf1   :  { %v3815_v40 = vpop.f32.mrb[26].mxu0  ;;  %v3957_v56 = vpop.f32.mrb[26].mxu1 }
 0xdf2   :  { %v6162_v43 = vadd.f32 %v3815_v40, %v3661_v48  ;;  %v6164_v52 = vadd.f32 %v3957_v56, %v3669_v21  ;;  %v3817_v58 = vpop.f32.mrb[27].mxu0  ;;  %v3959_v5 = vpop.f32.mrb[27].mxu1 }
 0xdf3   :  { %v6163_v18 = vadd.f32 %v3817_v58, %v3665_v33  ;;  %v6165_v0 = vadd.f32 %v3959_v5, %v3673_v8 }
 0xdf4   :  { %v3966_v14 = vmul.f32 0.70710677, %v6162_v43  ;;  %v3968_v17 = vmul.f32 0.70710677, %v6164_v52  ;;  %v3962_v26 = vmul.f32 0.5, %v6162_v43  ;;  %v3964_v49 = vmul.f32 0.5, %v6164_v52 }
 0xdf5   :  { %v3967_v30 = vmul.f32 0.70710677, %v6163_v18  ;;  %v3969_v38 = vmul.f32 0.70710677, %v6165_v0  ;;  %v3963_v32 = vmul.f32 0.5, %v6163_v18  ;;  %v3965_v31 = vmul.f32 0.5, %v6165_v0 }
 0xdf6   :  { %6214 = verf.f32 %v3966_v14 }
 0xdf7   :  { %6216 = verf.f32 %v3968_v17 }
 0xdf8   :  { %6218 = verf.f32 %v3967_v30 }
 0xdf9   :  { %6220 = verf.f32 %v3969_v38 }
 0xe00   :  { %v6215_v16 = vpop.eup %6214 }
 0xe01   :  { %v6217_v2 = vpop.eup %6216  ;;  %v3974_v62 = vadd.f32 1.0, %v6215_v16 }
 0xe02   :  { %v6219_v10 = vpop.eup %6218  ;;  %v3976_v41 = vadd.f32 1.0, %v6217_v2 }
 0xe03   :  { %v6221_v6 = vpop.eup %6220  ;;  %v3978_v9 = vmul.f32 %v3974_v62, %v3962_v26  ;;  %v3975_v23 = vadd.f32 1.0, %v6219_v10 }
 0xe04   :  { %v3980_v27 = vmul.f32 %v3976_v41, %v3964_v49  ;;  %v3977_v11 = vadd.f32 1.0, %v6221_v6 }
 0xe05   :  { %v3986_v53 = vmul.f32 0.70710677, %v3978_v9  ;;  %v3979_v47 = vmul.f32 %v3975_v23, %v3963_v32  ;;  %v3982_v55 = vmul.f32 0.5, %v3978_v9 }
 0xe06   :  { %v3988_v42 = vmul.f32 0.70710677, %v3980_v27  ;;  %v3981_v59 = vmul.f32 %v3977_v11, %v3965_v31  ;;  %v3984_v50 = vmul.f32 0.5, %v3980_v27 }
 0xe07   :  { %6222 = verf.f32 %v3986_v53  ;;  %v3987_v22 = vmul.f32 0.70710677, %v3979_v47  ;;  %v3983_v61 = vmul.f32 0.5, %v3979_v47 }
 0xe08   :  { %6224 = verf.f32 %v3988_v42  ;;  %v3989_v34 = vmul.f32 0.70710677, %v3981_v59  ;;  %v3985_v29 = vmul.f32 0.5, %v3981_v59 }
 0xe09   :  { %6226 = verf.f32 %v3987_v22 }
 0xe0a   :  { %6228 = verf.f32 %v3989_v34 }
 0xe11   :  { %v6223_v28 = vpop.eup %6222 }
 0xe12   :  { %v6225_v35 = vpop.eup %6224  ;;  %v3994_v20 = vadd.f32 1.0, %v6223_v28 }
 0xe13   :  { %v6227_v7 = vpop.eup %6226  ;;  %v3996_v51 = vadd.f32 1.0, %v6225_v35 }
 0xe14   :  { %v6229_v44 = vpop.eup %6228  ;;  %v3998_v1 = vmul.f32 %v3994_v20, %v3982_v55  ;;  %v3995_v15 = vadd.f32 1.0, %v6227_v7 }
 0xe15   :  { %v4000_v13 = vmul.f32 %v3996_v51, %v3984_v50  ;;  %v3997_v54 = vadd.f32 1.0, %v6229_v44 }
 0xe16   :  { %v3999_v12 = vmul.f32 %v3995_v15, %v3983_v61 }
 0xe17   :  { %v4001_v24 = vmul.f32 %v3997_v54, %v3985_v29 }
 0xe18   :  { %v4006_v36 = vcombine.low %v3998_v1, %v3999_v12 }
 0xe19   :  { %v4007_v46 = vcombine.low %v4000_v13, %v4001_v24 }
 0xe1a   :  { %v4014_v45 = vrot.slane %v4006_v36, %v9326_v3 }
 0xe1b   :  { %v4021_v39 = vrot.slane %v4007_v46, %v9326_v3 }
 0xe1d   :  { %v4022_v60 = vcombine.low %v4014_v45, %v4021_v39 }
 0xe1f   :  { %v4024_v37 = vadd.f32 %v6230_v19, %v4022_v60 }
 0xe21   :  { %4025 = vst [vmem:[#allocation8] sm:$0xff] %v4024_v37 }
 0xe22   :  { %6308 = shalt.err (!%p6305_p0)
}
 0xe23   :  { %s6309_s2 = scalar_lea.hbm %s8296_s10, 128 }
 0xe24   :  { %p6310_p1 = scmp.ne.s32.totalorder %s8296_s10, %s6309_s2  ;;  %p6313_p2 = scmp.lt.u32.totalorder %s6309_s2, %s8296_s10 }
 0xe26   :  { %p6315_p3 = pnand %p6313_p2, %p6310_p1 }
 0xe28   :  { %6318 = shalt.err (!%p6315_p3)
}
 0xe29   :  { %4035 = dma.vmem_to_hbm [thread:$0]  %s4033_s19, 128, %s8296_s10, [#allocation4]  }
 0xe2a   :  { %6323 = dma.done.wait [#allocation4], 128  }
 0xe2b   :  { %6324 = vsyncadd [#allocation4], 4294967168 }
 0xe2c   :  { %4039 = vsyncpa [#allocation3], 1 }
 0xe2d   :  { %4040 = vsyncpa [#allocation6], 1 }
 0xe2e   :  { %4041 = vsyncpa [#allocation4], 1 }

</bundles_post_ra>
